<compile_context>
chip_gen: v5e
topology: v5e:2x2
jax: 0.10.0
libtpu: 0.0.40
codegen_flags: <defaults>
</compile_context>

<pallas_src>
import functools

import jax
import jax.numpy as jnp
from jax.experimental import pallas as pl
from jax.experimental.pallas import tpu as pltpu


MXU_DTYPE = jnp.bfloat16   # matmul-operand dtype (f32 accumulation). Set to
                           # jnp.float32 to match the PyTorch reference exactly.
_PAD_L = 128               # zero halo columns before each sample's payload (lane aligned)
_PAD_R = 128               # zero halo columns after  each sample's payload


# --------------------------------- kernel ------------------------------------

def _make_kernel(*, depth, K, F, Cb, Cin0p, OUTP, T, Bt, stride, left1,
                 left_max, right_max, c_max):
    nbf = 4 * F

    def payload(s):                      # column where sample s's payload starts
        return _PAD_L + s * stride

    def gather(pad_ref, rows, shift):
        """Contiguous (rows, Bt*T) view of the staged activation shifted by `shift`
        within each sample (zero fill comes from the zeroed halo columns)."""
        parts = [pad_ref[0:rows, payload(s) + shift: payload(s) + shift + T]
                 for s in range(Bt)]
        return parts[0] if Bt == 1 else jnp.concatenate(parts, axis=1)

    def scatter(pad_ref, row0, val):
        """Store a (rows, Bt*T) value into the per-sample payload slots."""
        rows = val.shape[0]
        for s in range(Bt):
            pad_ref[row0:row0 + rows, payload(s):payload(s) + T] = val[:, s * T:(s + 1) * T]

    def build_stack(stack_ref, pad_ref, cin, k_taps, left):
        """im2col: k_taps shifted views of the staged activation, stacked on sublanes."""
        for k in range(k_taps):
            for s in range(Bt):
                src = pad_ref[0:cin, payload(s) - left + k: payload(s) - left + k + T]
                stack_ref[k * cin:(k + 1) * cin, s * T:(s + 1) * T] = src.astype(stack_ref.dtype)

    def kernel(*refs):
        n_in = 1 + 2 * depth + 4
        x_ref = refs[0]
        win_refs = refs[1:1 + depth]                       # (Cb, K*Cin)  bf16
        w4_refs = refs[1 + depth:1 + 2 * depth]            # (F, Cin)     bf16 (BN-scaled)
        wleft_ref, outw_ref, lin_ref, aux_ref = refs[1 + 2 * depth:n_in]
        o_ref = refs[n_in]
        pad_ref, stack_ref = refs[n_in + 1:]

        # Zero only the halo strips that are actually read (cheap; safe with a
        # "parallel" batch axis on megacore parts -- no first-step gating).
        zl = jnp.zeros((c_max, left_max), jnp.float32)
        zr = jnp.zeros((c_max, right_max), jnp.float32)
        for s in range(Bt):
            pad_ref[0:c_max, payload(s) - left_max:payload(s)] = zl
            pad_ref[0:c_max, payload(s) + T:payload(s) + T + right_max] = zr

        # Stage the Bt input samples into the padded layout.
        for s in range(Bt):
            pad_ref[0:Cin0p, payload(s):payload(s) + T] = x_ref[s]

        cin = Cin0p
        for d in range(depth):
            # Bottleneck conv (Pad_Conv 'same', K taps), no bias / activation.
            if K > 1:
                build_stack(stack_ref, pad_ref, cin, K, left1)
                rhs_in = stack_ref[0:K * cin, :]
            else:
                rhs_in = gather(pad_ref, cin, 0).astype(MXU_DTYPE)
            x_left = jnp.dot(win_refs[d][...], rhs_in,
                             preferred_element_type=jnp.float32)          # (Cb, N)

            # Right branch: MaxPool1d(3, 'same') on the block input, then the
            # 1x1 conv (BN scale already folded into the weight).
            pooled = jnp.maximum(
                jnp.maximum(gather(pad_ref, cin, -1), gather(pad_ref, cin, 0)),
                gather(pad_ref, cin, 1))
            xr = jnp.dot(w4_refs[d][...], pooled.astype(MXU_DTYPE),
                         preferred_element_type=jnp.float32)              # (F, N)

            # Merged left branches [conv1; conv2(padded taps); conv1] in one matmul
            # (BN scales folded into the stacked LHS rows in the wrapper).
            scatter(pad_ref, 0, x_left)            # stage x_left for 'same' padding
            if K > 1:
                build_stack(stack_ref, pad_ref, Cb, K, left1)
                rhs_l = stack_ref[0:K * Cb, :]
            else:
                rhs_l = gather(pad_ref, Cb, 0).astype(MXU_DTYPE)
            left3 = jnp.dot(wleft_ref[d], rhs_l,
                            preferred_element_type=jnp.float32)           # (3F, N)

            # BN shift + ReLU, written directly into the padded layout so it is
            # the next block's staged input (no cat_ref round trip).
            sh_l = aux_ref[d * nbf:d * nbf + 3 * F, :]
            sh_r = aux_ref[d * nbf + 3 * F:(d + 1) * nbf, :]
            scatter(pad_ref, 0, jnp.maximum(left3 + sh_l, 0.0))
            scatter(pad_ref, 3 * F, jnp.maximum(xr + sh_r, 0.0))
            cin = nbf

        # gap layer: Pad_Pool(0, 1) + AvgPool1d(kernel=2, stride=1)
        g = (gather(pad_ref, nbf, 0) + gather(pad_ref, nbf, 1)) * 0.5
        # output layer: 1x1 conv (BN folded into weight/bias) + ReLU
        a = jnp.maximum(
            jnp.dot(outw_ref[...], g.astype(MXU_DTYPE),
                    preferred_element_type=jnp.float32)
            + aux_ref[depth * nbf:depth * nbf + OUTP, :], 0.0)             # (OUTP, N)
        # Pad_Pool(0, 1) + MaxPool1d(kernel=2, stride=1)
        scatter(pad_ref, 0, a)
        m = jnp.maximum(a, gather(pad_ref, OUTP, 1))
        # out_linear: only column 0 of nn.Linear(T, out_dim) is consumed downstream;
        # contract against a block-diagonal per-sample weight -> (OUTP, Bt).
        o_ref[...] = jnp.dot(m.astype(MXU_DTYPE), lin_ref[...],
                             preferred_element_type=jnp.float32)

    return kernel


# -------------------------------- wrappers -----------------------------------

def _flatten_conv(w):
    """(Cout, Cin, K) conv weight -> (Cout, K*Cin), tap-major (matches the stack)."""
    cout, cin, k = w.shape
    return jnp.transpose(w, (0, 2, 1)).reshape(cout, k * cin)


def _flatten_conv_padded(w, k_target, offset):
    """Embed a K2-tap conv weight into the K-tap im2col layout at tap offset `offset`."""
    cout, cin, k = w.shape
    buf = jnp.zeros((cout, k_target, cin), w.dtype)
    buf = buf.at[:, offset:offset + k, :].set(jnp.transpose(w, (0, 2, 1)))
    return buf.reshape(cout, k_target * cin)


def _bn_scale_shift(gamma, beta, mean, var, eps=1e-5):
    scale = gamma / jnp.sqrt(var + eps)
    return scale, beta - mean * scale


def _pad_dim(a, axis, size):
    if a.shape[axis] == size:
        return a
    pad = [(0, 0)] * a.ndim
    pad[axis] = (0, size - a.shape[axis])
    return jnp.pad(a, pad)


def inception_time_forward(x, params, *, batch_tile=2):
    """x: [B, nb_channels, D, T]; the PyTorch forward uses x[:, :, 0, :]."""
    h0 = x[:, :, 0, :].astype(jnp.float32)                 # (B, Cin0, T)
    B, cin0, T = h0.shape
    blocks = params["blocks"]
    depth = len(blocks)
    assert depth >= 1
    Cb, _, K = blocks[0]["conv_in_w"].shape
    F, _, K1 = blocks[0]["conv1_w"].shape
    K2 = blocks[0]["conv2_w"].shape[2]
    assert K1 == K, "conv1 kernel must equal the bottleneck kernel (kernel_size // 1)"
    nbf = 4 * F

    # ---- batch tiling ----
    Bt = max(1, min(batch_tile, B))
    B_pad = ((B + Bt - 1) // Bt) * Bt
    n_steps = B_pad // Bt
    cin0p = ((cin0 + 7) // 8) * 8                          # sublane-aligned input channels
    h0 = _pad_dim(_pad_dim(h0, 0, B_pad), 1, cin0p).reshape(n_steps, Bt, cin0p, T)
    N = Bt * T

    # ---- padding geometry ----
    left1 = (K + 1) // 2 - 1                               # Pad_Conv: left = ceil(K/2)-1
    left2 = (K2 + 1) // 2 - 1
    left_max = max(left1, 1)                               # pools also need +/-1
    right_max = max(K // 2, 1)
    assert left_max <= _PAD_L and right_max <= _PAD_R, "kernel_size too large for layout"
    stride = _PAD_L + T + _PAD_R

    out_ch = params["out_conv_w"].shape[0]
    OUTP = ((out_ch + 7) // 8) * 8
    c_max = max(cin0p, nbf, Cb, OUTP)

    # ---- weight preparation (BN scale folding, merged left conv, bf16 precast) ----
    win_list, w4_list, wleft_list, shift_list = [], [], [], []
    for d, blk in enumerate(blocks):
        cin = cin0p if d == 0 else nbf
        sc, sh = _bn_scale_shift(blk["bn_gamma"], blk["bn_beta"],
                                 blk["bn_mean"], blk["bn_var"])
        win_list.append(_flatten_conv(_pad_dim(blk["conv_in_w"], 1, cin)).astype(MXU_DTYPE))
        w1f = _flatten_conv(blk["conv1_w"])                                  # (F, K*Cb)
        w2f = _flatten_conv_padded(blk["conv2_w"], K, left1 - left2)         # (F, K*Cb)
        # torch.cat((x_left1, x_left2, x_left3, x_right)); x_left3 reuses conv1.
        wleft = jnp.concatenate([sc[0:F, None] * w1f,
                                 sc[F:2 * F, None] * w2f,
                                 sc[2 * F:3 * F, None] * w1f], axis=0)       # (3F, K*Cb)
        wleft_list.append(wleft.astype(MXU_DTYPE))
        w4 = _pad_dim(blk["conv4_w"], 1, cin)[:, :, 0]
        w4_list.append((sc[3 * F:4 * F, None] * w4).astype(MXU_DTYPE))       # (F, Cin)
        shift_list.append(sh.reshape(nbf, 1))
    wleft_all = jnp.stack(wleft_list, axis=0)                                # (depth, 3F, K*Cb)

    # output layer: fold BN into the 1x1 conv weight/bias, pad channels to OUTP.
    osc, osh = _bn_scale_shift(params["out_bn_gamma"], params["out_bn_beta"],
                               params["out_bn_mean"], params["out_bn_var"])
    out_w = _pad_dim(params["out_conv_w"][:, :, 0] * osc[:, None], 0, OUTP).astype(MXU_DTYPE)
    out_b = _pad_dim((params["out_conv_b"] * osc + osh).reshape(-1, 1), 0, OUTP)
    # all per-channel shifts/biases packed into one small array
    aux = jnp.concatenate(shift_list + [out_b], axis=0).astype(jnp.float32)  # (depth*nbf+OUTP, 1)

    # block-diagonal final-linear weight: column s holds lin_w[0] on rows [s*T,(s+1)*T)
    lin_row = params["lin_w"][0, :].astype(jnp.float32)
    lin_big = jnp.zeros((N, Bt), jnp.float32)
    for s in range(Bt):
        lin_big = lin_big.at[s * T:(s + 1) * T, s].set(lin_row)
    lin_big = lin_big.astype(MXU_DTYPE)

    kernel = _make_kernel(depth=depth, K=K, F=F, Cb=Cb, Cin0p=cin0p, OUTP=OUTP,
                          T=T, Bt=Bt, stride=stride, left1=left1,
                          left_max=left_max, right_max=right_max, c_max=c_max)

    inputs = [h0] + win_list + w4_list + [wleft_all, out_w, lin_big, aux]
    in_specs = [pl.BlockSpec((None, Bt, cin0p, T), lambda b: (b, 0, 0, 0))]
    for arr in inputs[1:]:
        in_specs.append(pl.BlockSpec(arr.shape, lambda b, _n=arr.ndim: (0,) * _n))

    stack_rows = max(K * cin0p, (K * nbf) if depth > 1 else 0, K * Cb, 8)
    scratch_shapes = [
        pltpu.VMEM((c_max, Bt * stride), jnp.float32),   # zero-haloed staged activations
        pltpu.VMEM((stack_rows, N), MXU_DTYPE),          # im2col tap stack (bf16)
    ]

    # advisory cost estimate for XLA's scheduler
    flops = 0
    for d in range(depth):
        cin = cin0p if d == 0 else nbf
        flops += 2 * T * (Cb * K * cin + 3 * F * K * Cb + F * cin)
    flops += 2 * T * (OUTP * nbf + OUTP)
    bytes_accessed = sum(int(a.size * a.dtype.itemsize) for a in inputs) + B_pad * OUTP * 4
    cost = pl.CostEstimate(flops=int(flops * B_pad), transcendentals=0,
                           bytes_accessed=int(bytes_accessed))

    out = pl.pallas_call(
        kernel,
        out_shape=jax.ShapeDtypeStruct((n_steps, OUTP, Bt), jnp.float32),
        grid=(n_steps,),
        in_specs=in_specs,
        out_specs=pl.BlockSpec((None, OUTP, Bt), lambda b: (b, 0, 0)),
        scratch_shapes=scratch_shapes,
        compiler_params=pltpu.CompilerParams(dimension_semantics=("parallel",)),
        cost_estimate=cost,
    )(*inputs)

    out = jnp.transpose(out, (0, 2, 1)).reshape(B_pad, OUTP)[:B, :out_ch]
    return out + params["lin_b"][0]                        # scalar final-linear bias


# ------------------------------ parameter init --------------------------------

def init_params(key, *, nb_channels, timesamples, out_dim, kernel_size,
                nb_filters, depth, bottleneck_size, nb_outlayer_channels):
    nb_features = 4 * nb_filters
    ks = [kernel_size // (2 ** i) for i in range(3)]

    def nrm(k, shape, scale=0.05):
        return scale * jax.random.normal(k, shape, jnp.float32)

    params = {"blocks": []}
    for d in range(depth):
        cin = nb_channels if d == 0 else nb_features
        key, *sub = jax.random.split(key, 7)
        params["blocks"].append({
            "conv_in_w": nrm(sub[0], (bottleneck_size, cin, kernel_size)),
            "conv1_w": nrm(sub[1], (nb_filters, bottleneck_size, ks[0])),
            "conv2_w": nrm(sub[2], (nb_filters, bottleneck_size, ks[1])),
            # NOTE: conv3/pad3 exist in the PyTorch module but are never used in
            # its forward() (it calls pad1/conv1 again for x_left3).
            "conv4_w": nrm(sub[3], (nb_filters, cin, 1)),
            "bn_gamma": 1.0 + nrm(sub[4], (nb_features,)),
            "bn_beta": nrm(sub[5], (nb_features,)),
            "bn_mean": jnp.zeros((nb_features,), jnp.float32),
            "bn_var": jnp.ones((nb_features,), jnp.float32),
        })

    key, k1, k2, k3, k4, k5, k6 = jax.random.split(key, 7)
    out_ch = min(timesamples * nb_outlayer_channels, nb_outlayer_channels)
    params["out_conv_w"] = nrm(k1, (out_ch, nb_features, 1))
    params["out_conv_b"] = nrm(k2, (out_ch,))
    params["out_bn_gamma"] = 1.0 + nrm(k3, (out_ch,))
    params["out_bn_beta"] = nrm(k4, (out_ch,))
    params["out_bn_mean"] = jnp.zeros((out_ch,), jnp.float32)
    params["out_bn_var"] = jnp.ones((out_ch,), jnp.float32)
    params["lin_w"] = nrm(k5, (out_dim, timesamples))
    params["lin_b"] = nrm(k6, (out_dim,))
    return params


# ---------------------------------- demo --------------------------------------

if __name__ == "__main__":
    B = 4                    # 2 grid steps at batch_tile=2 (keeps both v7x TCs busy)
    nb_channels = 4
    T = 128                  # timesamples = input_shape[0]
    out_dim = 2              # output_shape[1]
    kernel_size = 8
    nb_filters = 8
    depth = 3
    bottleneck_size = 8
    nb_outlayer_channels = 5

    key = jax.random.PRNGKey(0)
    kx, kp = jax.random.split(key)
    x = jax.random.normal(kx, (B, nb_channels, 1, T), jnp.float32)
    params = init_params(
        kp, nb_channels=nb_channels, timesamples=T, out_dim=out_dim,
        kernel_size=kernel_size, nb_filters=nb_filters, depth=depth,
        bottleneck_size=bottleneck_size,
        nb_outlayer_channels=nb_outlayer_channels)

    fwd = jax.jit(functools.partial(inception_time_forward, batch_tile=2))
    out = jax.block_until_ready(fwd(x, params))
    assert out.shape == (B, nb_outlayer_channels), out.shape
    assert bool(jnp.all(jnp.isfinite(out)))
    print("KERNEL_OK")
</pallas_src>

<mosaic_0001>
module attributes {stable_mosaic.version = 11 : i64} {
  func.func @kernel(%arg0: i32, %arg1: memref<1x2x8x128xf32, #tpu.memory_space<vmem>>, %arg2: memref<8x64xbf16, #tpu.memory_space<vmem>>, %arg3: memref<8x256xbf16, #tpu.memory_space<vmem>>, %arg4: memref<8x256xbf16, #tpu.memory_space<vmem>>, %arg5: memref<8x8xbf16, #tpu.memory_space<vmem>>, %arg6: memref<8x32xbf16, #tpu.memory_space<vmem>>, %arg7: memref<8x32xbf16, #tpu.memory_space<vmem>>, %arg8: memref<3x24x64xbf16, #tpu.memory_space<vmem>>, %arg9: memref<8x32xbf16, #tpu.memory_space<vmem>>, %arg10: memref<256x2xbf16, #tpu.memory_space<vmem>>, %arg11: memref<104x1xf32, #tpu.memory_space<vmem>>, %arg12: memref<1x8x2xf32, #tpu.memory_space<vmem>>, %arg13: memref<32x768xf32, #tpu.memory_space<vmem>>, %arg14: memref<256x256xbf16, #tpu.memory_space<vmem>>) attributes {dimension_semantics = [#tpu.dimension_semantics<parallel>], iteration_bounds = array<i64: 2>, scalar_prefetch = 0 : i64, scratch_operands = 2 : i64, tpu.core_type = #tpu.core_type<tc>, window_params = [{transform_indices = @transform_0, window_bounds = array<i64: 1, 2, 8, 128>}, {pipeline_mode = #tpu.pipeline_mode<synchronous>, transform_indices = @transform_1, window_bounds = array<i64: 8, 64>}, {pipeline_mode = #tpu.pipeline_mode<synchronous>, transform_indices = @transform_2, window_bounds = array<i64: 8, 256>}, {pipeline_mode = #tpu.pipeline_mode<synchronous>, transform_indices = @transform_3, window_bounds = array<i64: 8, 256>}, {pipeline_mode = #tpu.pipeline_mode<synchronous>, transform_indices = @transform_4, window_bounds = array<i64: 8, 8>}, {pipeline_mode = #tpu.pipeline_mode<synchronous>, transform_indices = @transform_5, window_bounds = array<i64: 8, 32>}, {pipeline_mode = #tpu.pipeline_mode<synchronous>, transform_indices = @transform_6, window_bounds = array<i64: 8, 32>}, {pipeline_mode = #tpu.pipeline_mode<synchronous>, transform_indices = @transform_7, window_bounds = array<i64: 3, 24, 64>}, {pipeline_mode = #tpu.pipeline_mode<synchronous>, transform_indices = @transform_8, window_bounds = array<i64: 8, 32>}, {pipeline_mode = #tpu.pipeline_mode<synchronous>, transform_indices = @transform_9, window_bounds = array<i64: 256, 2>}, {pipeline_mode = #tpu.pipeline_mode<synchronous>, transform_indices = @transform_10, window_bounds = array<i64: 104, 1>}, {transform_indices = @transform_11, window_bounds = array<i64: 1, 8, 2>}]} {
    %cst = arith.constant 0.000000e+00 : f32
    %0 = vector.broadcast %cst : f32 to vector<32x3xf32>
    %cst_0 = arith.constant 0.000000e+00 : f32
    %1 = vector.broadcast %cst_0 : f32 to vector<32x4xf32>
    %c0 = arith.constant 0 : index
    %c125 = arith.constant 125 : index
    %2 = vector.load %arg13[%c0, %c125] : memref<32x768xf32, #tpu.memory_space<vmem>>, vector<32x3xf32>
    tpu.vector_store %arg13[%c0, %c125], %0 {strides = array<i32>} : memref<32x768xf32, #tpu.memory_space<vmem>>, vector<32x3xf32>,
    %c0_1 = arith.constant 0 : index
    %c256 = arith.constant 256 : index
    %3 = vector.load %arg13[%c0_1, %c256] : memref<32x768xf32, #tpu.memory_space<vmem>>, vector<32x4xf32>
    tpu.vector_store %arg13[%c0_1, %c256], %1 {strides = array<i32>} : memref<32x768xf32, #tpu.memory_space<vmem>>, vector<32x4xf32>,
    %c0_2 = arith.constant 0 : index
    %c509 = arith.constant 509 : index
    %4 = vector.load %arg13[%c0_2, %c509] : memref<32x768xf32, #tpu.memory_space<vmem>>, vector<32x3xf32>
    tpu.vector_store %arg13[%c0_2, %c509], %0 {strides = array<i32>} : memref<32x768xf32, #tpu.memory_space<vmem>>, vector<32x3xf32>,
    %c0_3 = arith.constant 0 : index
    %c640 = arith.constant 640 : index
    %5 = vector.load %arg13[%c0_3, %c640] : memref<32x768xf32, #tpu.memory_space<vmem>>, vector<32x4xf32>
    tpu.vector_store %arg13[%c0_3, %c640], %1 {strides = array<i32>} : memref<32x768xf32, #tpu.memory_space<vmem>>, vector<32x4xf32>,
    %c0_4 = arith.constant 0 : index
    %c0_5 = arith.constant 0 : index
    %c0_6 = arith.constant 0 : index
    %c0_7 = arith.constant 0 : index
    %6 = vector.load %arg1[%c0_4, %c0_5, %c0_6, %c0_7] : memref<1x2x8x128xf32, #tpu.memory_space<vmem>>, vector<1x1x8x128xf32>
    %7 = vector.shape_cast %6 : vector<1x1x8x128xf32> to vector<8x128xf32>
    %c0_8 = arith.constant 0 : index
    %c128 = arith.constant 128 : index
    %8 = vector.load %arg13[%c0_8, %c128] : memref<32x768xf32, #tpu.memory_space<vmem>>, vector<8x128xf32>
    tpu.vector_store %arg13[%c0_8, %c128], %7 {strides = array<i32>} : memref<32x768xf32, #tpu.memory_space<vmem>>, vector<8x128xf32>,
    %c0_9 = arith.constant 0 : index
    %c1 = arith.constant 1 : index
    %c0_10 = arith.constant 0 : index
    %c0_11 = arith.constant 0 : index
    %9 = vector.load %arg1[%c0_9, %c1, %c0_10, %c0_11] : memref<1x2x8x128xf32, #tpu.memory_space<vmem>>, vector<1x1x8x128xf32>
    %10 = vector.shape_cast %9 : vector<1x1x8x128xf32> to vector<8x128xf32>
    %c0_12 = arith.constant 0 : index
    %c512 = arith.constant 512 : index
    %11 = vector.load %arg13[%c0_12, %c512] : memref<32x768xf32, #tpu.memory_space<vmem>>, vector<8x128xf32>
    tpu.vector_store %arg13[%c0_12, %c512], %10 {strides = array<i32>} : memref<32x768xf32, #tpu.memory_space<vmem>>, vector<8x128xf32>,
    %c0_13 = arith.constant 0 : index
    %c125_14 = arith.constant 125 : index
    %12 = vector.load %arg13[%c0_13, %c125_14] : memref<32x768xf32, #tpu.memory_space<vmem>>, vector<8x128xf32>
    %13 = arith.truncf %12 : vector<8x128xf32> to vector<8x128xbf16>
    %c0_15 = arith.constant 0 : index
    %c0_16 = arith.constant 0 : index
    %14 = vector.load %arg14[%c0_15, %c0_16] : memref<256x256xbf16, #tpu.memory_space<vmem>>, vector<8x128xbf16>
    tpu.vector_store %arg14[%c0_15, %c0_16], %13 {strides = array<i32>} : memref<256x256xbf16, #tpu.memory_space<vmem>>, vector<8x128xbf16>,
    %c0_17 = arith.constant 0 : index
    %c509_18 = arith.constant 509 : index
    %15 = vector.load %arg13[%c0_17, %c509_18] : memref<32x768xf32, #tpu.memory_space<vmem>>, vector<8x128xf32>
    %16 = arith.truncf %15 : vector<8x128xf32> to vector<8x128xbf16>
    %c0_19 = arith.constant 0 : index
    %c128_20 = arith.constant 128 : index
    %17 = vector.load %arg14[%c0_19, %c128_20] : memref<256x256xbf16, #tpu.memory_space<vmem>>, vector<8x128xbf16>
    tpu.vector_store %arg14[%c0_19, %c128_20], %16 {strides = array<i32>} : memref<256x256xbf16, #tpu.memory_space<vmem>>, vector<8x128xbf16>,
    %c0_21 = arith.constant 0 : index
    %c126 = arith.constant 126 : index
    %18 = vector.load %arg13[%c0_21, %c126] : memref<32x768xf32, #tpu.memory_space<vmem>>, vector<8x128xf32>
    %19 = arith.truncf %18 : vector<8x128xf32> to vector<8x128xbf16>
    %c8 = arith.constant 8 : index
    %c0_22 = arith.constant 0 : index
    %20 = vector.load %arg14[%c8, %c0_22] : memref<256x256xbf16, #tpu.memory_space<vmem>>, vector<8x128xbf16>
    tpu.vector_store %arg14[%c8, %c0_22], %19 {strides = array<i32>} : memref<256x256xbf16, #tpu.memory_space<vmem>>, vector<8x128xbf16>,
    %c0_23 = arith.constant 0 : index
    %c510 = arith.constant 510 : index
    %21 = vector.load %arg13[%c0_23, %c510] : memref<32x768xf32, #tpu.memory_space<vmem>>, vector<8x128xf32>
    %22 = arith.truncf %21 : vector<8x128xf32> to vector<8x128xbf16>
    %c8_24 = arith.constant 8 : index
    %c128_25 = arith.constant 128 : index
    %23 = vector.load %arg14[%c8_24, %c128_25] : memref<256x256xbf16, #tpu.memory_space<vmem>>, vector<8x128xbf16>
    tpu.vector_store %arg14[%c8_24, %c128_25], %22 {strides = array<i32>} : memref<256x256xbf16, #tpu.memory_space<vmem>>, vector<8x128xbf16>,
    %c0_26 = arith.constant 0 : index
    %c127 = arith.constant 127 : index
    %24 = vector.load %arg13[%c0_26, %c127] : memref<32x768xf32, #tpu.memory_space<vmem>>, vector<8x128xf32>
    %25 = arith.truncf %24 : vector<8x128xf32> to vector<8x128xbf16>
    %c16 = arith.constant 16 : index
    %c0_27 = arith.constant 0 : index
    %26 = vector.load %arg14[%c16, %c0_27] : memref<256x256xbf16, #tpu.memory_space<vmem>>, vector<8x128xbf16>
    tpu.vector_store %arg14[%c16, %c0_27], %25 {strides = array<i32>} : memref<256x256xbf16, #tpu.memory_space<vmem>>, vector<8x128xbf16>,
    %c0_28 = arith.constant 0 : index
    %c511 = arith.constant 511 : index
    %27 = vector.load %arg13[%c0_28, %c511] : memref<32x768xf32, #tpu.memory_space<vmem>>, vector<8x128xf32>
    %28 = arith.truncf %27 : vector<8x128xf32> to vector<8x128xbf16>
    %c16_29 = arith.constant 16 : index
    %c128_30 = arith.constant 128 : index
    %29 = vector.load %arg14[%c16_29, %c128_30] : memref<256x256xbf16, #tpu.memory_space<vmem>>, vector<8x128xbf16>
    tpu.vector_store %arg14[%c16_29, %c128_30], %28 {strides = array<i32>} : memref<256x256xbf16, #tpu.memory_space<vmem>>, vector<8x128xbf16>,
    %c0_31 = arith.constant 0 : index
    %c128_32 = arith.constant 128 : index
    %30 = vector.load %arg13[%c0_31, %c128_32] : memref<32x768xf32, #tpu.memory_space<vmem>>, vector<8x128xf32>
    %31 = arith.truncf %30 : vector<8x128xf32> to vector<8x128xbf16>
    %c24 = arith.constant 24 : index
    %c0_33 = arith.constant 0 : index
    %32 = vector.load %arg14[%c24, %c0_33] : memref<256x256xbf16, #tpu.memory_space<vmem>>, vector<8x128xbf16>
    tpu.vector_store %arg14[%c24, %c0_33], %31 {strides = array<i32>} : memref<256x256xbf16, #tpu.memory_space<vmem>>, vector<8x128xbf16>,
    %c0_34 = arith.constant 0 : index
    %c512_35 = arith.constant 512 : index
    %33 = vector.load %arg13[%c0_34, %c512_35] : memref<32x768xf32, #tpu.memory_space<vmem>>, vector<8x128xf32>
    %34 = arith.truncf %33 : vector<8x128xf32> to vector<8x128xbf16>
    %c24_36 = arith.constant 24 : index
    %c128_37 = arith.constant 128 : index
    %35 = vector.load %arg14[%c24_36, %c128_37] : memref<256x256xbf16, #tpu.memory_space<vmem>>, vector<8x128xbf16>
    tpu.vector_store %arg14[%c24_36, %c128_37], %34 {strides = array<i32>} : memref<256x256xbf16, #tpu.memory_space<vmem>>, vector<8x128xbf16>,
    %c0_38 = arith.constant 0 : index
    %c129 = arith.constant 129 : index
    %36 = vector.load %arg13[%c0_38, %c129] : memref<32x768xf32, #tpu.memory_space<vmem>>, vector<8x128xf32>
    %37 = arith.truncf %36 : vector<8x128xf32> to vector<8x128xbf16>
    %c32 = arith.constant 32 : index
    %c0_39 = arith.constant 0 : index
    %38 = vector.load %arg14[%c32, %c0_39] : memref<256x256xbf16, #tpu.memory_space<vmem>>, vector<8x128xbf16>
    tpu.vector_store %arg14[%c32, %c0_39], %37 {strides = array<i32>} : memref<256x256xbf16, #tpu.memory_space<vmem>>, vector<8x128xbf16>,
    %c0_40 = arith.constant 0 : index
    %c513 = arith.constant 513 : index
    %39 = vector.load %arg13[%c0_40, %c513] : memref<32x768xf32, #tpu.memory_space<vmem>>, vector<8x128xf32>
    %40 = arith.truncf %39 : vector<8x128xf32> to vector<8x128xbf16>
    %c32_41 = arith.constant 32 : index
    %c128_42 = arith.constant 128 : index
    %41 = vector.load %arg14[%c32_41, %c128_42] : memref<256x256xbf16, #tpu.memory_space<vmem>>, vector<8x128xbf16>
    tpu.vector_store %arg14[%c32_41, %c128_42], %40 {strides = array<i32>} : memref<256x256xbf16, #tpu.memory_space<vmem>>, vector<8x128xbf16>,
    %c0_43 = arith.constant 0 : index
    %c130 = arith.constant 130 : index
    %42 = vector.load %arg13[%c0_43, %c130] : memref<32x768xf32, #tpu.memory_space<vmem>>, vector<8x128xf32>
    %43 = arith.truncf %42 : vector<8x128xf32> to vector<8x128xbf16>
    %c40 = arith.constant 40 : index
    %c0_44 = arith.constant 0 : index
    %44 = vector.load %arg14[%c40, %c0_44] : memref<256x256xbf16, #tpu.memory_space<vmem>>, vector<8x128xbf16>
    tpu.vector_store %arg14[%c40, %c0_44], %43 {strides = array<i32>} : memref<256x256xbf16, #tpu.memory_space<vmem>>, vector<8x128xbf16>,
    %c0_45 = arith.constant 0 : index
    %c514 = arith.constant 514 : index
    %45 = vector.load %arg13[%c0_45, %c514] : memref<32x768xf32, #tpu.memory_space<vmem>>, vector<8x128xf32>
    %46 = arith.truncf %45 : vector<8x128xf32> to vector<8x128xbf16>
    %c40_46 = arith.constant 40 : index
    %c128_47 = arith.constant 128 : index
    %47 = vector.load %arg14[%c40_46, %c128_47] : memref<256x256xbf16, #tpu.memory_space<vmem>>, vector<8x128xbf16>
    tpu.vector_store %arg14[%c40_46, %c128_47], %46 {strides = array<i32>} : memref<256x256xbf16, #tpu.memory_space<vmem>>, vector<8x128xbf16>,
    %c0_48 = arith.constant 0 : index
    %c131 = arith.constant 131 : index
    %48 = vector.load %arg13[%c0_48, %c131] : memref<32x768xf32, #tpu.memory_space<vmem>>, vector<8x128xf32>
    %49 = arith.truncf %48 : vector<8x128xf32> to vector<8x128xbf16>
    %c48 = arith.constant 48 : index
    %c0_49 = arith.constant 0 : index
    %50 = vector.load %arg14[%c48, %c0_49] : memref<256x256xbf16, #tpu.memory_space<vmem>>, vector<8x128xbf16>
    tpu.vector_store %arg14[%c48, %c0_49], %49 {strides = array<i32>} : memref<256x256xbf16, #tpu.memory_space<vmem>>, vector<8x128xbf16>,
    %c0_50 = arith.constant 0 : index
    %c515 = arith.constant 515 : index
    %51 = vector.load %arg13[%c0_50, %c515] : memref<32x768xf32, #tpu.memory_space<vmem>>, vector<8x128xf32>
    %52 = arith.truncf %51 : vector<8x128xf32> to vector<8x128xbf16>
    %c48_51 = arith.constant 48 : index
    %c128_52 = arith.constant 128 : index
    %53 = vector.load %arg14[%c48_51, %c128_52] : memref<256x256xbf16, #tpu.memory_space<vmem>>, vector<8x128xbf16>
    tpu.vector_store %arg14[%c48_51, %c128_52], %52 {strides = array<i32>} : memref<256x256xbf16, #tpu.memory_space<vmem>>, vector<8x128xbf16>,
    %c0_53 = arith.constant 0 : index
    %c132 = arith.constant 132 : index
    %54 = vector.load %arg13[%c0_53, %c132] : memref<32x768xf32, #tpu.memory_space<vmem>>, vector<8x128xf32>
    %55 = arith.truncf %54 : vector<8x128xf32> to vector<8x128xbf16>
    %c56 = arith.constant 56 : index
    %c0_54 = arith.constant 0 : index
    %56 = vector.load %arg14[%c56, %c0_54] : memref<256x256xbf16, #tpu.memory_space<vmem>>, vector<8x128xbf16>
    tpu.vector_store %arg14[%c56, %c0_54], %55 {strides = array<i32>} : memref<256x256xbf16, #tpu.memory_space<vmem>>, vector<8x128xbf16>,
    %c0_55 = arith.constant 0 : index
    %c516 = arith.constant 516 : index
    %57 = vector.load %arg13[%c0_55, %c516] : memref<32x768xf32, #tpu.memory_space<vmem>>, vector<8x128xf32>
    %58 = arith.truncf %57 : vector<8x128xf32> to vector<8x128xbf16>
    %c56_56 = arith.constant 56 : index
    %c128_57 = arith.constant 128 : index
    %59 = vector.load %arg14[%c56_56, %c128_57] : memref<256x256xbf16, #tpu.memory_space<vmem>>, vector<8x128xbf16>
    tpu.vector_store %arg14[%c56_56, %c128_57], %58 {strides = array<i32>} : memref<256x256xbf16, #tpu.memory_space<vmem>>, vector<8x128xbf16>,
    %c0_58 = arith.constant 0 : index
    %c0_59 = arith.constant 0 : index
    %60 = vector.load %arg14[%c0_58, %c0_59] : memref<256x256xbf16, #tpu.memory_space<vmem>>, vector<64x256xbf16>
    %c0_60 = arith.constant 0 : index
    %c0_61 = arith.constant 0 : index
    %61 = vector.load %arg2[%c0_60, %c0_61] : memref<8x64xbf16, #tpu.memory_space<vmem>>, vector<8x64xbf16>
    %cst_62 = arith.constant dense<0.000000e+00> : vector<8x256xf32>
    %62 = tpu.matmul %61, %60, %cst_62 {dimension_numbers = #tpu.dot_dimension_numbers<[1], [0], [0], [1], [0, 0, 1, 1], [], []>} : vector<8x64xbf16>, vector<64x256xbf16>, vector<8x256xf32> -> vector<8x256xf32>
    %c0_63 = arith.constant 0 : index
    %c127_64 = arith.constant 127 : index
    %63 = vector.load %arg13[%c0_63, %c127_64] : memref<32x768xf32, #tpu.memory_space<vmem>>, vector<8x128xf32>
    %c0_65 = arith.constant 0 : index
    %c511_66 = arith.constant 511 : index
    %64 = vector.load %arg13[%c0_65, %c511_66] : memref<32x768xf32, #tpu.memory_space<vmem>>, vector<8x128xf32>
    %65 = tpu.concatenate %63, %64 in 1 : vector<8x128xf32>, vector<8x128xf32> -> vector<8x256xf32>
    %c0_67 = arith.constant 0 : index
    %c128_68 = arith.constant 128 : index
    %66 = vector.load %arg13[%c0_67, %c128_68] : memref<32x768xf32, #tpu.memory_space<vmem>>, vector<8x128xf32>
    %c0_69 = arith.constant 0 : index
    %c512_70 = arith.constant 512 : index
    %67 = vector.load %arg13[%c0_69, %c512_70] : memref<32x768xf32, #tpu.memory_space<vmem>>, vector<8x128xf32>
    %68 = tpu.concatenate %66, %67 in 1 : vector<8x128xf32>, vector<8x128xf32> -> vector<8x256xf32>
    %69 = arith.maximumf %65, %68 : vector<8x256xf32>
    %c0_71 = arith.constant 0 : index
    %c129_72 = arith.constant 129 : index
    %70 = vector.load %arg13[%c0_71, %c129_72] : memref<32x768xf32, #tpu.memory_space<vmem>>, vector<8x128xf32>
    %c0_73 = arith.constant 0 : index
    %c513_74 = arith.constant 513 : index
    %71 = vector.load %arg13[%c0_73, %c513_74] : memref<32x768xf32, #tpu.memory_space<vmem>>, vector<8x128xf32>
    %72 = tpu.concatenate %70, %71 in 1 : vector<8x128xf32>, vector<8x128xf32> -> vector<8x256xf32>
    %73 = arith.maximumf %69, %72 : vector<8x256xf32>
    %c0_75 = arith.constant 0 : index
    %c0_76 = arith.constant 0 : index
    %74 = vector.load %arg5[%c0_75, %c0_76] : memref<8x8xbf16, #tpu.memory_space<vmem>>, vector<8x8xbf16>
    %75 = arith.truncf %73 : vector<8x256xf32> to vector<8x256xbf16>
    %cst_77 = arith.constant dense<0.000000e+00> : vector<8x256xf32>
    %76 = tpu.matmul %74, %75, %cst_77 {dimension_numbers = #tpu.dot_dimension_numbers<[1], [0], [0], [1], [0, 0, 1, 1], [], []>} : vector<8x8xbf16>, vector<8x256xbf16>, vector<8x256xf32> -> vector<8x256xf32>
    %77 = vector.extract_strided_slice %62 {offsets = [0, 0], sizes = [8, 128], strides = [1, 1]} : vector<8x256xf32> to vector<8x128xf32>
    %c0_78 = arith.constant 0 : index
    %c128_79 = arith.constant 128 : index
    %78 = vector.load %arg13[%c0_78, %c128_79] : memref<32x768xf32, #tpu.memory_space<vmem>>, vector<8x128xf32>
    tpu.vector_store %arg13[%c0_78, %c128_79], %77 {strides = array<i32>} : memref<32x768xf32, #tpu.memory_space<vmem>>, vector<8x128xf32>,
    %79 = vector.extract_strided_slice %62 {offsets = [0, 128], sizes = [8, 128], strides = [1, 1]} : vector<8x256xf32> to vector<8x128xf32>
    %c0_80 = arith.constant 0 : index
    %c512_81 = arith.constant 512 : index
    %80 = vector.load %arg13[%c0_80, %c512_81] : memref<32x768xf32, #tpu.memory_space<vmem>>, vector<8x128xf32>
    tpu.vector_store %arg13[%c0_80, %c512_81], %79 {strides = array<i32>} : memref<32x768xf32, #tpu.memory_space<vmem>>, vector<8x128xf32>,
    %c0_82 = arith.constant 0 : index
    %c125_83 = arith.constant 125 : index
    %81 = vector.load %arg13[%c0_82, %c125_83] : memref<32x768xf32, #tpu.memory_space<vmem>>, vector<8x128xf32>
    %82 = arith.truncf %81 : vector<8x128xf32> to vector<8x128xbf16>
    %c0_84 = arith.constant 0 : index
    %c0_85 = arith.constant 0 : index
    %83 = vector.load %arg14[%c0_84, %c0_85] : memref<256x256xbf16, #tpu.memory_space<vmem>>, vector<8x128xbf16>
    tpu.vector_store %arg14[%c0_84, %c0_85], %82 {strides = array<i32>} : memref<256x256xbf16, #tpu.memory_space<vmem>>, vector<8x128xbf16>,
    %c0_86 = arith.constant 0 : index
    %c509_87 = arith.constant 509 : index
    %84 = vector.load %arg13[%c0_86, %c509_87] : memref<32x768xf32, #tpu.memory_space<vmem>>, vector<8x128xf32>
    %85 = arith.truncf %84 : vector<8x128xf32> to vector<8x128xbf16>
    %c0_88 = arith.constant 0 : index
    %c128_89 = arith.constant 128 : index
    %86 = vector.load %arg14[%c0_88, %c128_89] : memref<256x256xbf16, #tpu.memory_space<vmem>>, vector<8x128xbf16>
    tpu.vector_store %arg14[%c0_88, %c128_89], %85 {strides = array<i32>} : memref<256x256xbf16, #tpu.memory_space<vmem>>, vector<8x128xbf16>,
    %c0_90 = arith.constant 0 : index
    %c126_91 = arith.constant 126 : index
    %87 = vector.load %arg13[%c0_90, %c126_91] : memref<32x768xf32, #tpu.memory_space<vmem>>, vector<8x128xf32>
    %88 = arith.truncf %87 : vector<8x128xf32> to vector<8x128xbf16>
    %c8_92 = arith.constant 8 : index
    %c0_93 = arith.constant 0 : index
    %89 = vector.load %arg14[%c8_92, %c0_93] : memref<256x256xbf16, #tpu.memory_space<vmem>>, vector<8x128xbf16>
    tpu.vector_store %arg14[%c8_92, %c0_93], %88 {strides = array<i32>} : memref<256x256xbf16, #tpu.memory_space<vmem>>, vector<8x128xbf16>,
    %c0_94 = arith.constant 0 : index
    %c510_95 = arith.constant 510 : index
    %90 = vector.load %arg13[%c0_94, %c510_95] : memref<32x768xf32, #tpu.memory_space<vmem>>, vector<8x128xf32>
    %91 = arith.truncf %90 : vector<8x128xf32> to vector<8x128xbf16>
    %c8_96 = arith.constant 8 : index
    %c128_97 = arith.constant 128 : index
    %92 = vector.load %arg14[%c8_96, %c128_97] : memref<256x256xbf16, #tpu.memory_space<vmem>>, vector<8x128xbf16>
    tpu.vector_store %arg14[%c8_96, %c128_97], %91 {strides = array<i32>} : memref<256x256xbf16, #tpu.memory_space<vmem>>, vector<8x128xbf16>,
    %c0_98 = arith.constant 0 : index
    %c127_99 = arith.constant 127 : index
    %93 = vector.load %arg13[%c0_98, %c127_99] : memref<32x768xf32, #tpu.memory_space<vmem>>, vector<8x128xf32>
    %94 = arith.truncf %93 : vector<8x128xf32> to vector<8x128xbf16>
    %c16_100 = arith.constant 16 : index
    %c0_101 = arith.constant 0 : index
    %95 = vector.load %arg14[%c16_100, %c0_101] : memref<256x256xbf16, #tpu.memory_space<vmem>>, vector<8x128xbf16>
    tpu.vector_store %arg14[%c16_100, %c0_101], %94 {strides = array<i32>} : memref<256x256xbf16, #tpu.memory_space<vmem>>, vector<8x128xbf16>,
    %c0_102 = arith.constant 0 : index
    %c511_103 = arith.constant 511 : index
    %96 = vector.load %arg13[%c0_102, %c511_103] : memref<32x768xf32, #tpu.memory_space<vmem>>, vector<8x128xf32>
    %97 = arith.truncf %96 : vector<8x128xf32> to vector<8x128xbf16>
    %c16_104 = arith.constant 16 : index
    %c128_105 = arith.constant 128 : index
    %98 = vector.load %arg14[%c16_104, %c128_105] : memref<256x256xbf16, #tpu.memory_space<vmem>>, vector<8x128xbf16>
    tpu.vector_store %arg14[%c16_104, %c128_105], %97 {strides = array<i32>} : memref<256x256xbf16, #tpu.memory_space<vmem>>, vector<8x128xbf16>,
    %c0_106 = arith.constant 0 : index
    %c128_107 = arith.constant 128 : index
    %99 = vector.load %arg13[%c0_106, %c128_107] : memref<32x768xf32, #tpu.memory_space<vmem>>, vector<8x128xf32>
    %100 = arith.truncf %99 : vector<8x128xf32> to vector<8x128xbf16>
    %c24_108 = arith.constant 24 : index
    %c0_109 = arith.constant 0 : index
    %101 = vector.load %arg14[%c24_108, %c0_109] : memref<256x256xbf16, #tpu.memory_space<vmem>>, vector<8x128xbf16>
    tpu.vector_store %arg14[%c24_108, %c0_109], %100 {strides = array<i32>} : memref<256x256xbf16, #tpu.memory_space<vmem>>, vector<8x128xbf16>,
    %c0_110 = arith.constant 0 : index
    %c512_111 = arith.constant 512 : index
    %102 = vector.load %arg13[%c0_110, %c512_111] : memref<32x768xf32, #tpu.memory_space<vmem>>, vector<8x128xf32>
    %103 = arith.truncf %102 : vector<8x128xf32> to vector<8x128xbf16>
    %c24_112 = arith.constant 24 : index
    %c128_113 = arith.constant 128 : index
    %104 = vector.load %arg14[%c24_112, %c128_113] : memref<256x256xbf16, #tpu.memory_space<vmem>>, vector<8x128xbf16>
    tpu.vector_store %arg14[%c24_112, %c128_113], %103 {strides = array<i32>} : memref<256x256xbf16, #tpu.memory_space<vmem>>, vector<8x128xbf16>,
    %c0_114 = arith.constant 0 : index
    %c129_115 = arith.constant 129 : index
    %105 = vector.load %arg13[%c0_114, %c129_115] : memref<32x768xf32, #tpu.memory_space<vmem>>, vector<8x128xf32>
    %106 = arith.truncf %105 : vector<8x128xf32> to vector<8x128xbf16>
    %c32_116 = arith.constant 32 : index
    %c0_117 = arith.constant 0 : index
    %107 = vector.load %arg14[%c32_116, %c0_117] : memref<256x256xbf16, #tpu.memory_space<vmem>>, vector<8x128xbf16>
    tpu.vector_store %arg14[%c32_116, %c0_117], %106 {strides = array<i32>} : memref<256x256xbf16, #tpu.memory_space<vmem>>, vector<8x128xbf16>,
    %c0_118 = arith.constant 0 : index
    %c513_119 = arith.constant 513 : index
    %108 = vector.load %arg13[%c0_118, %c513_119] : memref<32x768xf32, #tpu.memory_space<vmem>>, vector<8x128xf32>
    %109 = arith.truncf %108 : vector<8x128xf32> to vector<8x128xbf16>
    %c32_120 = arith.constant 32 : index
    %c128_121 = arith.constant 128 : index
    %110 = vector.load %arg14[%c32_120, %c128_121] : memref<256x256xbf16, #tpu.memory_space<vmem>>, vector<8x128xbf16>
    tpu.vector_store %arg14[%c32_120, %c128_121], %109 {strides = array<i32>} : memref<256x256xbf16, #tpu.memory_space<vmem>>, vector<8x128xbf16>,
    %c0_122 = arith.constant 0 : index
    %c130_123 = arith.constant 130 : index
    %111 = vector.load %arg13[%c0_122, %c130_123] : memref<32x768xf32, #tpu.memory_space<vmem>>, vector<8x128xf32>
    %112 = arith.truncf %111 : vector<8x128xf32> to vector<8x128xbf16>
    %c40_124 = arith.constant 40 : index
    %c0_125 = arith.constant 0 : index
    %113 = vector.load %arg14[%c40_124, %c0_125] : memref<256x256xbf16, #tpu.memory_space<vmem>>, vector<8x128xbf16>
    tpu.vector_store %arg14[%c40_124, %c0_125], %112 {strides = array<i32>} : memref<256x256xbf16, #tpu.memory_space<vmem>>, vector<8x128xbf16>,
    %c0_126 = arith.constant 0 : index
    %c514_127 = arith.constant 514 : index
    %114 = vector.load %arg13[%c0_126, %c514_127] : memref<32x768xf32, #tpu.memory_space<vmem>>, vector<8x128xf32>
    %115 = arith.truncf %114 : vector<8x128xf32> to vector<8x128xbf16>
    %c40_128 = arith.constant 40 : index
    %c128_129 = arith.constant 128 : index
    %116 = vector.load %arg14[%c40_128, %c128_129] : memref<256x256xbf16, #tpu.memory_space<vmem>>, vector<8x128xbf16>
    tpu.vector_store %arg14[%c40_128, %c128_129], %115 {strides = array<i32>} : memref<256x256xbf16, #tpu.memory_space<vmem>>, vector<8x128xbf16>,
    %c0_130 = arith.constant 0 : index
    %c131_131 = arith.constant 131 : index
    %117 = vector.load %arg13[%c0_130, %c131_131] : memref<32x768xf32, #tpu.memory_space<vmem>>, vector<8x128xf32>
    %118 = arith.truncf %117 : vector<8x128xf32> to vector<8x128xbf16>
    %c48_132 = arith.constant 48 : index
    %c0_133 = arith.constant 0 : index
    %119 = vector.load %arg14[%c48_132, %c0_133] : memref<256x256xbf16, #tpu.memory_space<vmem>>, vector<8x128xbf16>
    tpu.vector_store %arg14[%c48_132, %c0_133], %118 {strides = array<i32>} : memref<256x256xbf16, #tpu.memory_space<vmem>>, vector<8x128xbf16>,
    %c0_134 = arith.constant 0 : index
    %c515_135 = arith.constant 515 : index
    %120 = vector.load %arg13[%c0_134, %c515_135] : memref<32x768xf32, #tpu.memory_space<vmem>>, vector<8x128xf32>
    %121 = arith.truncf %120 : vector<8x128xf32> to vector<8x128xbf16>
    %c48_136 = arith.constant 48 : index
    %c128_137 = arith.constant 128 : index
    %122 = vector.load %arg14[%c48_136, %c128_137] : memref<256x256xbf16, #tpu.memory_space<vmem>>, vector<8x128xbf16>
    tpu.vector_store %arg14[%c48_136, %c128_137], %121 {strides = array<i32>} : memref<256x256xbf16, #tpu.memory_space<vmem>>, vector<8x128xbf16>,
    %c0_138 = arith.constant 0 : index
    %c132_139 = arith.constant 132 : index
    %123 = vector.load %arg13[%c0_138, %c132_139] : memref<32x768xf32, #tpu.memory_space<vmem>>, vector<8x128xf32>
    %124 = arith.truncf %123 : vector<8x128xf32> to vector<8x128xbf16>
    %c56_140 = arith.constant 56 : index
    %c0_141 = arith.constant 0 : index
    %125 = vector.load %arg14[%c56_140, %c0_141] : memref<256x256xbf16, #tpu.memory_space<vmem>>, vector<8x128xbf16>
    tpu.vector_store %arg14[%c56_140, %c0_141], %124 {strides = array<i32>} : memref<256x256xbf16, #tpu.memory_space<vmem>>, vector<8x128xbf16>,
    %c0_142 = arith.constant 0 : index
    %c516_143 = arith.constant 516 : index
    %126 = vector.load %arg13[%c0_142, %c516_143] : memref<32x768xf32, #tpu.memory_space<vmem>>, vector<8x128xf32>
    %127 = arith.truncf %126 : vector<8x128xf32> to vector<8x128xbf16>
    %c56_144 = arith.constant 56 : index
    %c128_145 = arith.constant 128 : index
    %128 = vector.load %arg14[%c56_144, %c128_145] : memref<256x256xbf16, #tpu.memory_space<vmem>>, vector<8x128xbf16>
    tpu.vector_store %arg14[%c56_144, %c128_145], %127 {strides = array<i32>} : memref<256x256xbf16, #tpu.memory_space<vmem>>, vector<8x128xbf16>,
    %c0_146 = arith.constant 0 : index
    %c0_147 = arith.constant 0 : index
    %129 = vector.load %arg14[%c0_146, %c0_147] : memref<256x256xbf16, #tpu.memory_space<vmem>>, vector<64x256xbf16>
    %c0_148 = arith.constant 0 : index
    %c0_149 = arith.constant 0 : index
    %c0_150 = arith.constant 0 : index
    %130 = vector.load %arg8[%c0_148, %c0_149, %c0_150] : memref<3x24x64xbf16, #tpu.memory_space<vmem>>, vector<1x24x64xbf16>
    %131 = vector.shape_cast %130 : vector<1x24x64xbf16> to vector<24x64xbf16>
    %cst_151 = arith.constant dense<0.000000e+00> : vector<24x256xf32>
    %132 = tpu.matmul %131, %129, %cst_151 {dimension_numbers = #tpu.dot_dimension_numbers<[1], [0], [0], [1], [0, 0, 1, 1], [], []>} : vector<24x64xbf16>, vector<64x256xbf16>, vector<24x256xf32> -> vector<24x256xf32>
    %c0_152 = arith.constant 0 : index
    %c0_153 = arith.constant 0 : index
    %133 = vector.load %arg11[%c0_152, %c0_153] : memref<104x1xf32, #tpu.memory_space<vmem>>, vector<24x1xf32>
    %c24_154 = arith.constant 24 : index
    %c0_155 = arith.constant 0 : index
    %134 = vector.load %arg11[%c24_154, %c0_155] : memref<104x1xf32, #tpu.memory_space<vmem>>, vector<8x1xf32>
    %135 = vector.broadcast %133 : vector<24x1xf32> to vector<24x256xf32>
    %136 = arith.addf %132, %135 : vector<24x256xf32>
    %cst_156 = arith.constant 0.000000e+00 : f32
    %137 = vector.broadcast %cst_156 : f32 to vector<24x256xf32>
    %138 = arith.maximumf %136, %137 : vector<24x256xf32>
    %139 = vector.extract_strided_slice %138 {offsets = [0, 0], sizes = [24, 128], strides = [1, 1]} : vector<24x256xf32> to vector<24x128xf32>
    %c0_157 = arith.constant 0 : index
    %c128_158 = arith.constant 128 : index
    %140 = vector.load %arg13[%c0_157, %c128_158] : memref<32x768xf32, #tpu.memory_space<vmem>>, vector<24x128xf32>
    tpu.vector_store %arg13[%c0_157, %c128_158], %139 {strides = array<i32>} : memref<32x768xf32, #tpu.memory_space<vmem>>, vector<24x128xf32>,
    %141 = vector.extract_strided_slice %138 {offsets = [0, 128], sizes = [24, 128], strides = [1, 1]} : vector<24x256xf32> to vector<24x128xf32>
    %c0_159 = arith.constant 0 : index
    %c512_160 = arith.constant 512 : index
    %142 = vector.load %arg13[%c0_159, %c512_160] : memref<32x768xf32, #tpu.memory_space<vmem>>, vector<24x128xf32>
    tpu.vector_store %arg13[%c0_159, %c512_160], %141 {strides = array<i32>} : memref<32x768xf32, #tpu.memory_space<vmem>>, vector<24x128xf32>,
    %143 = vector.broadcast %134 : vector<8x1xf32> to vector<8x256xf32>
    %144 = arith.addf %76, %143 : vector<8x256xf32>
    %cst_161 = arith.constant 0.000000e+00 : f32
    %145 = vector.broadcast %cst_161 : f32 to vector<8x256xf32>
    %146 = arith.maximumf %144, %145 : vector<8x256xf32>
    %147 = vector.extract_strided_slice %146 {offsets = [0, 0], sizes = [8, 128], strides = [1, 1]} : vector<8x256xf32> to vector<8x128xf32>
    %c24_162 = arith.constant 24 : index
    %c128_163 = arith.constant 128 : index
    %148 = vector.load %arg13[%c24_162, %c128_163] : memref<32x768xf32, #tpu.memory_space<vmem>>, vector<8x128xf32>
    tpu.vector_store %arg13[%c24_162, %c128_163], %147 {strides = array<i32>} : memref<32x768xf32, #tpu.memory_space<vmem>>, vector<8x128xf32>,
    %149 = vector.extract_strided_slice %146 {offsets = [0, 128], sizes = [8, 128], strides = [1, 1]} : vector<8x256xf32> to vector<8x128xf32>
    %c24_164 = arith.constant 24 : index
    %c512_165 = arith.constant 512 : index
    %150 = vector.load %arg13[%c24_164, %c512_165] : memref<32x768xf32, #tpu.memory_space<vmem>>, vector<8x128xf32>
    tpu.vector_store %arg13[%c24_164, %c512_165], %149 {strides = array<i32>} : memref<32x768xf32, #tpu.memory_space<vmem>>, vector<8x128xf32>,
    %c0_166 = arith.constant 0 : index
    %c125_167 = arith.constant 125 : index
    %151 = vector.load %arg13[%c0_166, %c125_167] : memref<32x768xf32, #tpu.memory_space<vmem>>, vector<32x128xf32>
    %152 = arith.truncf %151 : vector<32x128xf32> to vector<32x128xbf16>
    %c0_168 = arith.constant 0 : index
    %c0_169 = arith.constant 0 : index
    %153 = vector.load %arg14[%c0_168, %c0_169] : memref<256x256xbf16, #tpu.memory_space<vmem>>, vector<32x128xbf16>
    tpu.vector_store %arg14[%c0_168, %c0_169], %152 {strides = array<i32>} : memref<256x256xbf16, #tpu.memory_space<vmem>>, vector<32x128xbf16>,
    %c0_170 = arith.constant 0 : index
    %c509_171 = arith.constant 509 : index
    %154 = vector.load %arg13[%c0_170, %c509_171] : memref<32x768xf32, #tpu.memory_space<vmem>>, vector<32x128xf32>
    %155 = arith.truncf %154 : vector<32x128xf32> to vector<32x128xbf16>
    %c0_172 = arith.constant 0 : index
    %c128_173 = arith.constant 128 : index
    %156 = vector.load %arg14[%c0_172, %c128_173] : memref<256x256xbf16, #tpu.memory_space<vmem>>, vector<32x128xbf16>
    tpu.vector_store %arg14[%c0_172, %c128_173], %155 {strides = array<i32>} : memref<256x256xbf16, #tpu.memory_space<vmem>>, vector<32x128xbf16>,
    %c0_174 = arith.constant 0 : index
    %c126_175 = arith.constant 126 : index
    %157 = vector.load %arg13[%c0_174, %c126_175] : memref<32x768xf32, #tpu.memory_space<vmem>>, vector<32x128xf32>
    %158 = arith.truncf %157 : vector<32x128xf32> to vector<32x128xbf16>
    %c32_176 = arith.constant 32 : index
    %c0_177 = arith.constant 0 : index
    %159 = vector.load %arg14[%c32_176, %c0_177] : memref<256x256xbf16, #tpu.memory_space<vmem>>, vector<32x128xbf16>
    tpu.vector_store %arg14[%c32_176, %c0_177], %158 {strides = array<i32>} : memref<256x256xbf16, #tpu.memory_space<vmem>>, vector<32x128xbf16>,
    %c0_178 = arith.constant 0 : index
    %c510_179 = arith.constant 510 : index
    %160 = vector.load %arg13[%c0_178, %c510_179] : memref<32x768xf32, #tpu.memory_space<vmem>>, vector<32x128xf32>
    %161 = arith.truncf %160 : vector<32x128xf32> to vector<32x128xbf16>
    %c32_180 = arith.constant 32 : index
    %c128_181 = arith.constant 128 : index
    %162 = vector.load %arg14[%c32_180, %c128_181] : memref<256x256xbf16, #tpu.memory_space<vmem>>, vector<32x128xbf16>
    tpu.vector_store %arg14[%c32_180, %c128_181], %161 {strides = array<i32>} : memref<256x256xbf16, #tpu.memory_space<vmem>>, vector<32x128xbf16>,
    %c0_182 = arith.constant 0 : index
    %c127_183 = arith.constant 127 : index
    %163 = vector.load %arg13[%c0_182, %c127_183] : memref<32x768xf32, #tpu.memory_space<vmem>>, vector<32x128xf32>
    %164 = arith.truncf %163 : vector<32x128xf32> to vector<32x128xbf16>
    %c64 = arith.constant 64 : index
    %c0_184 = arith.constant 0 : index
    %165 = vector.load %arg14[%c64, %c0_184] : memref<256x256xbf16, #tpu.memory_space<vmem>>, vector<32x128xbf16>
    tpu.vector_store %arg14[%c64, %c0_184], %164 {strides = array<i32>} : memref<256x256xbf16, #tpu.memory_space<vmem>>, vector<32x128xbf16>,
    %c0_185 = arith.constant 0 : index
    %c511_186 = arith.constant 511 : index
    %166 = vector.load %arg13[%c0_185, %c511_186] : memref<32x768xf32, #tpu.memory_space<vmem>>, vector<32x128xf32>
    %167 = arith.truncf %166 : vector<32x128xf32> to vector<32x128xbf16>
    %c64_187 = arith.constant 64 : index
    %c128_188 = arith.constant 128 : index
    %168 = vector.load %arg14[%c64_187, %c128_188] : memref<256x256xbf16, #tpu.memory_space<vmem>>, vector<32x128xbf16>
    tpu.vector_store %arg14[%c64_187, %c128_188], %167 {strides = array<i32>} : memref<256x256xbf16, #tpu.memory_space<vmem>>, vector<32x128xbf16>,
    %c0_189 = arith.constant 0 : index
    %c128_190 = arith.constant 128 : index
    %169 = vector.load %arg13[%c0_189, %c128_190] : memref<32x768xf32, #tpu.memory_space<vmem>>, vector<32x128xf32>
    %170 = arith.truncf %169 : vector<32x128xf32> to vector<32x128xbf16>
    %c96 = arith.constant 96 : index
    %c0_191 = arith.constant 0 : index
    %171 = vector.load %arg14[%c96, %c0_191] : memref<256x256xbf16, #tpu.memory_space<vmem>>, vector<32x128xbf16>
    tpu.vector_store %arg14[%c96, %c0_191], %170 {strides = array<i32>} : memref<256x256xbf16, #tpu.memory_space<vmem>>, vector<32x128xbf16>,
    %c0_192 = arith.constant 0 : index
    %c512_193 = arith.constant 512 : index
    %172 = vector.load %arg13[%c0_192, %c512_193] : memref<32x768xf32, #tpu.memory_space<vmem>>, vector<32x128xf32>
    %173 = arith.truncf %172 : vector<32x128xf32> to vector<32x128xbf16>
    %c96_194 = arith.constant 96 : index
    %c128_195 = arith.constant 128 : index
    %174 = vector.load %arg14[%c96_194, %c128_195] : memref<256x256xbf16, #tpu.memory_space<vmem>>, vector<32x128xbf16>
    tpu.vector_store %arg14[%c96_194, %c128_195], %173 {strides = array<i32>} : memref<256x256xbf16, #tpu.memory_space<vmem>>, vector<32x128xbf16>,
    %c0_196 = arith.constant 0 : index
    %c129_197 = arith.constant 129 : index
    %175 = vector.load %arg13[%c0_196, %c129_197] : memref<32x768xf32, #tpu.memory_space<vmem>>, vector<32x128xf32>
    %176 = arith.truncf %175 : vector<32x128xf32> to vector<32x128xbf16>
    %c128_198 = arith.constant 128 : index
    %c0_199 = arith.constant 0 : index
    %177 = vector.load %arg14[%c128_198, %c0_199] : memref<256x256xbf16, #tpu.memory_space<vmem>>, vector<32x128xbf16>
    tpu.vector_store %arg14[%c128_198, %c0_199], %176 {strides = array<i32>} : memref<256x256xbf16, #tpu.memory_space<vmem>>, vector<32x128xbf16>,
    %c0_200 = arith.constant 0 : index
    %c513_201 = arith.constant 513 : index
    %178 = vector.load %arg13[%c0_200, %c513_201] : memref<32x768xf32, #tpu.memory_space<vmem>>, vector<32x128xf32>
    %179 = arith.truncf %178 : vector<32x128xf32> to vector<32x128xbf16>
    %c128_202 = arith.constant 128 : index
    %c128_203 = arith.constant 128 : index
    %180 = vector.load %arg14[%c128_202, %c128_203] : memref<256x256xbf16, #tpu.memory_space<vmem>>, vector<32x128xbf16>
    tpu.vector_store %arg14[%c128_202, %c128_203], %179 {strides = array<i32>} : memref<256x256xbf16, #tpu.memory_space<vmem>>, vector<32x128xbf16>,
    %c0_204 = arith.constant 0 : index
    %c130_205 = arith.constant 130 : index
    %181 = vector.load %arg13[%c0_204, %c130_205] : memref<32x768xf32, #tpu.memory_space<vmem>>, vector<32x128xf32>
    %182 = arith.truncf %181 : vector<32x128xf32> to vector<32x128xbf16>
    %c160 = arith.constant 160 : index
    %c0_206 = arith.constant 0 : index
    %183 = vector.load %arg14[%c160, %c0_206] : memref<256x256xbf16, #tpu.memory_space<vmem>>, vector<32x128xbf16>
    tpu.vector_store %arg14[%c160, %c0_206], %182 {strides = array<i32>} : memref<256x256xbf16, #tpu.memory_space<vmem>>, vector<32x128xbf16>,
    %c0_207 = arith.constant 0 : index
    %c514_208 = arith.constant 514 : index
    %184 = vector.load %arg13[%c0_207, %c514_208] : memref<32x768xf32, #tpu.memory_space<vmem>>, vector<32x128xf32>
    %185 = arith.truncf %184 : vector<32x128xf32> to vector<32x128xbf16>
    %c160_209 = arith.constant 160 : index
    %c128_210 = arith.constant 128 : index
    %186 = vector.load %arg14[%c160_209, %c128_210] : memref<256x256xbf16, #tpu.memory_space<vmem>>, vector<32x128xbf16>
    tpu.vector_store %arg14[%c160_209, %c128_210], %185 {strides = array<i32>} : memref<256x256xbf16, #tpu.memory_space<vmem>>, vector<32x128xbf16>,
    %c0_211 = arith.constant 0 : index
    %c131_212 = arith.constant 131 : index
    %187 = vector.load %arg13[%c0_211, %c131_212] : memref<32x768xf32, #tpu.memory_space<vmem>>, vector<32x128xf32>
    %188 = arith.truncf %187 : vector<32x128xf32> to vector<32x128xbf16>
    %c192 = arith.constant 192 : index
    %c0_213 = arith.constant 0 : index
    %189 = vector.load %arg14[%c192, %c0_213] : memref<256x256xbf16, #tpu.memory_space<vmem>>, vector<32x128xbf16>
    tpu.vector_store %arg14[%c192, %c0_213], %188 {strides = array<i32>} : memref<256x256xbf16, #tpu.memory_space<vmem>>, vector<32x128xbf16>,
    %c0_214 = arith.constant 0 : index
    %c515_215 = arith.constant 515 : index
    %190 = vector.load %arg13[%c0_214, %c515_215] : memref<32x768xf32, #tpu.memory_space<vmem>>, vector<32x128xf32>
    %191 = arith.truncf %190 : vector<32x128xf32> to vector<32x128xbf16>
    %c192_216 = arith.constant 192 : index
    %c128_217 = arith.constant 128 : index
    %192 = vector.load %arg14[%c192_216, %c128_217] : memref<256x256xbf16, #tpu.memory_space<vmem>>, vector<32x128xbf16>
    tpu.vector_store %arg14[%c192_216, %c128_217], %191 {strides = array<i32>} : memref<256x256xbf16, #tpu.memory_space<vmem>>, vector<32x128xbf16>,
    %c0_218 = arith.constant 0 : index
    %c132_219 = arith.constant 132 : index
    %193 = vector.load %arg13[%c0_218, %c132_219] : memref<32x768xf32, #tpu.memory_space<vmem>>, vector<32x128xf32>
    %194 = arith.truncf %193 : vector<32x128xf32> to vector<32x128xbf16>
    %c224 = arith.constant 224 : index
    %c0_220 = arith.constant 0 : index
    %195 = vector.load %arg14[%c224, %c0_220] : memref<256x256xbf16, #tpu.memory_space<vmem>>, vector<32x128xbf16>
    tpu.vector_store %arg14[%c224, %c0_220], %194 {strides = array<i32>} : memref<256x256xbf16, #tpu.memory_space<vmem>>, vector<32x128xbf16>,
    %c0_221 = arith.constant 0 : index
    %c516_222 = arith.constant 516 : index
    %196 = vector.load %arg13[%c0_221, %c516_222] : memref<32x768xf32, #tpu.memory_space<vmem>>, vector<32x128xf32>
    %197 = arith.truncf %196 : vector<32x128xf32> to vector<32x128xbf16>
    %c224_223 = arith.constant 224 : index
    %c128_224 = arith.constant 128 : index
    %198 = vector.load %arg14[%c224_223, %c128_224] : memref<256x256xbf16, #tpu.memory_space<vmem>>, vector<32x128xbf16>
    tpu.vector_store %arg14[%c224_223, %c128_224], %197 {strides = array<i32>} : memref<256x256xbf16, #tpu.memory_space<vmem>>, vector<32x128xbf16>,
    %c0_225 = arith.constant 0 : index
    %c0_226 = arith.constant 0 : index
    %199 = vector.load %arg14[%c0_225, %c0_226] : memref<256x256xbf16, #tpu.memory_space<vmem>>, vector<256x256xbf16>
    %c0_227 = arith.constant 0 : index
    %c0_228 = arith.constant 0 : index
    %200 = vector.load %arg3[%c0_227, %c0_228] : memref<8x256xbf16, #tpu.memory_space<vmem>>, vector<8x256xbf16>
    %cst_229 = arith.constant dense<0.000000e+00> : vector<8x256xf32>
    %201 = tpu.matmul %200, %199, %cst_229 {dimension_numbers = #tpu.dot_dimension_numbers<[1], [0], [0], [1], [0, 0, 1, 1], [], []>} : vector<8x256xbf16>, vector<256x256xbf16>, vector<8x256xf32> -> vector<8x256xf32>
    %c0_230 = arith.constant 0 : index
    %c127_231 = arith.constant 127 : index
    %202 = vector.load %arg13[%c0_230, %c127_231] : memref<32x768xf32, #tpu.memory_space<vmem>>, vector<32x128xf32>
    %c0_232 = arith.constant 0 : index
    %c511_233 = arith.constant 511 : index
    %203 = vector.load %arg13[%c0_232, %c511_233] : memref<32x768xf32, #tpu.memory_space<vmem>>, vector<32x128xf32>
    %204 = tpu.concatenate %202, %203 in 1 : vector<32x128xf32>, vector<32x128xf32> -> vector<32x256xf32>
    %c0_234 = arith.constant 0 : index
    %c128_235 = arith.constant 128 : index
    %205 = vector.load %arg13[%c0_234, %c128_235] : memref<32x768xf32, #tpu.memory_space<vmem>>, vector<32x128xf32>
    %c0_236 = arith.constant 0 : index
    %c512_237 = arith.constant 512 : index
    %206 = vector.load %arg13[%c0_236, %c512_237] : memref<32x768xf32, #tpu.memory_space<vmem>>, vector<32x128xf32>
    %207 = tpu.concatenate %205, %206 in 1 : vector<32x128xf32>, vector<32x128xf32> -> vector<32x256xf32>
    %208 = arith.maximumf %204, %207 : vector<32x256xf32>
    %c0_238 = arith.constant 0 : index
    %c129_239 = arith.constant 129 : index
    %209 = vector.load %arg13[%c0_238, %c129_239] : memref<32x768xf32, #tpu.memory_space<vmem>>, vector<32x128xf32>
    %c0_240 = arith.constant 0 : index
    %c513_241 = arith.constant 513 : index
    %210 = vector.load %arg13[%c0_240, %c513_241] : memref<32x768xf32, #tpu.memory_space<vmem>>, vector<32x128xf32>
    %211 = tpu.concatenate %209, %210 in 1 : vector<32x128xf32>, vector<32x128xf32> -> vector<32x256xf32>
    %212 = arith.maximumf %208, %211 : vector<32x256xf32>
    %c0_242 = arith.constant 0 : index
    %c0_243 = arith.constant 0 : index
    %213 = vector.load %arg6[%c0_242, %c0_243] : memref<8x32xbf16, #tpu.memory_space<vmem>>, vector<8x32xbf16>
    %214 = arith.truncf %212 : vector<32x256xf32> to vector<32x256xbf16>
    %cst_244 = arith.constant dense<0.000000e+00> : vector<8x256xf32>
    %215 = tpu.matmul %213, %214, %cst_244 {dimension_numbers = #tpu.dot_dimension_numbers<[1], [0], [0], [1], [0, 0, 1, 1], [], []>} : vector<8x32xbf16>, vector<32x256xbf16>, vector<8x256xf32> -> vector<8x256xf32>
    %216 = vector.extract_strided_slice %201 {offsets = [0, 0], sizes = [8, 128], strides = [1, 1]} : vector<8x256xf32> to vector<8x128xf32>
    %c0_245 = arith.constant 0 : index
    %c128_246 = arith.constant 128 : index
    %217 = vector.load %arg13[%c0_245, %c128_246] : memref<32x768xf32, #tpu.memory_space<vmem>>, vector<8x128xf32>
    tpu.vector_store %arg13[%c0_245, %c128_246], %216 {strides = array<i32>} : memref<32x768xf32, #tpu.memory_space<vmem>>, vector<8x128xf32>,
    %218 = vector.extract_strided_slice %201 {offsets = [0, 128], sizes = [8, 128], strides = [1, 1]} : vector<8x256xf32> to vector<8x128xf32>
    %c0_247 = arith.constant 0 : index
    %c512_248 = arith.constant 512 : index
    %219 = vector.load %arg13[%c0_247, %c512_248] : memref<32x768xf32, #tpu.memory_space<vmem>>, vector<8x128xf32>
    tpu.vector_store %arg13[%c0_247, %c512_248], %218 {strides = array<i32>} : memref<32x768xf32, #tpu.memory_space<vmem>>, vector<8x128xf32>,
    %c0_249 = arith.constant 0 : index
    %c125_250 = arith.constant 125 : index
    %220 = vector.load %arg13[%c0_249, %c125_250] : memref<32x768xf32, #tpu.memory_space<vmem>>, vector<8x128xf32>
    %221 = arith.truncf %220 : vector<8x128xf32> to vector<8x128xbf16>
    %c0_251 = arith.constant 0 : index
    %c0_252 = arith.constant 0 : index
    %222 = vector.load %arg14[%c0_251, %c0_252] : memref<256x256xbf16, #tpu.memory_space<vmem>>, vector<8x128xbf16>
    tpu.vector_store %arg14[%c0_251, %c0_252], %221 {strides = array<i32>} : memref<256x256xbf16, #tpu.memory_space<vmem>>, vector<8x128xbf16>,
    %c0_253 = arith.constant 0 : index
    %c509_254 = arith.constant 509 : index
    %223 = vector.load %arg13[%c0_253, %c509_254] : memref<32x768xf32, #tpu.memory_space<vmem>>, vector<8x128xf32>
    %224 = arith.truncf %223 : vector<8x128xf32> to vector<8x128xbf16>
    %c0_255 = arith.constant 0 : index
    %c128_256 = arith.constant 128 : index
    %225 = vector.load %arg14[%c0_255, %c128_256] : memref<256x256xbf16, #tpu.memory_space<vmem>>, vector<8x128xbf16>
    tpu.vector_store %arg14[%c0_255, %c128_256], %224 {strides = array<i32>} : memref<256x256xbf16, #tpu.memory_space<vmem>>, vector<8x128xbf16>,
    %c0_257 = arith.constant 0 : index
    %c126_258 = arith.constant 126 : index
    %226 = vector.load %arg13[%c0_257, %c126_258] : memref<32x768xf32, #tpu.memory_space<vmem>>, vector<8x128xf32>
    %227 = arith.truncf %226 : vector<8x128xf32> to vector<8x128xbf16>
    %c8_259 = arith.constant 8 : index
    %c0_260 = arith.constant 0 : index
    %228 = vector.load %arg14[%c8_259, %c0_260] : memref<256x256xbf16, #tpu.memory_space<vmem>>, vector<8x128xbf16>
    tpu.vector_store %arg14[%c8_259, %c0_260], %227 {strides = array<i32>} : memref<256x256xbf16, #tpu.memory_space<vmem>>, vector<8x128xbf16>,
    %c0_261 = arith.constant 0 : index
    %c510_262 = arith.constant 510 : index
    %229 = vector.load %arg13[%c0_261, %c510_262] : memref<32x768xf32, #tpu.memory_space<vmem>>, vector<8x128xf32>
    %230 = arith.truncf %229 : vector<8x128xf32> to vector<8x128xbf16>
    %c8_263 = arith.constant 8 : index
    %c128_264 = arith.constant 128 : index
    %231 = vector.load %arg14[%c8_263, %c128_264] : memref<256x256xbf16, #tpu.memory_space<vmem>>, vector<8x128xbf16>
    tpu.vector_store %arg14[%c8_263, %c128_264], %230 {strides = array<i32>} : memref<256x256xbf16, #tpu.memory_space<vmem>>, vector<8x128xbf16>,
    %c0_265 = arith.constant 0 : index
    %c127_266 = arith.constant 127 : index
    %232 = vector.load %arg13[%c0_265, %c127_266] : memref<32x768xf32, #tpu.memory_space<vmem>>, vector<8x128xf32>
    %233 = arith.truncf %232 : vector<8x128xf32> to vector<8x128xbf16>
    %c16_267 = arith.constant 16 : index
    %c0_268 = arith.constant 0 : index
    %234 = vector.load %arg14[%c16_267, %c0_268] : memref<256x256xbf16, #tpu.memory_space<vmem>>, vector<8x128xbf16>
    tpu.vector_store %arg14[%c16_267, %c0_268], %233 {strides = array<i32>} : memref<256x256xbf16, #tpu.memory_space<vmem>>, vector<8x128xbf16>,
    %c0_269 = arith.constant 0 : index
    %c511_270 = arith.constant 511 : index
    %235 = vector.load %arg13[%c0_269, %c511_270] : memref<32x768xf32, #tpu.memory_space<vmem>>, vector<8x128xf32>
    %236 = arith.truncf %235 : vector<8x128xf32> to vector<8x128xbf16>
    %c16_271 = arith.constant 16 : index
    %c128_272 = arith.constant 128 : index
    %237 = vector.load %arg14[%c16_271, %c128_272] : memref<256x256xbf16, #tpu.memory_space<vmem>>, vector<8x128xbf16>
    tpu.vector_store %arg14[%c16_271, %c128_272], %236 {strides = array<i32>} : memref<256x256xbf16, #tpu.memory_space<vmem>>, vector<8x128xbf16>,
    %c0_273 = arith.constant 0 : index
    %c128_274 = arith.constant 128 : index
    %238 = vector.load %arg13[%c0_273, %c128_274] : memref<32x768xf32, #tpu.memory_space<vmem>>, vector<8x128xf32>
    %239 = arith.truncf %238 : vector<8x128xf32> to vector<8x128xbf16>
    %c24_275 = arith.constant 24 : index
    %c0_276 = arith.constant 0 : index
    %240 = vector.load %arg14[%c24_275, %c0_276] : memref<256x256xbf16, #tpu.memory_space<vmem>>, vector<8x128xbf16>
    tpu.vector_store %arg14[%c24_275, %c0_276], %239 {strides = array<i32>} : memref<256x256xbf16, #tpu.memory_space<vmem>>, vector<8x128xbf16>,
    %c0_277 = arith.constant 0 : index
    %c512_278 = arith.constant 512 : index
    %241 = vector.load %arg13[%c0_277, %c512_278] : memref<32x768xf32, #tpu.memory_space<vmem>>, vector<8x128xf32>
    %242 = arith.truncf %241 : vector<8x128xf32> to vector<8x128xbf16>
    %c24_279 = arith.constant 24 : index
    %c128_280 = arith.constant 128 : index
    %243 = vector.load %arg14[%c24_279, %c128_280] : memref<256x256xbf16, #tpu.memory_space<vmem>>, vector<8x128xbf16>
    tpu.vector_store %arg14[%c24_279, %c128_280], %242 {strides = array<i32>} : memref<256x256xbf16, #tpu.memory_space<vmem>>, vector<8x128xbf16>,
    %c0_281 = arith.constant 0 : index
    %c129_282 = arith.constant 129 : index
    %244 = vector.load %arg13[%c0_281, %c129_282] : memref<32x768xf32, #tpu.memory_space<vmem>>, vector<8x128xf32>
    %245 = arith.truncf %244 : vector<8x128xf32> to vector<8x128xbf16>
    %c32_283 = arith.constant 32 : index
    %c0_284 = arith.constant 0 : index
    %246 = vector.load %arg14[%c32_283, %c0_284] : memref<256x256xbf16, #tpu.memory_space<vmem>>, vector<8x128xbf16>
    tpu.vector_store %arg14[%c32_283, %c0_284], %245 {strides = array<i32>} : memref<256x256xbf16, #tpu.memory_space<vmem>>, vector<8x128xbf16>,
    %c0_285 = arith.constant 0 : index
    %c513_286 = arith.constant 513 : index
    %247 = vector.load %arg13[%c0_285, %c513_286] : memref<32x768xf32, #tpu.memory_space<vmem>>, vector<8x128xf32>
    %248 = arith.truncf %247 : vector<8x128xf32> to vector<8x128xbf16>
    %c32_287 = arith.constant 32 : index
    %c128_288 = arith.constant 128 : index
    %249 = vector.load %arg14[%c32_287, %c128_288] : memref<256x256xbf16, #tpu.memory_space<vmem>>, vector<8x128xbf16>
    tpu.vector_store %arg14[%c32_287, %c128_288], %248 {strides = array<i32>} : memref<256x256xbf16, #tpu.memory_space<vmem>>, vector<8x128xbf16>,
    %c0_289 = arith.constant 0 : index
    %c130_290 = arith.constant 130 : index
    %250 = vector.load %arg13[%c0_289, %c130_290] : memref<32x768xf32, #tpu.memory_space<vmem>>, vector<8x128xf32>
    %251 = arith.truncf %250 : vector<8x128xf32> to vector<8x128xbf16>
    %c40_291 = arith.constant 40 : index
    %c0_292 = arith.constant 0 : index
    %252 = vector.load %arg14[%c40_291, %c0_292] : memref<256x256xbf16, #tpu.memory_space<vmem>>, vector<8x128xbf16>
    tpu.vector_store %arg14[%c40_291, %c0_292], %251 {strides = array<i32>} : memref<256x256xbf16, #tpu.memory_space<vmem>>, vector<8x128xbf16>,
    %c0_293 = arith.constant 0 : index
    %c514_294 = arith.constant 514 : index
    %253 = vector.load %arg13[%c0_293, %c514_294] : memref<32x768xf32, #tpu.memory_space<vmem>>, vector<8x128xf32>
    %254 = arith.truncf %253 : vector<8x128xf32> to vector<8x128xbf16>
    %c40_295 = arith.constant 40 : index
    %c128_296 = arith.constant 128 : index
    %255 = vector.load %arg14[%c40_295, %c128_296] : memref<256x256xbf16, #tpu.memory_space<vmem>>, vector<8x128xbf16>
    tpu.vector_store %arg14[%c40_295, %c128_296], %254 {strides = array<i32>} : memref<256x256xbf16, #tpu.memory_space<vmem>>, vector<8x128xbf16>,
    %c0_297 = arith.constant 0 : index
    %c131_298 = arith.constant 131 : index
    %256 = vector.load %arg13[%c0_297, %c131_298] : memref<32x768xf32, #tpu.memory_space<vmem>>, vector<8x128xf32>
    %257 = arith.truncf %256 : vector<8x128xf32> to vector<8x128xbf16>
    %c48_299 = arith.constant 48 : index
    %c0_300 = arith.constant 0 : index
    %258 = vector.load %arg14[%c48_299, %c0_300] : memref<256x256xbf16, #tpu.memory_space<vmem>>, vector<8x128xbf16>
    tpu.vector_store %arg14[%c48_299, %c0_300], %257 {strides = array<i32>} : memref<256x256xbf16, #tpu.memory_space<vmem>>, vector<8x128xbf16>,
    %c0_301 = arith.constant 0 : index
    %c515_302 = arith.constant 515 : index
    %259 = vector.load %arg13[%c0_301, %c515_302] : memref<32x768xf32, #tpu.memory_space<vmem>>, vector<8x128xf32>
    %260 = arith.truncf %259 : vector<8x128xf32> to vector<8x128xbf16>
    %c48_303 = arith.constant 48 : index
    %c128_304 = arith.constant 128 : index
    %261 = vector.load %arg14[%c48_303, %c128_304] : memref<256x256xbf16, #tpu.memory_space<vmem>>, vector<8x128xbf16>
    tpu.vector_store %arg14[%c48_303, %c128_304], %260 {strides = array<i32>} : memref<256x256xbf16, #tpu.memory_space<vmem>>, vector<8x128xbf16>,
    %c0_305 = arith.constant 0 : index
    %c132_306 = arith.constant 132 : index
    %262 = vector.load %arg13[%c0_305, %c132_306] : memref<32x768xf32, #tpu.memory_space<vmem>>, vector<8x128xf32>
    %263 = arith.truncf %262 : vector<8x128xf32> to vector<8x128xbf16>
    %c56_307 = arith.constant 56 : index
    %c0_308 = arith.constant 0 : index
    %264 = vector.load %arg14[%c56_307, %c0_308] : memref<256x256xbf16, #tpu.memory_space<vmem>>, vector<8x128xbf16>
    tpu.vector_store %arg14[%c56_307, %c0_308], %263 {strides = array<i32>} : memref<256x256xbf16, #tpu.memory_space<vmem>>, vector<8x128xbf16>,
    %c0_309 = arith.constant 0 : index
    %c516_310 = arith.constant 516 : index
    %265 = vector.load %arg13[%c0_309, %c516_310] : memref<32x768xf32, #tpu.memory_space<vmem>>, vector<8x128xf32>
    %266 = arith.truncf %265 : vector<8x128xf32> to vector<8x128xbf16>
    %c56_311 = arith.constant 56 : index
    %c128_312 = arith.constant 128 : index
    %267 = vector.load %arg14[%c56_311, %c128_312] : memref<256x256xbf16, #tpu.memory_space<vmem>>, vector<8x128xbf16>
    tpu.vector_store %arg14[%c56_311, %c128_312], %266 {strides = array<i32>} : memref<256x256xbf16, #tpu.memory_space<vmem>>, vector<8x128xbf16>,
    %c0_313 = arith.constant 0 : index
    %c0_314 = arith.constant 0 : index
    %268 = vector.load %arg14[%c0_313, %c0_314] : memref<256x256xbf16, #tpu.memory_space<vmem>>, vector<64x256xbf16>
    %c1_315 = arith.constant 1 : index
    %c0_316 = arith.constant 0 : index
    %c0_317 = arith.constant 0 : index
    %269 = vector.load %arg8[%c1_315, %c0_316, %c0_317] : memref<3x24x64xbf16, #tpu.memory_space<vmem>>, vector<1x24x64xbf16>
    %270 = vector.shape_cast %269 : vector<1x24x64xbf16> to vector<24x64xbf16>
    %cst_318 = arith.constant dense<0.000000e+00> : vector<24x256xf32>
    %271 = tpu.matmul %270, %268, %cst_318 {dimension_numbers = #tpu.dot_dimension_numbers<[1], [0], [0], [1], [0, 0, 1, 1], [], []>} : vector<24x64xbf16>, vector<64x256xbf16>, vector<24x256xf32> -> vector<24x256xf32>
    %c32_319 = arith.constant 32 : index
    %c0_320 = arith.constant 0 : index
    %272 = vector.load %arg11[%c32_319, %c0_320] : memref<104x1xf32, #tpu.memory_space<vmem>>, vector<24x1xf32>
    %c56_321 = arith.constant 56 : index
    %c0_322 = arith.constant 0 : index
    %273 = vector.load %arg11[%c56_321, %c0_322] : memref<104x1xf32, #tpu.memory_space<vmem>>, vector<8x1xf32>
    %274 = vector.broadcast %272 : vector<24x1xf32> to vector<24x256xf32>
    %275 = arith.addf %271, %274 : vector<24x256xf32>
    %cst_323 = arith.constant 0.000000e+00 : f32
    %276 = vector.broadcast %cst_323 : f32 to vector<24x256xf32>
    %277 = arith.maximumf %275, %276 : vector<24x256xf32>
    %278 = vector.extract_strided_slice %277 {offsets = [0, 0], sizes = [24, 128], strides = [1, 1]} : vector<24x256xf32> to vector<24x128xf32>
    %c0_324 = arith.constant 0 : index
    %c128_325 = arith.constant 128 : index
    %279 = vector.load %arg13[%c0_324, %c128_325] : memref<32x768xf32, #tpu.memory_space<vmem>>, vector<24x128xf32>
    tpu.vector_store %arg13[%c0_324, %c128_325], %278 {strides = array<i32>} : memref<32x768xf32, #tpu.memory_space<vmem>>, vector<24x128xf32>,
    %280 = vector.extract_strided_slice %277 {offsets = [0, 128], sizes = [24, 128], strides = [1, 1]} : vector<24x256xf32> to vector<24x128xf32>
    %c0_326 = arith.constant 0 : index
    %c512_327 = arith.constant 512 : index
    %281 = vector.load %arg13[%c0_326, %c512_327] : memref<32x768xf32, #tpu.memory_space<vmem>>, vector<24x128xf32>
    tpu.vector_store %arg13[%c0_326, %c512_327], %280 {strides = array<i32>} : memref<32x768xf32, #tpu.memory_space<vmem>>, vector<24x128xf32>,
    %282 = vector.broadcast %273 : vector<8x1xf32> to vector<8x256xf32>
    %283 = arith.addf %215, %282 : vector<8x256xf32>
    %cst_328 = arith.constant 0.000000e+00 : f32
    %284 = vector.broadcast %cst_328 : f32 to vector<8x256xf32>
    %285 = arith.maximumf %283, %284 : vector<8x256xf32>
    %286 = vector.extract_strided_slice %285 {offsets = [0, 0], sizes = [8, 128], strides = [1, 1]} : vector<8x256xf32> to vector<8x128xf32>
    %c24_329 = arith.constant 24 : index
    %c128_330 = arith.constant 128 : index
    %287 = vector.load %arg13[%c24_329, %c128_330] : memref<32x768xf32, #tpu.memory_space<vmem>>, vector<8x128xf32>
    tpu.vector_store %arg13[%c24_329, %c128_330], %286 {strides = array<i32>} : memref<32x768xf32, #tpu.memory_space<vmem>>, vector<8x128xf32>,
    %288 = vector.extract_strided_slice %285 {offsets = [0, 128], sizes = [8, 128], strides = [1, 1]} : vector<8x256xf32> to vector<8x128xf32>
    %c24_331 = arith.constant 24 : index
    %c512_332 = arith.constant 512 : index
    %289 = vector.load %arg13[%c24_331, %c512_332] : memref<32x768xf32, #tpu.memory_space<vmem>>, vector<8x128xf32>
    tpu.vector_store %arg13[%c24_331, %c512_332], %288 {strides = array<i32>} : memref<32x768xf32, #tpu.memory_space<vmem>>, vector<8x128xf32>,
    %c0_333 = arith.constant 0 : index
    %c125_334 = arith.constant 125 : index
    %290 = vector.load %arg13[%c0_333, %c125_334] : memref<32x768xf32, #tpu.memory_space<vmem>>, vector<32x128xf32>
    %291 = arith.truncf %290 : vector<32x128xf32> to vector<32x128xbf16>
    %c0_335 = arith.constant 0 : index
    %c0_336 = arith.constant 0 : index
    %292 = vector.load %arg14[%c0_335, %c0_336] : memref<256x256xbf16, #tpu.memory_space<vmem>>, vector<32x128xbf16>
    tpu.vector_store %arg14[%c0_335, %c0_336], %291 {strides = array<i32>} : memref<256x256xbf16, #tpu.memory_space<vmem>>, vector<32x128xbf16>,
    %c0_337 = arith.constant 0 : index
    %c509_338 = arith.constant 509 : index
    %293 = vector.load %arg13[%c0_337, %c509_338] : memref<32x768xf32, #tpu.memory_space<vmem>>, vector<32x128xf32>
    %294 = arith.truncf %293 : vector<32x128xf32> to vector<32x128xbf16>
    %c0_339 = arith.constant 0 : index
    %c128_340 = arith.constant 128 : index
    %295 = vector.load %arg14[%c0_339, %c128_340] : memref<256x256xbf16, #tpu.memory_space<vmem>>, vector<32x128xbf16>
    tpu.vector_store %arg14[%c0_339, %c128_340], %294 {strides = array<i32>} : memref<256x256xbf16, #tpu.memory_space<vmem>>, vector<32x128xbf16>,
    %c0_341 = arith.constant 0 : index
    %c126_342 = arith.constant 126 : index
    %296 = vector.load %arg13[%c0_341, %c126_342] : memref<32x768xf32, #tpu.memory_space<vmem>>, vector<32x128xf32>
    %297 = arith.truncf %296 : vector<32x128xf32> to vector<32x128xbf16>
    %c32_343 = arith.constant 32 : index
    %c0_344 = arith.constant 0 : index
    %298 = vector.load %arg14[%c32_343, %c0_344] : memref<256x256xbf16, #tpu.memory_space<vmem>>, vector<32x128xbf16>
    tpu.vector_store %arg14[%c32_343, %c0_344], %297 {strides = array<i32>} : memref<256x256xbf16, #tpu.memory_space<vmem>>, vector<32x128xbf16>,
    %c0_345 = arith.constant 0 : index
    %c510_346 = arith.constant 510 : index
    %299 = vector.load %arg13[%c0_345, %c510_346] : memref<32x768xf32, #tpu.memory_space<vmem>>, vector<32x128xf32>
    %300 = arith.truncf %299 : vector<32x128xf32> to vector<32x128xbf16>
    %c32_347 = arith.constant 32 : index
    %c128_348 = arith.constant 128 : index
    %301 = vector.load %arg14[%c32_347, %c128_348] : memref<256x256xbf16, #tpu.memory_space<vmem>>, vector<32x128xbf16>
    tpu.vector_store %arg14[%c32_347, %c128_348], %300 {strides = array<i32>} : memref<256x256xbf16, #tpu.memory_space<vmem>>, vector<32x128xbf16>,
    %c0_349 = arith.constant 0 : index
    %c127_350 = arith.constant 127 : index
    %302 = vector.load %arg13[%c0_349, %c127_350] : memref<32x768xf32, #tpu.memory_space<vmem>>, vector<32x128xf32>
    %303 = arith.truncf %302 : vector<32x128xf32> to vector<32x128xbf16>
    %c64_351 = arith.constant 64 : index
    %c0_352 = arith.constant 0 : index
    %304 = vector.load %arg14[%c64_351, %c0_352] : memref<256x256xbf16, #tpu.memory_space<vmem>>, vector<32x128xbf16>
    tpu.vector_store %arg14[%c64_351, %c0_352], %303 {strides = array<i32>} : memref<256x256xbf16, #tpu.memory_space<vmem>>, vector<32x128xbf16>,
    %c0_353 = arith.constant 0 : index
    %c511_354 = arith.constant 511 : index
    %305 = vector.load %arg13[%c0_353, %c511_354] : memref<32x768xf32, #tpu.memory_space<vmem>>, vector<32x128xf32>
    %306 = arith.truncf %305 : vector<32x128xf32> to vector<32x128xbf16>
    %c64_355 = arith.constant 64 : index
    %c128_356 = arith.constant 128 : index
    %307 = vector.load %arg14[%c64_355, %c128_356] : memref<256x256xbf16, #tpu.memory_space<vmem>>, vector<32x128xbf16>
    tpu.vector_store %arg14[%c64_355, %c128_356], %306 {strides = array<i32>} : memref<256x256xbf16, #tpu.memory_space<vmem>>, vector<32x128xbf16>,
    %c0_357 = arith.constant 0 : index
    %c128_358 = arith.constant 128 : index
    %308 = vector.load %arg13[%c0_357, %c128_358] : memref<32x768xf32, #tpu.memory_space<vmem>>, vector<32x128xf32>
    %309 = arith.truncf %308 : vector<32x128xf32> to vector<32x128xbf16>
    %c96_359 = arith.constant 96 : index
    %c0_360 = arith.constant 0 : index
    %310 = vector.load %arg14[%c96_359, %c0_360] : memref<256x256xbf16, #tpu.memory_space<vmem>>, vector<32x128xbf16>
    tpu.vector_store %arg14[%c96_359, %c0_360], %309 {strides = array<i32>} : memref<256x256xbf16, #tpu.memory_space<vmem>>, vector<32x128xbf16>,
    %c0_361 = arith.constant 0 : index
    %c512_362 = arith.constant 512 : index
    %311 = vector.load %arg13[%c0_361, %c512_362] : memref<32x768xf32, #tpu.memory_space<vmem>>, vector<32x128xf32>
    %312 = arith.truncf %311 : vector<32x128xf32> to vector<32x128xbf16>
    %c96_363 = arith.constant 96 : index
    %c128_364 = arith.constant 128 : index
    %313 = vector.load %arg14[%c96_363, %c128_364] : memref<256x256xbf16, #tpu.memory_space<vmem>>, vector<32x128xbf16>
    tpu.vector_store %arg14[%c96_363, %c128_364], %312 {strides = array<i32>} : memref<256x256xbf16, #tpu.memory_space<vmem>>, vector<32x128xbf16>,
    %c0_365 = arith.constant 0 : index
    %c129_366 = arith.constant 129 : index
    %314 = vector.load %arg13[%c0_365, %c129_366] : memref<32x768xf32, #tpu.memory_space<vmem>>, vector<32x128xf32>
    %315 = arith.truncf %314 : vector<32x128xf32> to vector<32x128xbf16>
    %c128_367 = arith.constant 128 : index
    %c0_368 = arith.constant 0 : index
    %316 = vector.load %arg14[%c128_367, %c0_368] : memref<256x256xbf16, #tpu.memory_space<vmem>>, vector<32x128xbf16>
    tpu.vector_store %arg14[%c128_367, %c0_368], %315 {strides = array<i32>} : memref<256x256xbf16, #tpu.memory_space<vmem>>, vector<32x128xbf16>,
    %c0_369 = arith.constant 0 : index
    %c513_370 = arith.constant 513 : index
    %317 = vector.load %arg13[%c0_369, %c513_370] : memref<32x768xf32, #tpu.memory_space<vmem>>, vector<32x128xf32>
    %318 = arith.truncf %317 : vector<32x128xf32> to vector<32x128xbf16>
    %c128_371 = arith.constant 128 : index
    %c128_372 = arith.constant 128 : index
    %319 = vector.load %arg14[%c128_371, %c128_372] : memref<256x256xbf16, #tpu.memory_space<vmem>>, vector<32x128xbf16>
    tpu.vector_store %arg14[%c128_371, %c128_372], %318 {strides = array<i32>} : memref<256x256xbf16, #tpu.memory_space<vmem>>, vector<32x128xbf16>,
    %c0_373 = arith.constant 0 : index
    %c130_374 = arith.constant 130 : index
    %320 = vector.load %arg13[%c0_373, %c130_374] : memref<32x768xf32, #tpu.memory_space<vmem>>, vector<32x128xf32>
    %321 = arith.truncf %320 : vector<32x128xf32> to vector<32x128xbf16>
    %c160_375 = arith.constant 160 : index
    %c0_376 = arith.constant 0 : index
    %322 = vector.load %arg14[%c160_375, %c0_376] : memref<256x256xbf16, #tpu.memory_space<vmem>>, vector<32x128xbf16>
    tpu.vector_store %arg14[%c160_375, %c0_376], %321 {strides = array<i32>} : memref<256x256xbf16, #tpu.memory_space<vmem>>, vector<32x128xbf16>,
    %c0_377 = arith.constant 0 : index
    %c514_378 = arith.constant 514 : index
    %323 = vector.load %arg13[%c0_377, %c514_378] : memref<32x768xf32, #tpu.memory_space<vmem>>, vector<32x128xf32>
    %324 = arith.truncf %323 : vector<32x128xf32> to vector<32x128xbf16>
    %c160_379 = arith.constant 160 : index
    %c128_380 = arith.constant 128 : index
    %325 = vector.load %arg14[%c160_379, %c128_380] : memref<256x256xbf16, #tpu.memory_space<vmem>>, vector<32x128xbf16>
    tpu.vector_store %arg14[%c160_379, %c128_380], %324 {strides = array<i32>} : memref<256x256xbf16, #tpu.memory_space<vmem>>, vector<32x128xbf16>,
    %c0_381 = arith.constant 0 : index
    %c131_382 = arith.constant 131 : index
    %326 = vector.load %arg13[%c0_381, %c131_382] : memref<32x768xf32, #tpu.memory_space<vmem>>, vector<32x128xf32>
    %327 = arith.truncf %326 : vector<32x128xf32> to vector<32x128xbf16>
    %c192_383 = arith.constant 192 : index
    %c0_384 = arith.constant 0 : index
    %328 = vector.load %arg14[%c192_383, %c0_384] : memref<256x256xbf16, #tpu.memory_space<vmem>>, vector<32x128xbf16>
    tpu.vector_store %arg14[%c192_383, %c0_384], %327 {strides = array<i32>} : memref<256x256xbf16, #tpu.memory_space<vmem>>, vector<32x128xbf16>,
    %c0_385 = arith.constant 0 : index
    %c515_386 = arith.constant 515 : index
    %329 = vector.load %arg13[%c0_385, %c515_386] : memref<32x768xf32, #tpu.memory_space<vmem>>, vector<32x128xf32>
    %330 = arith.truncf %329 : vector<32x128xf32> to vector<32x128xbf16>
    %c192_387 = arith.constant 192 : index
    %c128_388 = arith.constant 128 : index
    %331 = vector.load %arg14[%c192_387, %c128_388] : memref<256x256xbf16, #tpu.memory_space<vmem>>, vector<32x128xbf16>
    tpu.vector_store %arg14[%c192_387, %c128_388], %330 {strides = array<i32>} : memref<256x256xbf16, #tpu.memory_space<vmem>>, vector<32x128xbf16>,
    %c0_389 = arith.constant 0 : index
    %c132_390 = arith.constant 132 : index
    %332 = vector.load %arg13[%c0_389, %c132_390] : memref<32x768xf32, #tpu.memory_space<vmem>>, vector<32x128xf32>
    %333 = arith.truncf %332 : vector<32x128xf32> to vector<32x128xbf16>
    %c224_391 = arith.constant 224 : index
    %c0_392 = arith.constant 0 : index
    %334 = vector.load %arg14[%c224_391, %c0_392] : memref<256x256xbf16, #tpu.memory_space<vmem>>, vector<32x128xbf16>
    tpu.vector_store %arg14[%c224_391, %c0_392], %333 {strides = array<i32>} : memref<256x256xbf16, #tpu.memory_space<vmem>>, vector<32x128xbf16>,
    %c0_393 = arith.constant 0 : index
    %c516_394 = arith.constant 516 : index
    %335 = vector.load %arg13[%c0_393, %c516_394] : memref<32x768xf32, #tpu.memory_space<vmem>>, vector<32x128xf32>
    %336 = arith.truncf %335 : vector<32x128xf32> to vector<32x128xbf16>
    %c224_395 = arith.constant 224 : index
    %c128_396 = arith.constant 128 : index
    %337 = vector.load %arg14[%c224_395, %c128_396] : memref<256x256xbf16, #tpu.memory_space<vmem>>, vector<32x128xbf16>
    tpu.vector_store %arg14[%c224_395, %c128_396], %336 {strides = array<i32>} : memref<256x256xbf16, #tpu.memory_space<vmem>>, vector<32x128xbf16>,
    %c0_397 = arith.constant 0 : index
    %c0_398 = arith.constant 0 : index
    %338 = vector.load %arg14[%c0_397, %c0_398] : memref<256x256xbf16, #tpu.memory_space<vmem>>, vector<256x256xbf16>
    %c0_399 = arith.constant 0 : index
    %c0_400 = arith.constant 0 : index
    %339 = vector.load %arg4[%c0_399, %c0_400] : memref<8x256xbf16, #tpu.memory_space<vmem>>, vector<8x256xbf16>
    %cst_401 = arith.constant dense<0.000000e+00> : vector<8x256xf32>
    %340 = tpu.matmul %339, %338, %cst_401 {dimension_numbers = #tpu.dot_dimension_numbers<[1], [0], [0], [1], [0, 0, 1, 1], [], []>} : vector<8x256xbf16>, vector<256x256xbf16>, vector<8x256xf32> -> vector<8x256xf32>
    %c0_402 = arith.constant 0 : index
    %c127_403 = arith.constant 127 : index
    %341 = vector.load %arg13[%c0_402, %c127_403] : memref<32x768xf32, #tpu.memory_space<vmem>>, vector<32x128xf32>
    %c0_404 = arith.constant 0 : index
    %c511_405 = arith.constant 511 : index
    %342 = vector.load %arg13[%c0_404, %c511_405] : memref<32x768xf32, #tpu.memory_space<vmem>>, vector<32x128xf32>
    %343 = tpu.concatenate %341, %342 in 1 : vector<32x128xf32>, vector<32x128xf32> -> vector<32x256xf32>
    %c0_406 = arith.constant 0 : index
    %c128_407 = arith.constant 128 : index
    %344 = vector.load %arg13[%c0_406, %c128_407] : memref<32x768xf32, #tpu.memory_space<vmem>>, vector<32x128xf32>
    %c0_408 = arith.constant 0 : index
    %c512_409 = arith.constant 512 : index
    %345 = vector.load %arg13[%c0_408, %c512_409] : memref<32x768xf32, #tpu.memory_space<vmem>>, vector<32x128xf32>
    %346 = tpu.concatenate %344, %345 in 1 : vector<32x128xf32>, vector<32x128xf32> -> vector<32x256xf32>
    %347 = arith.maximumf %343, %346 : vector<32x256xf32>
    %c0_410 = arith.constant 0 : index
    %c129_411 = arith.constant 129 : index
    %348 = vector.load %arg13[%c0_410, %c129_411] : memref<32x768xf32, #tpu.memory_space<vmem>>, vector<32x128xf32>
    %c0_412 = arith.constant 0 : index
    %c513_413 = arith.constant 513 : index
    %349 = vector.load %arg13[%c0_412, %c513_413] : memref<32x768xf32, #tpu.memory_space<vmem>>, vector<32x128xf32>
    %350 = tpu.concatenate %348, %349 in 1 : vector<32x128xf32>, vector<32x128xf32> -> vector<32x256xf32>
    %351 = arith.maximumf %347, %350 : vector<32x256xf32>
    %c0_414 = arith.constant 0 : index
    %c0_415 = arith.constant 0 : index
    %352 = vector.load %arg7[%c0_414, %c0_415] : memref<8x32xbf16, #tpu.memory_space<vmem>>, vector<8x32xbf16>
    %353 = arith.truncf %351 : vector<32x256xf32> to vector<32x256xbf16>
    %cst_416 = arith.constant dense<0.000000e+00> : vector<8x256xf32>
    %354 = tpu.matmul %352, %353, %cst_416 {dimension_numbers = #tpu.dot_dimension_numbers<[1], [0], [0], [1], [0, 0, 1, 1], [], []>} : vector<8x32xbf16>, vector<32x256xbf16>, vector<8x256xf32> -> vector<8x256xf32>
    %355 = vector.extract_strided_slice %340 {offsets = [0, 0], sizes = [8, 128], strides = [1, 1]} : vector<8x256xf32> to vector<8x128xf32>
    %c0_417 = arith.constant 0 : index
    %c128_418 = arith.constant 128 : index
    %356 = vector.load %arg13[%c0_417, %c128_418] : memref<32x768xf32, #tpu.memory_space<vmem>>, vector<8x128xf32>
    tpu.vector_store %arg13[%c0_417, %c128_418], %355 {strides = array<i32>} : memref<32x768xf32, #tpu.memory_space<vmem>>, vector<8x128xf32>,
    %357 = vector.extract_strided_slice %340 {offsets = [0, 128], sizes = [8, 128], strides = [1, 1]} : vector<8x256xf32> to vector<8x128xf32>
    %c0_419 = arith.constant 0 : index
    %c512_420 = arith.constant 512 : index
    %358 = vector.load %arg13[%c0_419, %c512_420] : memref<32x768xf32, #tpu.memory_space<vmem>>, vector<8x128xf32>
    tpu.vector_store %arg13[%c0_419, %c512_420], %357 {strides = array<i32>} : memref<32x768xf32, #tpu.memory_space<vmem>>, vector<8x128xf32>,
    %c0_421 = arith.constant 0 : index
    %c125_422 = arith.constant 125 : index
    %359 = vector.load %arg13[%c0_421, %c125_422] : memref<32x768xf32, #tpu.memory_space<vmem>>, vector<8x128xf32>
    %360 = arith.truncf %359 : vector<8x128xf32> to vector<8x128xbf16>
    %c0_423 = arith.constant 0 : index
    %c0_424 = arith.constant 0 : index
    %361 = vector.load %arg14[%c0_423, %c0_424] : memref<256x256xbf16, #tpu.memory_space<vmem>>, vector<8x128xbf16>
    tpu.vector_store %arg14[%c0_423, %c0_424], %360 {strides = array<i32>} : memref<256x256xbf16, #tpu.memory_space<vmem>>, vector<8x128xbf16>,
    %c0_425 = arith.constant 0 : index
    %c509_426 = arith.constant 509 : index
    %362 = vector.load %arg13[%c0_425, %c509_426] : memref<32x768xf32, #tpu.memory_space<vmem>>, vector<8x128xf32>
    %363 = arith.truncf %362 : vector<8x128xf32> to vector<8x128xbf16>
    %c0_427 = arith.constant 0 : index
    %c128_428 = arith.constant 128 : index
    %364 = vector.load %arg14[%c0_427, %c128_428] : memref<256x256xbf16, #tpu.memory_space<vmem>>, vector<8x128xbf16>
    tpu.vector_store %arg14[%c0_427, %c128_428], %363 {strides = array<i32>} : memref<256x256xbf16, #tpu.memory_space<vmem>>, vector<8x128xbf16>,
    %c0_429 = arith.constant 0 : index
    %c126_430 = arith.constant 126 : index
    %365 = vector.load %arg13[%c0_429, %c126_430] : memref<32x768xf32, #tpu.memory_space<vmem>>, vector<8x128xf32>
    %366 = arith.truncf %365 : vector<8x128xf32> to vector<8x128xbf16>
    %c8_431 = arith.constant 8 : index
    %c0_432 = arith.constant 0 : index
    %367 = vector.load %arg14[%c8_431, %c0_432] : memref<256x256xbf16, #tpu.memory_space<vmem>>, vector<8x128xbf16>
    tpu.vector_store %arg14[%c8_431, %c0_432], %366 {strides = array<i32>} : memref<256x256xbf16, #tpu.memory_space<vmem>>, vector<8x128xbf16>,
    %c0_433 = arith.constant 0 : index
    %c510_434 = arith.constant 510 : index
    %368 = vector.load %arg13[%c0_433, %c510_434] : memref<32x768xf32, #tpu.memory_space<vmem>>, vector<8x128xf32>
    %369 = arith.truncf %368 : vector<8x128xf32> to vector<8x128xbf16>
    %c8_435 = arith.constant 8 : index
    %c128_436 = arith.constant 128 : index
    %370 = vector.load %arg14[%c8_435, %c128_436] : memref<256x256xbf16, #tpu.memory_space<vmem>>, vector<8x128xbf16>
    tpu.vector_store %arg14[%c8_435, %c128_436], %369 {strides = array<i32>} : memref<256x256xbf16, #tpu.memory_space<vmem>>, vector<8x128xbf16>,
    %c0_437 = arith.constant 0 : index
    %c127_438 = arith.constant 127 : index
    %371 = vector.load %arg13[%c0_437, %c127_438] : memref<32x768xf32, #tpu.memory_space<vmem>>, vector<8x128xf32>
    %372 = arith.truncf %371 : vector<8x128xf32> to vector<8x128xbf16>
    %c16_439 = arith.constant 16 : index
    %c0_440 = arith.constant 0 : index
    %373 = vector.load %arg14[%c16_439, %c0_440] : memref<256x256xbf16, #tpu.memory_space<vmem>>, vector<8x128xbf16>
    tpu.vector_store %arg14[%c16_439, %c0_440], %372 {strides = array<i32>} : memref<256x256xbf16, #tpu.memory_space<vmem>>, vector<8x128xbf16>,
    %c0_441 = arith.constant 0 : index
    %c511_442 = arith.constant 511 : index
    %374 = vector.load %arg13[%c0_441, %c511_442] : memref<32x768xf32, #tpu.memory_space<vmem>>, vector<8x128xf32>
    %375 = arith.truncf %374 : vector<8x128xf32> to vector<8x128xbf16>
    %c16_443 = arith.constant 16 : index
    %c128_444 = arith.constant 128 : index
    %376 = vector.load %arg14[%c16_443, %c128_444] : memref<256x256xbf16, #tpu.memory_space<vmem>>, vector<8x128xbf16>
    tpu.vector_store %arg14[%c16_443, %c128_444], %375 {strides = array<i32>} : memref<256x256xbf16, #tpu.memory_space<vmem>>, vector<8x128xbf16>,
    %c0_445 = arith.constant 0 : index
    %c128_446 = arith.constant 128 : index
    %377 = vector.load %arg13[%c0_445, %c128_446] : memref<32x768xf32, #tpu.memory_space<vmem>>, vector<8x128xf32>
    %378 = arith.truncf %377 : vector<8x128xf32> to vector<8x128xbf16>
    %c24_447 = arith.constant 24 : index
    %c0_448 = arith.constant 0 : index
    %379 = vector.load %arg14[%c24_447, %c0_448] : memref<256x256xbf16, #tpu.memory_space<vmem>>, vector<8x128xbf16>
    tpu.vector_store %arg14[%c24_447, %c0_448], %378 {strides = array<i32>} : memref<256x256xbf16, #tpu.memory_space<vmem>>, vector<8x128xbf16>,
    %c0_449 = arith.constant 0 : index
    %c512_450 = arith.constant 512 : index
    %380 = vector.load %arg13[%c0_449, %c512_450] : memref<32x768xf32, #tpu.memory_space<vmem>>, vector<8x128xf32>
    %381 = arith.truncf %380 : vector<8x128xf32> to vector<8x128xbf16>
    %c24_451 = arith.constant 24 : index
    %c128_452 = arith.constant 128 : index
    %382 = vector.load %arg14[%c24_451, %c128_452] : memref<256x256xbf16, #tpu.memory_space<vmem>>, vector<8x128xbf16>
    tpu.vector_store %arg14[%c24_451, %c128_452], %381 {strides = array<i32>} : memref<256x256xbf16, #tpu.memory_space<vmem>>, vector<8x128xbf16>,
    %c0_453 = arith.constant 0 : index
    %c129_454 = arith.constant 129 : index
    %383 = vector.load %arg13[%c0_453, %c129_454] : memref<32x768xf32, #tpu.memory_space<vmem>>, vector<8x128xf32>
    %384 = arith.truncf %383 : vector<8x128xf32> to vector<8x128xbf16>
    %c32_455 = arith.constant 32 : index
    %c0_456 = arith.constant 0 : index
    %385 = vector.load %arg14[%c32_455, %c0_456] : memref<256x256xbf16, #tpu.memory_space<vmem>>, vector<8x128xbf16>
    tpu.vector_store %arg14[%c32_455, %c0_456], %384 {strides = array<i32>} : memref<256x256xbf16, #tpu.memory_space<vmem>>, vector<8x128xbf16>,
    %c0_457 = arith.constant 0 : index
    %c513_458 = arith.constant 513 : index
    %386 = vector.load %arg13[%c0_457, %c513_458] : memref<32x768xf32, #tpu.memory_space<vmem>>, vector<8x128xf32>
    %387 = arith.truncf %386 : vector<8x128xf32> to vector<8x128xbf16>
    %c32_459 = arith.constant 32 : index
    %c128_460 = arith.constant 128 : index
    %388 = vector.load %arg14[%c32_459, %c128_460] : memref<256x256xbf16, #tpu.memory_space<vmem>>, vector<8x128xbf16>
    tpu.vector_store %arg14[%c32_459, %c128_460], %387 {strides = array<i32>} : memref<256x256xbf16, #tpu.memory_space<vmem>>, vector<8x128xbf16>,
    %c0_461 = arith.constant 0 : index
    %c130_462 = arith.constant 130 : index
    %389 = vector.load %arg13[%c0_461, %c130_462] : memref<32x768xf32, #tpu.memory_space<vmem>>, vector<8x128xf32>
    %390 = arith.truncf %389 : vector<8x128xf32> to vector<8x128xbf16>
    %c40_463 = arith.constant 40 : index
    %c0_464 = arith.constant 0 : index
    %391 = vector.load %arg14[%c40_463, %c0_464] : memref<256x256xbf16, #tpu.memory_space<vmem>>, vector<8x128xbf16>
    tpu.vector_store %arg14[%c40_463, %c0_464], %390 {strides = array<i32>} : memref<256x256xbf16, #tpu.memory_space<vmem>>, vector<8x128xbf16>,
    %c0_465 = arith.constant 0 : index
    %c514_466 = arith.constant 514 : index
    %392 = vector.load %arg13[%c0_465, %c514_466] : memref<32x768xf32, #tpu.memory_space<vmem>>, vector<8x128xf32>
    %393 = arith.truncf %392 : vector<8x128xf32> to vector<8x128xbf16>
    %c40_467 = arith.constant 40 : index
    %c128_468 = arith.constant 128 : index
    %394 = vector.load %arg14[%c40_467, %c128_468] : memref<256x256xbf16, #tpu.memory_space<vmem>>, vector<8x128xbf16>
    tpu.vector_store %arg14[%c40_467, %c128_468], %393 {strides = array<i32>} : memref<256x256xbf16, #tpu.memory_space<vmem>>, vector<8x128xbf16>,
    %c0_469 = arith.constant 0 : index
    %c131_470 = arith.constant 131 : index
    %395 = vector.load %arg13[%c0_469, %c131_470] : memref<32x768xf32, #tpu.memory_space<vmem>>, vector<8x128xf32>
    %396 = arith.truncf %395 : vector<8x128xf32> to vector<8x128xbf16>
    %c48_471 = arith.constant 48 : index
    %c0_472 = arith.constant 0 : index
    %397 = vector.load %arg14[%c48_471, %c0_472] : memref<256x256xbf16, #tpu.memory_space<vmem>>, vector<8x128xbf16>
    tpu.vector_store %arg14[%c48_471, %c0_472], %396 {strides = array<i32>} : memref<256x256xbf16, #tpu.memory_space<vmem>>, vector<8x128xbf16>,
    %c0_473 = arith.constant 0 : index
    %c515_474 = arith.constant 515 : index
    %398 = vector.load %arg13[%c0_473, %c515_474] : memref<32x768xf32, #tpu.memory_space<vmem>>, vector<8x128xf32>
    %399 = arith.truncf %398 : vector<8x128xf32> to vector<8x128xbf16>
    %c48_475 = arith.constant 48 : index
    %c128_476 = arith.constant 128 : index
    %400 = vector.load %arg14[%c48_475, %c128_476] : memref<256x256xbf16, #tpu.memory_space<vmem>>, vector<8x128xbf16>
    tpu.vector_store %arg14[%c48_475, %c128_476], %399 {strides = array<i32>} : memref<256x256xbf16, #tpu.memory_space<vmem>>, vector<8x128xbf16>,
    %c0_477 = arith.constant 0 : index
    %c132_478 = arith.constant 132 : index
    %401 = vector.load %arg13[%c0_477, %c132_478] : memref<32x768xf32, #tpu.memory_space<vmem>>, vector<8x128xf32>
    %402 = arith.truncf %401 : vector<8x128xf32> to vector<8x128xbf16>
    %c56_479 = arith.constant 56 : index
    %c0_480 = arith.constant 0 : index
    %403 = vector.load %arg14[%c56_479, %c0_480] : memref<256x256xbf16, #tpu.memory_space<vmem>>, vector<8x128xbf16>
    tpu.vector_store %arg14[%c56_479, %c0_480], %402 {strides = array<i32>} : memref<256x256xbf16, #tpu.memory_space<vmem>>, vector<8x128xbf16>,
    %c0_481 = arith.constant 0 : index
    %c516_482 = arith.constant 516 : index
    %404 = vector.load %arg13[%c0_481, %c516_482] : memref<32x768xf32, #tpu.memory_space<vmem>>, vector<8x128xf32>
    %405 = arith.truncf %404 : vector<8x128xf32> to vector<8x128xbf16>
    %c56_483 = arith.constant 56 : index
    %c128_484 = arith.constant 128 : index
    %406 = vector.load %arg14[%c56_483, %c128_484] : memref<256x256xbf16, #tpu.memory_space<vmem>>, vector<8x128xbf16>
    tpu.vector_store %arg14[%c56_483, %c128_484], %405 {strides = array<i32>} : memref<256x256xbf16, #tpu.memory_space<vmem>>, vector<8x128xbf16>,
    %c0_485 = arith.constant 0 : index
    %c0_486 = arith.constant 0 : index
    %407 = vector.load %arg14[%c0_485, %c0_486] : memref<256x256xbf16, #tpu.memory_space<vmem>>, vector<64x256xbf16>
    %c2 = arith.constant 2 : index
    %c0_487 = arith.constant 0 : index
    %c0_488 = arith.constant 0 : index
    %408 = vector.load %arg8[%c2, %c0_487, %c0_488] : memref<3x24x64xbf16, #tpu.memory_space<vmem>>, vector<1x24x64xbf16>
    %409 = vector.shape_cast %408 : vector<1x24x64xbf16> to vector<24x64xbf16>
    %cst_489 = arith.constant dense<0.000000e+00> : vector<24x256xf32>
    %410 = tpu.matmul %409, %407, %cst_489 {dimension_numbers = #tpu.dot_dimension_numbers<[1], [0], [0], [1], [0, 0, 1, 1], [], []>} : vector<24x64xbf16>, vector<64x256xbf16>, vector<24x256xf32> -> vector<24x256xf32>
    %c64_490 = arith.constant 64 : index
    %c0_491 = arith.constant 0 : index
    %411 = vector.load %arg11[%c64_490, %c0_491] : memref<104x1xf32, #tpu.memory_space<vmem>>, vector<24x1xf32>
    %c88 = arith.constant 88 : index
    %c0_492 = arith.constant 0 : index
    %412 = vector.load %arg11[%c88, %c0_492] : memref<104x1xf32, #tpu.memory_space<vmem>>, vector<8x1xf32>
    %413 = vector.broadcast %411 : vector<24x1xf32> to vector<24x256xf32>
    %414 = arith.addf %410, %413 : vector<24x256xf32>
    %cst_493 = arith.constant 0.000000e+00 : f32
    %415 = vector.broadcast %cst_493 : f32 to vector<24x256xf32>
    %416 = arith.maximumf %414, %415 : vector<24x256xf32>
    %417 = vector.extract_strided_slice %416 {offsets = [0, 0], sizes = [24, 128], strides = [1, 1]} : vector<24x256xf32> to vector<24x128xf32>
    %c0_494 = arith.constant 0 : index
    %c128_495 = arith.constant 128 : index
    %418 = vector.load %arg13[%c0_494, %c128_495] : memref<32x768xf32, #tpu.memory_space<vmem>>, vector<24x128xf32>
    tpu.vector_store %arg13[%c0_494, %c128_495], %417 {strides = array<i32>} : memref<32x768xf32, #tpu.memory_space<vmem>>, vector<24x128xf32>,
    %419 = vector.extract_strided_slice %416 {offsets = [0, 128], sizes = [24, 128], strides = [1, 1]} : vector<24x256xf32> to vector<24x128xf32>
    %c0_496 = arith.constant 0 : index
    %c512_497 = arith.constant 512 : index
    %420 = vector.load %arg13[%c0_496, %c512_497] : memref<32x768xf32, #tpu.memory_space<vmem>>, vector<24x128xf32>
    tpu.vector_store %arg13[%c0_496, %c512_497], %419 {strides = array<i32>} : memref<32x768xf32, #tpu.memory_space<vmem>>, vector<24x128xf32>,
    %421 = vector.broadcast %412 : vector<8x1xf32> to vector<8x256xf32>
    %422 = arith.addf %354, %421 : vector<8x256xf32>
    %cst_498 = arith.constant 0.000000e+00 : f32
    %423 = vector.broadcast %cst_498 : f32 to vector<8x256xf32>
    %424 = arith.maximumf %422, %423 : vector<8x256xf32>
    %425 = vector.extract_strided_slice %424 {offsets = [0, 0], sizes = [8, 128], strides = [1, 1]} : vector<8x256xf32> to vector<8x128xf32>
    %c24_499 = arith.constant 24 : index
    %c128_500 = arith.constant 128 : index
    %426 = vector.load %arg13[%c24_499, %c128_500] : memref<32x768xf32, #tpu.memory_space<vmem>>, vector<8x128xf32>
    tpu.vector_store %arg13[%c24_499, %c128_500], %425 {strides = array<i32>} : memref<32x768xf32, #tpu.memory_space<vmem>>, vector<8x128xf32>,
    %427 = vector.extract_strided_slice %424 {offsets = [0, 128], sizes = [8, 128], strides = [1, 1]} : vector<8x256xf32> to vector<8x128xf32>
    %c24_501 = arith.constant 24 : index
    %c512_502 = arith.constant 512 : index
    %428 = vector.load %arg13[%c24_501, %c512_502] : memref<32x768xf32, #tpu.memory_space<vmem>>, vector<8x128xf32>
    tpu.vector_store %arg13[%c24_501, %c512_502], %427 {strides = array<i32>} : memref<32x768xf32, #tpu.memory_space<vmem>>, vector<8x128xf32>,
    %c0_503 = arith.constant 0 : index
    %c128_504 = arith.constant 128 : index
    %429 = vector.load %arg13[%c0_503, %c128_504] : memref<32x768xf32, #tpu.memory_space<vmem>>, vector<32x128xf32>
    %c0_505 = arith.constant 0 : index
    %c512_506 = arith.constant 512 : index
    %430 = vector.load %arg13[%c0_505, %c512_506] : memref<32x768xf32, #tpu.memory_space<vmem>>, vector<32x128xf32>
    %431 = tpu.concatenate %429, %430 in 1 : vector<32x128xf32>, vector<32x128xf32> -> vector<32x256xf32>
    %c0_507 = arith.constant 0 : index
    %c129_508 = arith.constant 129 : index
    %432 = vector.load %arg13[%c0_507, %c129_508] : memref<32x768xf32, #tpu.memory_space<vmem>>, vector<32x128xf32>
    %c0_509 = arith.constant 0 : index
    %c513_510 = arith.constant 513 : index
    %433 = vector.load %arg13[%c0_509, %c513_510] : memref<32x768xf32, #tpu.memory_space<vmem>>, vector<32x128xf32>
    %434 = tpu.concatenate %432, %433 in 1 : vector<32x128xf32>, vector<32x128xf32> -> vector<32x256xf32>
    %435 = arith.addf %431, %434 : vector<32x256xf32>
    %cst_511 = arith.constant 5.000000e-01 : f32
    %436 = vector.broadcast %cst_511 : f32 to vector<32x256xf32>
    %437 = arith.mulf %435, %436 : vector<32x256xf32>
    %c0_512 = arith.constant 0 : index
    %c0_513 = arith.constant 0 : index
    %438 = vector.load %arg9[%c0_512, %c0_513] : memref<8x32xbf16, #tpu.memory_space<vmem>>, vector<8x32xbf16>
    %439 = arith.truncf %437 : vector<32x256xf32> to vector<32x256xbf16>
    %cst_514 = arith.constant dense<0.000000e+00> : vector<8x256xf32>
    %440 = tpu.matmul %438, %439, %cst_514 {dimension_numbers = #tpu.dot_dimension_numbers<[1], [0], [0], [1], [0, 0, 1, 1], [], []>} : vector<8x32xbf16>, vector<32x256xbf16>, vector<8x256xf32> -> vector<8x256xf32>
    %c96_515 = arith.constant 96 : index
    %c0_516 = arith.constant 0 : index
    %441 = vector.load %arg11[%c96_515, %c0_516] : memref<104x1xf32, #tpu.memory_space<vmem>>, vector<8x1xf32>
    %442 = vector.broadcast %441 : vector<8x1xf32> to vector<8x256xf32>
    %443 = arith.addf %440, %442 : vector<8x256xf32>
    %cst_517 = arith.constant 0.000000e+00 : f32
    %444 = vector.broadcast %cst_517 : f32 to vector<8x256xf32>
    %445 = arith.maximumf %443, %444 : vector<8x256xf32>
    %446 = vector.extract_strided_slice %445 {offsets = [0, 0], sizes = [8, 128], strides = [1, 1]} : vector<8x256xf32> to vector<8x128xf32>
    %c0_518 = arith.constant 0 : index
    %c128_519 = arith.constant 128 : index
    %447 = vector.load %arg13[%c0_518, %c128_519] : memref<32x768xf32, #tpu.memory_space<vmem>>, vector<8x128xf32>
    tpu.vector_store %arg13[%c0_518, %c128_519], %446 {strides = array<i32>} : memref<32x768xf32, #tpu.memory_space<vmem>>, vector<8x128xf32>,
    %448 = vector.extract_strided_slice %445 {offsets = [0, 128], sizes = [8, 128], strides = [1, 1]} : vector<8x256xf32> to vector<8x128xf32>
    %c0_520 = arith.constant 0 : index
    %c512_521 = arith.constant 512 : index
    %449 = vector.load %arg13[%c0_520, %c512_521] : memref<32x768xf32, #tpu.memory_space<vmem>>, vector<8x128xf32>
    tpu.vector_store %arg13[%c0_520, %c512_521], %448 {strides = array<i32>} : memref<32x768xf32, #tpu.memory_space<vmem>>, vector<8x128xf32>,
    %c0_522 = arith.constant 0 : index
    %c129_523 = arith.constant 129 : index
    %450 = vector.load %arg13[%c0_522, %c129_523] : memref<32x768xf32, #tpu.memory_space<vmem>>, vector<8x128xf32>
    %c0_524 = arith.constant 0 : index
    %c513_525 = arith.constant 513 : index
    %451 = vector.load %arg13[%c0_524, %c513_525] : memref<32x768xf32, #tpu.memory_space<vmem>>, vector<8x128xf32>
    %452 = tpu.concatenate %450, %451 in 1 : vector<8x128xf32>, vector<8x128xf32> -> vector<8x256xf32>
    %453 = arith.maximumf %445, %452 : vector<8x256xf32>
    %454 = arith.truncf %453 : vector<8x256xf32> to vector<8x256xbf16>
    %c0_526 = arith.constant 0 : index
    %c0_527 = arith.constant 0 : index
    %455 = vector.load %arg10[%c0_526, %c0_527] : memref<256x2xbf16, #tpu.memory_space<vmem>>, vector<256x2xbf16>
    %cst_528 = arith.constant dense<0.000000e+00> : vector<8x2xf32>
    %456 = tpu.matmul %454, %455, %cst_528 {dimension_numbers = #tpu.dot_dimension_numbers<[1], [0], [0], [1], [0, 0, 1, 1], [], []>} : vector<8x256xbf16>, vector<256x2xbf16>, vector<8x2xf32> -> vector<8x2xf32>
    %c0_529 = arith.constant 0 : index
    %c0_530 = arith.constant 0 : index
    %c0_531 = arith.constant 0 : index
    %457 = vector.load %arg12[%c0_529, %c0_530, %c0_531] : memref<1x8x2xf32, #tpu.memory_space<vmem>>, vector<1x8x2xf32>
    %458 = vector.shape_cast %457 : vector<1x8x2xf32> to vector<8x2xf32>
    %459 = vector.shape_cast %456 : vector<8x2xf32> to vector<1x8x2xf32>
    tpu.vector_store %arg12[%c0_529, %c0_530, %c0_531], %459 {strides = array<i32>} : memref<1x8x2xf32, #tpu.memory_space<vmem>>, vector<1x8x2xf32>,
    return
  }
  func.func @transform_0(%arg0: i32) -> (i32, i32, i32, i32) {
    %c0_i32 = arith.constant 0 : i32
    %c0_i32_0 = arith.constant 0 : i32
    %c0_i32_1 = arith.constant 0 : i32
    %c0_i32_2 = arith.constant 0 : i32
    return %arg0, %c0_i32, %c0_i32_0, %c0_i32_1 : i32, i32, i32, i32
  }
  func.func @transform_1(%arg0: i32) -> (i32, i32) {
    %c0_i32 = arith.constant 0 : i32
    %c0_i32_0 = arith.constant 0 : i32
    %c0_i32_1 = arith.constant 0 : i32
    return %c0_i32, %c0_i32_0 : i32, i32
  }
  func.func @transform_2(%arg0: i32) -> (i32, i32) {
    %c0_i32 = arith.constant 0 : i32
    %c0_i32_0 = arith.constant 0 : i32
    %c0_i32_1 = arith.constant 0 : i32
    return %c0_i32, %c0_i32_0 : i32, i32
  }
  func.func @transform_3(%arg0: i32) -> (i32, i32) {
    %c0_i32 = arith.constant 0 : i32
    %c0_i32_0 = arith.constant 0 : i32
    %c0_i32_1 = arith.constant 0 : i32
    return %c0_i32, %c0_i32_0 : i32, i32
  }
  func.func @transform_4(%arg0: i32) -> (i32, i32) {
    %c0_i32 = arith.constant 0 : i32
    %c0_i32_0 = arith.constant 0 : i32
    %c0_i32_1 = arith.constant 0 : i32
    return %c0_i32, %c0_i32_0 : i32, i32
  }
  func.func @transform_5(%arg0: i32) -> (i32, i32) {
    %c0_i32 = arith.constant 0 : i32
    %c0_i32_0 = arith.constant 0 : i32
    %c0_i32_1 = arith.constant 0 : i32
    return %c0_i32, %c0_i32_0 : i32, i32
  }
  func.func @transform_6(%arg0: i32) -> (i32, i32) {
    %c0_i32 = arith.constant 0 : i32
    %c0_i32_0 = arith.constant 0 : i32
    %c0_i32_1 = arith.constant 0 : i32
    return %c0_i32, %c0_i32_0 : i32, i32
  }
  func.func @transform_7(%arg0: i32) -> (i32, i32, i32) {
    %c0_i32 = arith.constant 0 : i32
    %c0_i32_0 = arith.constant 0 : i32
    %c0_i32_1 = arith.constant 0 : i32
    %c0_i32_2 = arith.constant 0 : i32
    return %c0_i32, %c0_i32_0, %c0_i32_1 : i32, i32, i32
  }
  func.func @transform_8(%arg0: i32) -> (i32, i32) {
    %c0_i32 = arith.constant 0 : i32
    %c0_i32_0 = arith.constant 0 : i32
    %c0_i32_1 = arith.constant 0 : i32
    return %c0_i32, %c0_i32_0 : i32, i32
  }
  func.func @transform_9(%arg0: i32) -> (i32, i32) {
    %c0_i32 = arith.constant 0 : i32
    %c0_i32_0 = arith.constant 0 : i32
    %c0_i32_1 = arith.constant 0 : i32
    return %c0_i32, %c0_i32_0 : i32, i32
  }
  func.func @transform_10(%arg0: i32) -> (i32, i32) {
    %c0_i32 = arith.constant 0 : i32
    %c0_i32_0 = arith.constant 0 : i32
    %c0_i32_1 = arith.constant 0 : i32
    return %c0_i32, %c0_i32_0 : i32, i32
  }
  func.func @transform_11(%arg0: i32) -> (i32, i32, i32) {
    %c0_i32 = arith.constant 0 : i32
    %c0_i32_0 = arith.constant 0 : i32
    %c0_i32_1 = arith.constant 0 : i32
    return %arg0, %c0_i32, %c0_i32_0 : i32, i32, i32
  }
}

</mosaic_0001>

<bundles_post_ra>
// kernel: inception_time_forward.1
= control target key start
LH: loop header
LB: loop body
LE: loop exit
PB: predicated region body
PF: predicated region fallthrough
CT: control target
= control target key end

     0   :  { %s4973_s17 = smov 0   ;;  %s6007_s0 = inlined_call_operand.vmem [shape: f32[2,2,8,128], index: 0, kind: input, shape index: {}]   ;;  %s6008_s1 = inlined_call_operand.vmem [shape: bf16[8,64], index: 1, kind: input, shape index: {}]   ;;  %s6009_s2 = inlined_call_operand.vmem [shape: bf16[8,256], index: 2, kind: input, shape index: {}]   ;;  %s6010_s3 = inlined_call_operand.vmem [shape: bf16[8,256], index: 3, kind: input, shape index: {}]   ;;  %s6011_s4 = inlined_call_operand.vmem [shape: bf16[8,8], index: 4, kind: input, shape index: {}]   ;;  %s6012_s5 = inlined_call_operand.vmem [shape: bf16[8,32], index: 5, kind: input, shape index: {}]   ;;  %s6013_s6 = inlined_call_operand.vmem [shape: bf16[8,32], index: 6, kind: input, shape index: {}]   ;;  %s6014_s7 = inlined_call_operand.vmem [shape: bf16[3,24,64], index: 7, kind: input, shape index: {}]   ;;  %s6015_s8 = inlined_call_operand.vmem [shape: bf16[8,32], index: 8, kind: input, shape index: {}]   ;;  %s6016_s9 = inlined_call_operand.vmem [shape: bf16[256,2], index: 9, kind: input, shape index: {}]   ;;  %s6017_s10 = inlined_call_operand.vmem [shape: f32[104,1], index: 10, kind: input, shape index: {}]   ;;  %s6018_s11 = inlined_call_operand.vmem [shape: f32[2,8,2], index: 11, kind: output, shape index: {}]  }
   0x1 LB: > { %s4046_s18 = sadd.s32 4294967295, %s4902_s17   ;;  %p4050_p0 = scmp.ge.s32.totalorder %s4902_s17, 1  ;;  %s4902_s17 = sphi %s4973_s17, %s21_s17  }
   0x2   : > { %p337_p1 = scmp.lt.s32.totalorder %s4902_s17, 3 }
   0x4   : > { %p338_p2 = pnand %p4050_p0, %p337_p1 }
   0x5   : > { %p376_p3 = scmp.lt.s32.totalorder (!%p338_p2), %s4046_s18, 1  ;;  %s4905_s23 = smov (!%p338_p2), 125  }
   0x6   : > { %341 = sbr.rel (%p338_p2) target bundleno = 2591 (0xa1f), region = 64  ;;  %s4906_s24 = smov (!%p338_p2), 127  }
   0x7   : > { %s4907_s25 = smov (!%p338_p2), 124   ;;  %s4908_s26 = smov (!%p338_p2), 126  }
   0x8   : > { %s4909_s27 = smov (!%p338_p2), 1   ;;  %s4910_s28 = smov (!%p338_p2), 2  }
   0x9   : > { %s4911_s29 = smov (!%p338_p2), 3  }
   0xb   : > { %vm391_vm0 = vcmask 31744   ;;  %v4904_v0 = vmov 0.0   ;;  %s6020_s18 = smov (!%p376_p3, %s4046_s18), 1  ;;  %vm386_vm1 = vcmask 1048552   ;;  %vm458_vm2 = vcmask 7168  }
   0xc   : > { %392 = vst.msk [vmem:[#allocation2 + $0x10] sm:$0xff] %vm391_vm0, %v4904_v0  ;;  %s4545_s19 = sshll.u32 %s6020_s18, 4  ;;  %vm416_vm3 = vcmask 23552   ;;  %vm527_vm4 = vcmask 1022976   ;;  %vm485_vm5 = vcmask 1039360   ;;  %vm548_vm6 = vcmask 1014784  }
   0xd   : > { %393 = vst.msk [vmem:[#allocation2 + $0x40] sm:$0xff] %vm391_vm0, %v4904_v0  ;;  %s380_s22 = scalar_lea.vmem %s6007_s0, %s4545_s19  ;;  %vm506_vm7 = vcmask 1031168   ;;  %vm437_vm8 = vcmask 15360   ;;  %vm611_vm9 = vcmask 523264   ;;  %vm975_vm10 = vcmask 1043456  }
   0xe   : > { %394 = vst.msk [vmem:[#allocation2 + $0x70] sm:$0xff] %vm391_vm0, %v4904_v0  ;;  %v4987_v1 = vld [vmem:[%s380_s22] sm:$0xff]  ;;  %v5009_v6 = vld [vmem:[%s380_s22 + $0x8] sm:$0xff]  ;;  %vm971_vm11 = vcmask 64512   ;;  %vm2307_vm12 = vcmask 261120  }
   0xf   : > { %395 = vst.msk [vmem:[#allocation2 + $0xa0] sm:$0xff] %vm391_vm0, %v4904_v0  ;;  %v4664_v11 = vpack.c.bf16 %v5009_v6, %v4987_v1 }
  0x10   : > { %400 = vst.msk [vmem:[#allocation2 + $0x28] sm:$0xff] %vm391_vm0, %v4904_v0 }
  0x11   : > { %401 = vst.msk [vmem:[#allocation2 + $0x58] sm:$0xff] %vm391_vm0, %v4904_v0 }
  0x12   : > { %402 = vst.msk [vmem:[#allocation2 + $0x88] sm:$0xff] %vm391_vm0, %v4904_v0 }
  0x13   : > { %v4989_v2 = vld [vmem:[#allocation2 + $0x10] sm:$0xff]  ;;  %403 = vst.msk [vmem:[#allocation2 + $0xb8] sm:$0xff] %vm391_vm0, %v4904_v0 }
  0x14   : > { %v522_v3 = vpack.c.bf16 %v4989_v2, %v4987_v1  ;;  %387 = vst.msk [vmem:[#allocation2] sm:$0xff] %vm386_vm1, %v4904_v0 }
  0x15   : > { %388 = vst.msk [vmem:[#allocation2 + $0x30] sm:$0xff] %vm386_vm1, %v4904_v0 }
  0x16   : > { %524 = vrot.lane.b32.xlu0 %v522_v3, %s4905_s23  ;;  %482 = vrot.lane.b32.xlu1 %v522_v3, %s4906_s24  ;;  %389 = vst.msk [vmem:[#allocation2 + $0x60] sm:$0xff] %vm386_vm1, %v4904_v0 }
  0x17   : > { %390 = vst.msk [vmem:[#allocation2 + $0x90] sm:$0xff] %vm386_vm1, %v4904_v0  ;;  %v5011_v7 = vld [vmem:[#allocation2 + $0x28] sm:$0xff] }
  0x18   : > { %396 = vst.msk [vmem:[#allocation2 + $0x18] sm:$0xff] %vm386_vm1, %v4904_v0  ;;  %v533_v8 = vpack.c.bf16 %v5011_v7, %v5009_v6 }
  0x19   : > { %397 = vst.msk [vmem:[#allocation2 + $0x48] sm:$0xff] %vm386_vm1, %v4904_v0 }
  0x1a   : > { %398 = vst.msk [vmem:[#allocation2 + $0x78] sm:$0xff] %vm386_vm1, %v4904_v0 }
  0x1b   : > { %v5002_v4 = vld [vmem:[#allocation2] sm:$0xff]  ;;  %399 = vst.msk [vmem:[#allocation2 + $0xa8] sm:$0xff] %vm386_vm1, %v4904_v0 }
  0x1c   : > { %v432_v5 = vpack.c.bf16 %v4987_v1, %v5002_v4  ;;  %4681 = vst [vmem:[#allocation3 + $0x18] sm:$0xff] %v4664_v11  }
  0x1e   : > { %545 = vrot.lane.b32.xlu0 %v522_v3, %s4907_s25  ;;  %503 = vrot.lane.b32.xlu1 %v522_v3, %s4908_s26 }
  0x1f   : > { %455 = vrot.lane.b32.xlu2 %v432_v5, %s4909_s27  ;;  %v5021_v9 = vld [vmem:[#allocation2 + $0x18] sm:$0xff] }
  0x20   : > { %v443_v10 = vpack.c.bf16 %v5009_v6, %v5021_v9 }
  0x23   : > { %v4549_v50 = vld [vmem:[#allocation3 + $0x14] sm:$0xf0] }
  0x26   : > { %535 = vrot.lane.b32.xlu1 %v533_v8, %s4905_s23  ;;  %434 = vrot.lane.b32.xlu0 %v432_v5, %s4910_s28 }
  0x27   : > { %413 = vrot.lane.b32.xlu2 %v432_v5, %s4911_s29 }
  0x2e   : > { %514 = vrot.lane.b32.xlu1 %v533_v8, %s4908_s26  ;;  %493 = vrot.lane.b32.xlu0 %v533_v8, %s4906_s24 }
  0x2f   : > { %556 = vrot.lane.b32.xlu2 %v533_v8, %s4907_s25  ;;  %v570_v8 = vld [vmem:[%s6008_s1] sm:$0xf] }
  0x36   : > { %445 = vrot.lane.b32.xlu1 %v443_v10, %s4910_s28  ;;  %424 = vrot.lane.b32.xlu0 %v443_v10, %s4911_s29 }
  0x37   : > { %466 = vrot.lane.b32.xlu2 %v443_v10, %s4909_s27 }
  0x79   : > { %v456_v12 = vpop.permute.xlu2 %455 }
  0x7a   : > { %v457_v13 = vrot.slane %v456_v12, 4 }
  0x7c   : > { %v459_v14 = vsel %vm458_vm2, %v456_v12, %v457_v13  ;;  %v4067_v13 = vld [vmem:[#allocation3 + $0x18] sm:$0xf0] }
  0x7d   : > { %461 = vst [vmem:[#allocation3 + $0x10] sm:$0xf] %v459_v14 }
  0x81   : > { %v414_v15 = vpop.permute.xlu2 %413 }
  0x82   : > { %v415_v16 = vrot.slane %v414_v15, 4 }
  0x84   : > { %v417_v17 = vsel %vm416_vm3, %v414_v15, %v415_v16  ;;  %v4065_v53 = vld [vmem:[#allocation3 + $0x10] sm:$0xf] }
  0x85   : > { %419 = vst [vmem:[#allocation3] sm:$0xf] %v417_v17  ;;  %v4066_v58 = vor.u32 %v4549_v50, %v4065_v53 }
  0x88   : > { %v525_v18 = vpop.permute.xlu0 %524  ;;  %v483_v19 = vpop.permute.xlu1 %482 }
  0x89   : > { %v526_v20 = vrot.slane %v525_v18, 4  ;;  %v484_v21 = vrot.slane %v483_v19, 4  ;;  %v557_v22 = vpop.permute.xlu2 %556 }
  0x8a   : > { %v558_v23 = vrot.slane %v557_v22, 4 }
  0x8b   : > { %v528_v24 = vsel %vm527_vm4, %v525_v18, %v526_v20  ;;  %v486_v25 = vsel %vm485_vm5, %v483_v19, %v484_v21 }
  0x8c   : > { %530 = vst [vmem:[#allocation3 + $0x30] sm:$0xf] %v528_v24  ;;  %v559_v26 = vsel %vm548_vm6, %v557_v22, %v558_v23  ;;  %v4057_v61 = vld [vmem:[#allocation3] sm:$0xf] }
  0x8d   : > { %488 = vst [vmem:[#allocation3 + $0x20] sm:$0xf] %v486_v25 }
  0x8e   : > { %561 = vst [vmem:[#allocation3 + $0x3c] sm:$0xf] %v559_v26 }
  0x90   : > { %v546_v27 = vpop.permute.xlu0 %545  ;;  %v504_v28 = vpop.permute.xlu1 %503 }
  0x91   : > { %v547_v29 = vrot.slane %v546_v27, 4  ;;  %v505_v30 = vrot.slane %v504_v28, 4  ;;  %v467_v31 = vpop.permute.xlu2 %466 }
  0x92   : > { %v468_v32 = vrot.slane %v467_v31, 4 }
  0x93   : > { %v549_v33 = vsel %vm548_vm6, %v546_v27, %v547_v29  ;;  %v507_v34 = vsel %vm506_vm7, %v504_v28, %v505_v30  ;;  %v4081_v42 = vld [vmem:[#allocation3 + $0x30] sm:$0xf]  ;;  %v4702_v30 = vpack.i.bf16 %v4987_v1, %v5002_v4 }
  0x94   : > { %551 = vst [vmem:[#allocation3 + $0x38] sm:$0xf] %v549_v33  ;;  %v469_v35 = vsel %vm458_vm2, %v467_v31, %v468_v32  ;;  %v4073_v46 = vld [vmem:[#allocation3 + $0x20] sm:$0xf]  ;;  %v4712_v31 = vpack.i.bf16 %v5009_v6, %v5021_v9  ;;  %v4707_v32 = vpack.i.bf16 %v4989_v2, %v4987_v1  ;;  %v4717_v33 = vpack.i.bf16 %v5011_v7, %v5009_v6 }
  0x95   : > { %509 = vst [vmem:[#allocation3 + $0x28] sm:$0xf] %v507_v34  ;;  %v4083_v54 = vld [vmem:[#allocation3 + $0x38] sm:$0xf0] }
  0x96   : > { %471 = vst [vmem:[#allocation3 + $0x14] sm:$0xf] %v469_v35 }
  0x98   : > { %v536_v36 = vpop.permute.xlu1 %535  ;;  %v435_v37 = vpop.permute.xlu0 %434 }
  0x99   : > { %v537_v38 = vrot.slane %v536_v36, 4  ;;  %v436_v39 = vrot.slane %v435_v37, 4 }
  0x9b   : > { %v538_v40 = vsel %vm527_vm4, %v536_v36, %v537_v38  ;;  %v438_v41 = vsel %vm437_vm8, %v435_v37, %v436_v39  ;;  %v4553_v43 = vld [vmem:[#allocation3 + $0x34] sm:$0xf0] }
  0x9c   : > { %540 = vst [vmem:[#allocation3 + $0x34] sm:$0xf] %v538_v40  ;;  %v4082_v44 = vor.u32 %v4553_v43, %v4081_v42  ;;  %v4551_v45 = vld [vmem:[#allocation3 + $0x24] sm:$0xf0] }
  0x9d   : > { %440 = vst [vmem:[#allocation3 + $0x8] sm:$0xf] %v438_v41  ;;  %v4074_v49 = vor.u32 %v4551_v45, %v4073_v46  ;;  %v4548_v15 = vld [vmem:[#allocation3 + $0x14] sm:$0xf] }
  0x9e   : > { %619 = vmatpush.bf16.msra.mxu0 %v4082_v44  ;;  %v4070_v17 = vor.u32 %v4548_v15, %v4067_v13 }
  0xa0   : > { %v515_v47 = vpop.permute.xlu1 %514  ;;  %v494_v48 = vpop.permute.xlu0 %493 }
  0xa1   : > { %v516_v51 = vrot.slane %v515_v47, 4  ;;  %v495_v52 = vrot.slane %v494_v48, 4 }
  0xa2   : > { %620 = vmatpush.bf16.msra.mxu0 %v4074_v49 }
  0xa3   : > { %v517_v55 = vsel %vm506_vm7, %v515_v47, %v516_v51  ;;  %v496_v56 = vsel %vm485_vm5, %v494_v48, %v495_v52  ;;  %v4552_v57 = vld [vmem:[#allocation3 + $0x34] sm:$0xf] }
  0xa4   : > { %519 = vst [vmem:[#allocation3 + $0x2c] sm:$0xf] %v517_v55  ;;  %v4086_v59 = vor.u32 %v4552_v57, %v4083_v54  ;;  %v4547_v60 = vld [vmem:[#allocation3 + $0x4] sm:$0xf0] }
  0xa5   : > { %498 = vst [vmem:[#allocation3 + $0x24] sm:$0xf] %v496_v56  ;;  %v4058_v0 = vor.u32 %v4547_v60, %v4057_v61 }
  0xa6   : > { %621 = vmatpush.bf16.msra.mxu0 %v4066_v58  ;;  %632 = vmatpush.bf16.msra.mxu1 %v4086_v59 }
  0xa8   : > { %v446_v62 = vpop.permute.xlu1 %445  ;;  %v425_v63 = vpop.permute.xlu0 %424 }
  0xa9   : > { %v447_v3 = vrot.slane %v446_v62, 4  ;;  %v426_v5 = vrot.slane %v425_v63, 4 }
  0xaa   : > { %622 = vmatpush.bf16.msra.mxu0 %v4058_v0 }
  0xab   : > { %v448_v10 = vsel %vm437_vm8, %v446_v62, %v447_v3  ;;  %v427_v11 = vsel %vm416_vm3, %v425_v63, %v426_v5  ;;  %v4075_v12 = vld [vmem:[#allocation3 + $0x28] sm:$0xf0] }
  0xac   : > { %450 = vst [vmem:[#allocation3 + $0xc] sm:$0xf] %v448_v10  ;;  %v4550_v14 = vld [vmem:[#allocation3 + $0x24] sm:$0xf] }
  0xad   : > { %429 = vst [vmem:[#allocation3 + $0x4] sm:$0xf] %v427_v11  ;;  %4087 = vmatmul.msk.bf16.vlgmr.msra.gmra.mxu0 %vm611_vm9, %v570_v8  ;;  %v4078_v16 = vor.u32 %v4550_v14, %v4075_v12 }
  0xaf   : > { %633 = vmatpush.bf16.msra.mxu1 %v4078_v16 }
  0xb3   : > { %634 = vmatpush.bf16.msra.mxu1 %v4070_v17  ;;  %v4059_v18 = vld [vmem:[#allocation3 + $0x8] sm:$0xf0] }
  0xb4   : > { %v4546_v19 = vld [vmem:[#allocation3 + $0x4] sm:$0xf] }
  0xb5   : > { %v4062_v20 = vor.u32 %v4546_v19, %v4059_v18  ;;  %v848_v18 = vld [vmem:[%s6017_s10 + $0x18] sm:$0xff] }
  0xb7   : > { %635 = vmatpush.bf16.msra.mxu1 %v4062_v20  ;;  %v4912_v20 = vmov 0  }
  0xb8   : > { %4723 = vset.pattern.permute.xlu0 %v4912_v20  ;;  %4724 = vset.pattern.permute.xlu1 %v4912_v20 }
  0xb9   : > { %4722 = vset.pattern.permute.xlu2 %v4912_v20 }
  0xba   : > { %4088 = vmatmul.msk.bf16.vlgmr.msra.gmra.mxu1 %vm611_vm9, %v570_v8 }
 0x12a   : > { %v624_v21 = vpop.f32.mrf.mxu0 }
 0x12b   : > { %v816_v22 = vpack.c.bf16 %v4989_v2, %v624_v21  ;;  %v730_v24 = vpack.c.bf16 %v624_v21, %v5002_v4 }
 0x12d   : > { %818 = vrot.lane.b32.xlu0 %v816_v22, %s4907_s25  ;;  %798 = vrot.lane.b32.xlu2 %v816_v22, %s4905_s23 }
 0x12e   : > { %758 = vrot.lane.b32.xlu1 %v816_v22, %s4906_s24 }
 0x132   : > { %v626_v23 = vpop.f32.mrf.mxu0 }
 0x135   : > { %778 = vrot.lane.b32.xlu2 %v816_v22, %s4908_s26  ;;  %732 = vrot.lane.b32.xlu0 %v730_v24, %s4909_s27 }
 0x136   : > { %692 = vrot.lane.b32.xlu1 %v730_v24, %s4911_s29 }
 0x137   : > { %v637_v25 = vpop.f32.mrf.mxu1 }
 0x138   : > { %v4669_v26 = vpack.c.bf16 %v637_v25, %v624_v21  ;;  %v826_v27 = vpack.c.bf16 %v5011_v7, %v637_v25  ;;  %v740_v29 = vpack.c.bf16 %v637_v25, %v5021_v9  ;;  %v5097_v25 = vld [vmem:[%s6014_s7] sm:$0xff] }
 0x13a   : > { %4682 = vst [vmem:[#allocation3 + $0x18] sm:$0xff] %v4669_v26  }
 0x13d   : > { %712 = vrot.lane.b32.xlu2 %v730_v24, %s4910_s28  ;;  %808 = vrot.lane.b32.xlu0 %v826_v27, %s4905_s23 }
 0x13e   : > { %828 = vrot.lane.b32.xlu1 %v826_v27, %s4907_s25 }
 0x13f   : > { %v639_v28 = vpop.f32.mrf.mxu1 }
 0x141   : > { %v4557_v14 = vld [vmem:[#allocation3 + $0x14] sm:$0xf0] }
 0x145   : > { %788 = vrot.lane.b32.xlu0 %v826_v27, %s4908_s26  ;;  %768 = vrot.lane.b32.xlu2 %v826_v27, %s4906_s24 }
 0x146   : > { %742 = vrot.lane.b32.xlu1 %v740_v29, %s4909_s27 }
 0x14d   : > { %722 = vrot.lane.b32.xlu0 %v740_v29, %s4910_s28  ;;  %702 = vrot.lane.b32.xlu2 %v740_v29, %s4911_s29 }
 0x14e   : > { %4703 = vrot.lane.b32.xlu1 %v4702_v30, %s4909_s27 }
 0x155   : > { %4713 = vrot.lane.b32.xlu0 %v4712_v31, %s4909_s27  ;;  %4708 = vrot.lane.b32.xlu2 %v4707_v32, %s4906_s24 }
 0x156   : > { %4718 = vrot.lane.b32.xlu1 %v4717_v33, %s4906_s24 }
 0x15d   : > { %968 = vperm.xlu0 %4723, %v848_v18  }
 0x187   : > { %v799_v34 = vpop.permute.xlu2 %798 }
 0x188   : > { %v800_v35 = vrot.slane %v799_v34, 4 }
 0x18a   : > { %v801_v36 = vsel %vm527_vm4, %v799_v34, %v800_v35 }
 0x18b   : > { %803 = vst [vmem:[#allocation3 + $0x30] sm:$0xf] %v801_v36 }
 0x18f   : > { %v779_v37 = vpop.permute.xlu2 %778 }
 0x190   : > { %v780_v38 = vrot.slane %v779_v37, 4 }
 0x192   : > { %v781_v39 = vsel %vm506_vm7, %v779_v37, %v780_v38  ;;  %v4119_v59 = vld [vmem:[#allocation3 + $0x30] sm:$0xf]  ;;  %v845_v38 = vld [vmem:[%s6017_s10] sm:$0xff] }
 0x193   : > { %783 = vst [vmem:[#allocation3 + $0x28] sm:$0xf] %v781_v39  ;;  %v847_v39 = vld [vmem:[%s6017_s10 + $0x10] sm:$0xff]  ;;  %851 = vperm.xlu1 %4724, %v845_v38  }
 0x194   : > { %861 = vperm.xlu2 %4722, %v847_v39  }
 0x197   : > { %v713_v2 = vpop.permute.xlu2 %712 }
 0x198   : > { %v714_v40 = vrot.slane %v713_v2, 4 }
 0x19a   : > { %v715_v41 = vsel %vm437_vm8, %v713_v2, %v714_v40  ;;  %v4559_v0 = vld [vmem:[#allocation3 + $0x24] sm:$0xf0] }
 0x19b   : > { %717 = vst [vmem:[#allocation3 + $0x8] sm:$0xf] %v715_v41  ;;  %v844_v41 = vld [vmem:[%s6014_s7 + $0x8] sm:$0xf] }
 0x19f   : > { %v819_v42 = vpop.permute.xlu0 %818  ;;  %v769_v43 = vpop.permute.xlu2 %768 }
 0x1a0   : > { %v820_v44 = vrot.slane %v819_v42, 4  ;;  %v759_v45 = vpop.permute.xlu1 %758  ;;  %v770_v46 = vrot.slane %v769_v43, 4 }
 0x1a1   : > { %v760_v47 = vrot.slane %v759_v45, 4 }
 0x1a2   : > { %v821_v48 = vsel %vm548_vm6, %v819_v42, %v820_v44  ;;  %v771_v49 = vsel %vm485_vm5, %v769_v43, %v770_v46  ;;  %v4555_v19 = vld [vmem:[#allocation3 + $0x4] sm:$0xf0] }
 0x1a3   : > { %823 = vst [vmem:[#allocation3 + $0x38] sm:$0xf] %v821_v48  ;;  %v761_v50 = vsel %vm485_vm5, %v759_v45, %v760_v47 }
 0x1a4   : > { %763 = vst [vmem:[#allocation3 + $0x20] sm:$0xf] %v761_v50  ;;  %v869_v50 = vunpack.c.l.b16 %v844_v41 }
 0x1a5   : > { %773 = vst [vmem:[#allocation3 + $0x24] sm:$0xf] %v771_v49 }
 0x1a7   : > { %v733_v51 = vpop.permute.xlu0 %732  ;;  %v703_v52 = vpop.permute.xlu2 %702 }
 0x1a8   : > { %v734_v53 = vrot.slane %v733_v51, 4  ;;  %v693_v54 = vpop.permute.xlu1 %692  ;;  %v704_v55 = vrot.slane %v703_v52, 4 }
 0x1a9   : > { %v694_v56 = vrot.slane %v693_v54, 4 }
 0x1aa   : > { %v735_v57 = vsel %vm458_vm2, %v733_v51, %v734_v53  ;;  %v705_v58 = vsel %vm416_vm3, %v703_v52, %v704_v55  ;;  %v4561_v60 = vld [vmem:[#allocation3 + $0x34] sm:$0xf0]  ;;  %v4105_v51 = vld [vmem:[#allocation3 + $0x18] sm:$0xf0]  ;;  %v846_v53 = vld [vmem:[%s6017_s10 + $0x8] sm:$0xff] }
 0x1ab   : > { %737 = vst [vmem:[#allocation3 + $0x10] sm:$0xf] %v735_v57  ;;  %v695_v61 = vsel %vm416_vm3, %v693_v54, %v694_v56  ;;  %v4120_v62 = vor.u32 %v4561_v60, %v4119_v59  ;;  %v4111_v63 = vld [vmem:[#allocation3 + $0x20] sm:$0xf]  ;;  %v871_v60 = vpack.c.b16 %v869_v50, %v869_v50  ;;  %856 = vperm.xlu2 %4722, %v846_v53  }
 0x1ac   : > { %697 = vst [vmem:[#allocation3] sm:$0xf] %v695_v61  ;;  %v4112_v5 = vor.u32 %v4559_v0, %v4111_v63  ;;  %v4558_v43 = vld [vmem:[#allocation3 + $0x24] sm:$0xf] }
 0x1ad   : > { %707 = vst [vmem:[#allocation3 + $0x4] sm:$0xf] %v705_v58  ;;  %922 = vmatpush.bf16.msra.mxu2 %v4120_v62 }
 0x1af   : > { %v809_v3 = vpop.permute.xlu0 %808  ;;  %v4709_v32 = vpop.permute.xlu2 %4708 }
 0x1b0   : > { %v829_v8 = vpop.permute.xlu1 %828  ;;  %v810_v10 = vrot.slane %v809_v3, 4  ;;  %v4711_v34 = vunpack.i.h.bf16 %v4709_v32  ;;  %v4710_v35 = vunpack.i.l.bf16 %v4709_v32 }
 0x1b1   : > { %v830_v11 = vrot.slane %v829_v8, 4  ;;  %923 = vmatpush.bf16.msra.mxu2 %v4112_v5 }
 0x1b2   : > { %v811_v12 = vsel %vm527_vm4, %v809_v3, %v810_v10  ;;  %v4103_v13 = vld [vmem:[#allocation3 + $0x10] sm:$0xf]  ;;  %v672_v47 = vsel %vm485_vm5, %v4710_v35, %v4711_v34 }
 0x1b3   : > { %v831_v15 = vsel %vm548_vm6, %v829_v8, %v830_v11  ;;  %813 = vst [vmem:[#allocation3 + $0x34] sm:$0xf] %v811_v12  ;;  %v4104_v16 = vor.u32 %v4557_v14, %v4103_v13  ;;  %v4095_v17 = vld [vmem:[#allocation3] sm:$0xf] }
 0x1b4   : > { %833 = vst [vmem:[#allocation3 + $0x3c] sm:$0xf] %v831_v15  ;;  %v4096_v22 = vor.u32 %v4555_v19, %v4095_v17  ;;  %v4554_v63 = vld [vmem:[#allocation3 + $0x4] sm:$0xf]  ;;  %v683_v8 = vld [vmem:[%s6011_s4] sm:$0xf] }
 0x1b5   : > { %924 = vmatpush.bf16.msra.mxu2 %v4104_v16 }
 0x1b7   : > { %v789_v21 = vpop.permute.xlu0 %788 }
 0x1b8   : > { %v790_v23 = vrot.slane %v789_v21, 4  ;;  %v743_v24 = vpop.permute.xlu1 %742 }
 0x1b9   : > { %v744_v26 = vrot.slane %v743_v24, 4  ;;  %925 = vmatpush.bf16.msra.mxu2 %v4096_v22 }
 0x1ba   : > { %v791_v27 = vsel %vm506_vm7, %v789_v21, %v790_v23  ;;  %v4560_v28 = vld [vmem:[#allocation3 + $0x34] sm:$0xf] }
 0x1bb   : > { %793 = vst [vmem:[#allocation3 + $0x2c] sm:$0xf] %v791_v27  ;;  %v745_v29 = vsel %vm458_vm2, %v743_v24, %v744_v26  ;;  %v4121_v30 = vld [vmem:[#allocation3 + $0x38] sm:$0xf0]  ;;  %v1523_v24 = vld [vmem:[#allocation2 + $0xa0] sm:$0xff]  ;;  %v1178_v26 = vld [vmem:[#allocation2 + $0x90] sm:$0xff] }
 0x1bc   : > { %747 = vst [vmem:[#allocation3 + $0x14] sm:$0xf] %v745_v29  ;;  %v4124_v31 = vor.u32 %v4560_v28, %v4121_v30  ;;  %4125 = vmatmul.msk.bf16.vlgmr.msra.gmra.mxu2 %vm611_vm9, %v5097_v25 }
 0x1be   : > { %940 = vmatpush.bf16.msra.mxu3 %v4124_v31 }
 0x1bf   : > { %v723_v33 = vpop.permute.xlu0 %722 }
 0x1c0   : > { %v4704_v36 = vpop.permute.xlu1 %4703  ;;  %v724_v37 = vrot.slane %v723_v33, 4 }
 0x1c1   : > { %v4706_v2 = vunpack.i.h.bf16 %v4704_v36  ;;  %v4705_v40 = vunpack.i.l.bf16 %v4704_v36 }
 0x1c2   : > { %v725_v42 = vsel %vm437_vm8, %v723_v33, %v724_v37  ;;  %v4113_v44 = vld [vmem:[#allocation3 + $0x28] sm:$0xf0] }
 0x1c3   : > { %727 = vst [vmem:[#allocation3 + $0xc] sm:$0xf] %v725_v42  ;;  %v4116_v45 = vor.u32 %v4558_v43, %v4113_v44  ;;  %v652_v46 = vsel %vm458_vm2, %v4705_v40, %v4706_v2  ;;  %v4556_v48 = vld [vmem:[#allocation3 + $0x14] sm:$0xf]  ;;  %v1483_v40 = vld [vmem:[#allocation2 + $0xb8] sm:$0xff] }
 0x1c4   : > { %v662_v49 = vmax.f32 %v652_v46, %v4987_v1  ;;  %v4108_v55 = vor.u32 %v4556_v48, %v4105_v51  ;;  %v1218_v51 = vld [vmem:[#allocation2 + $0xa8] sm:$0xff] }
 0x1c5   : > { %941 = vmatpush.bf16.msra.mxu3 %v4116_v45 }
 0x1c6   : > { %v681_v52 = vmax.f32 %v662_v49, %v672_v47 }
 0x1c7   : > { %v4714_v54 = vpop.permute.xlu0 %4713 }
 0x1c8   : > { %v4716_v56 = vunpack.i.h.bf16 %v4714_v54  ;;  %v4715_v57 = vunpack.i.l.bf16 %v4714_v54  ;;  %v4719_v58 = vpop.permute.xlu1 %4718  ;;  %v684_v59 = vpack.c.bf16 %v681_v52, %v681_v52 }
 0x1c9   : > { %v4721_v61 = vunpack.i.h.bf16 %v4719_v58  ;;  %v4720_v62 = vunpack.i.l.bf16 %v4719_v58  ;;  %942 = vmatpush.bf16.msra.mxu3 %v4108_v55 }
 0x1ca   : > { %v977_v1 = vsel %vm975_vm10, %v684_v59, 0  ;;  %v4097_v0 = vld [vmem:[#allocation3 + $0x8] sm:$0xf0]  ;;  %v660_v3 = vsel %vm458_vm2, %v4715_v57, %v4716_v56 }
 0x1cb   : > { %989 = vmatpush.bf16.msrb.mxu0 %v977_v1  ;;  %v4100_v5 = vor.u32 %v4554_v63, %v4097_v0  ;;  %v663_v10 = vmax.f32 %v660_v3, %v5009_v6  ;;  %v679_v11 = vsel %vm485_vm5, %v4720_v62, %v4721_v61  ;;  %v1517_v3 = vld [vmem:[#allocation2 + $0x10] sm:$0xff] }
 0x1cc   : > { %4126 = vmatmul.msk.bf16.gmra.mxu2 %vm611_vm9, %v871_v60 }
 0x1cd   : > { %943 = vmatpush.bf16.msra.mxu3 %v4100_v5  ;;  %v682_v12 = vmax.f32 %v663_v10, %v679_v11 }
 0x1ce   : > { %4129 = vmatmul.msk.bf16.vlgmr.msrb.gmra.mxu0 %vm971_vm11, %v683_v8 }
 0x1cf   : > { %v685_v13 = vpack.c.bf16 %v682_v12, %v682_v12  ;;  %v969_v17 = vpop.permute.xlu0 %968 }
 0x1d0   : > { %4127 = vmatmul.msk.bf16.vlgmr.msra.gmra.mxu3 %vm611_vm9, %v5097_v25 }
 0x1d1   : > { %v980_v14 = vsel %vm975_vm10, %v685_v13, 0 }
 0x1d2   : > { %1002 = vmatpush.bf16.msrb.mxu1 %v980_v14 }
 0x1d5   : > { %4130 = vmatmul.msk.bf16.vlgmr.msrb.gmra.mxu1 %vm971_vm11, %v683_v8 }
 0x1e0   : > { %4128 = vmatmul.msk.bf16.gmra.mxu3 %vm611_vm9, %v871_v60 }
 0x1ee   : > { %v5131_v16 = vpop.permute.xlu2 %861 }
 0x205   : > { %v852_v18 = vpop.permute.xlu1 %851  ;;  %v857_v21 = vpop.permute.xlu2 %856 }
 0x23f   : > { %v927_v15 = vpop.f32.mrf.mxu2 }
 0x240   : > { %v928_v20 = vadd.f32 %v927_v15, %v852_v18 }
 0x242   : > { %v5133_v25 = vmax.f32 %v928_v20, 0.0  ;;  %v1519_v20 = vld [vmem:[#allocation2 + $0x40] sm:$0xff] }
 0x244   : > { %960 = vst [vmem:[#allocation2 + $0x8] sm:$0xff] %v5133_v25  ;;  %v1256_v34 = vpack.c.bf16 %v5133_v25, %v5133_v25  ;;  %v1524_v8 = vpack.c.bf16 %v1517_v3, %v5133_v25 }
 0x246   : > { %1260 = vst [vmem:[#allocation3 + $0x60] sm:$0xf] %v1256_v34 }
 0x247   : > { %v929_v6 = vpop.f32.mrf.mxu2 }
 0x248   : > { %v930_v23 = vadd.f32 %v929_v6, %v857_v21  ;;  %v1180_v6 = vpack.c.bf16 %v5133_v25, %v5002_v4 }
 0x24a   : > { %v5135_v28 = vmax.f32 %v930_v23, 0.0  ;;  %v1559_v23 = vld [vmem:[#allocation2 + $0x58] sm:$0xff] }
 0x24b   : > { %v991_v19 = vpop.f32.mrf.mxu0 }
 0x24c   : > { %v992_v22 = vadd.f32 %v991_v19, %v969_v17  ;;  %961 = vst [vmem:[#allocation2 + $0x38] sm:$0xff] %v5135_v28  ;;  %v1257_v35 = vpack.c.bf16 %v5135_v28, %v5135_v28 }
 0x24d   : > { %v4181_v55 = vld [vmem:[#allocation3 + $0x60] sm:$0xf] }
 0x24e   : > { %v1008_v27 = vmax.f32 %v992_v22, 0.0  ;;  %1261 = vst [vmem:[#allocation3 + $0x68] sm:$0xf] %v1257_v35  ;;  %v1525_v22 = vpack.c.bf16 %v1519_v20, %v5135_v28 }
 0x24f   : > { %v932_v29 = vpop.f32.mrf.mxu2 }
 0x250   : > { %1010 = vst [vmem:[#allocation2 + $0x98] sm:$0xff] %v1008_v27  ;;  %v1259_v30 = vpack.c.bf16 %v1008_v27, %v1008_v27  ;;  %v933_v31 = vadd.f32 %v932_v29, %v5131_v16  ;;  %v1527_v32 = vpack.c.bf16 %v1523_v24, %v1008_v27  ;;  %v1183_v33 = vpack.c.bf16 %v1008_v27, %v1178_v26  ;;  %v1174_v24 = vld [vmem:[#allocation2 + $0x30] sm:$0xff]  ;;  %v1214_v27 = vld [vmem:[#allocation2 + $0x48] sm:$0xff] }
 0x252   : > { %1263 = vst [vmem:[#allocation3 + $0x78] sm:$0xf] %v1259_v30  ;;  %v1004_v36 = vpop.f32.mrf.mxu1  ;;  %v5144_v37 = vmax.f32 %v933_v31, 0.0  ;;  %1538 = vrot.lane.b32.xlu2 %v1527_v32, %s4907_s25  ;;  %1194 = vrot.lane.b32.xlu0 %v1183_v33, %s4909_s27  ;;  %v5240_v31 = vld [vmem:[#allocation2 + $0x60] sm:$0xff] }
 0x253   : > { %v1005_v38 = vadd.f32 %v1004_v36, %v969_v17  ;;  %v993_v39 = vpop.f32.mrf.mxu0  ;;  %v945_v2 = vpop.f32.mrf.mxu3  ;;  %1114 = vrot.lane.b32.xlu1 %v1183_v33, %s4910_s28  ;;  %v5197_v17 = vld [vmem:[#allocation2 + $0x18] sm:$0xff] }
 0x254   : > { %962 = vst [vmem:[#allocation2 + $0x68] sm:$0xff] %v5144_v37  ;;  %v946_v41 = vadd.f32 %v945_v2, %v852_v18  ;;  %v1258_v42 = vpack.c.bf16 %v5144_v37, %v5144_v37  ;;  %v1012_v18 = vld [vmem:[#allocation2] sm:$0xff]  ;;  %v1102_v34 = vpack.c.bf16 %v5144_v37, %v5240_v31  ;;  %v1481_v39 = vld [vmem:[#allocation2 + $0x88] sm:$0xff] }
 0x255   : > { %v1009_v43 = vmax.f32 %v1005_v38, 0.0  ;;  %v4576_v56 = vld [vmem:[#allocation3 + $0x64] sm:$0xf0]  ;;  %v1020_v19 = vpack.c.bf16 %v5133_v25, %v1012_v18  ;;  %v1181_v25 = vpack.c.bf16 %v5135_v28, %v1174_v24 }
 0x256   : > { %v5152_v44 = vmax.f32 %v946_v41, 0.0  ;;  %1262 = vst [vmem:[#allocation3 + $0x70] sm:$0xf] %v1258_v42  ;;  %v4182_v60 = vor.u32 %v4576_v56, %v4181_v55 }
 0x257   : > { %1011 = vst [vmem:[#allocation2 + $0xb0] sm:$0xff] %v1009_v43  ;;  %v1271_v45 = vpack.c.bf16 %v1009_v43, %v1009_v43  ;;  %v5154_v46 = vpack.c.bf16 %v1483_v40, %v1009_v43  ;;  %v934_v47 = vpop.f32.mrf.mxu2  ;;  %v1223_v59 = vpack.c.bf16 %v1009_v43, %v1218_v51 }
 0x258   : > { %v1268_v48 = vpack.c.bf16 %v5152_v44, %v5152_v44  ;;  %v1564_v10 = vpack.c.bf16 %v5011_v7, %v5152_v44  ;;  %v1220_v7 = vpack.c.bf16 %v5152_v44, %v5021_v9  ;;  %v5201_v4 = vpack.c.bf16 %v5152_v44, %v5197_v17  ;;  %v5208_v9 = vld [vmem:[#allocation2 + $0x28] sm:$0xff] }
 0x259   : > { %1275 = vst [vmem:[#allocation3 + $0x7c] sm:$0xf] %v1271_v45  ;;  %v4578_v52 = vld [vmem:[#allocation3 + $0x74] sm:$0xf0] }
 0x25a   : > { %v1006_v49 = vpop.f32.mrf.mxu1  ;;  %1458 = vrot.lane.b32.xlu2 %v1527_v32, %s4905_s23  ;;  %1378 = vrot.lane.b32.xlu0 %v1527_v32, %s4908_s26  ;;  %1272 = vst [vmem:[#allocation3 + $0x64] sm:$0xf] %v1268_v48 }
 0x25b   : > { %v947_v50 = vpop.f32.mrf.mxu3  ;;  %1498 = vrot.lane.b32.xlu1 %v5154_v46, %s4905_s23 }
 0x25c   : > { %v948_v53 = vadd.f32 %v947_v50, %v857_v21  ;;  %v5212_v21 = vpack.c.bf16 %v5208_v9, %v5152_v44  ;;  %v5261_v50 = vld [vmem:[#allocation2 + $0x78] sm:$0xff] }
 0x25d   : > { %v4189_v54 = vld [vmem:[#allocation3 + $0x70] sm:$0xf] }
 0x25e   : > { %v4190_v57 = vor.u32 %v4578_v52, %v4189_v54  ;;  %v5162_v58 = vmax.f32 %v948_v53, 0.0 }
 0x260   : > { %1796 = vmatpush.bf16.msrb.mxu2 %v4190_v57  ;;  %964 = vst [vmem:[#allocation2 + $0x50] sm:$0xff] %v5162_v58  ;;  %v1269_v61 = vpack.c.bf16 %v5162_v58, %v5162_v58  ;;  %v4191_v11 = vld [vmem:[#allocation3 + $0x78] sm:$0xf0]  ;;  %v5220_v26 = vpack.c.bf16 %v1559_v23, %v5162_v58  ;;  %v5232_v29 = vpack.c.bf16 %v5162_v58, %v1214_v27 }
 0x261   : > { %v4575_v13 = vld [vmem:[#allocation3 + $0x64] sm:$0xf] }
 0x262   : > { %1578 = vrot.lane.b32.xlu2 %v5154_v46, %s4907_s25  ;;  %1234 = vrot.lane.b32.xlu0 %v1223_v59, %s4909_s27  ;;  %1273 = vst [vmem:[#allocation3 + $0x6c] sm:$0xf] %v1269_v61 }
 0x263   : > { %v950_v62 = vpop.f32.mrf.mxu3  ;;  %1298 = vrot.lane.b32.xlu1 %v1527_v32, %s4906_s24  ;;  %v5242_v32 = vld [vmem:[#allocation2 + $0x70] sm:$0xff] }
 0x264   : > { %v951_v1 = vadd.f32 %v950_v62, %v5131_v16  ;;  %1797 = vmatpush.bf16.msrb.mxu2 %v4182_v60  ;;  %v1526_v35 = vpack.c.bf16 %v5242_v32, %v5144_v37 }
 0x266   : > { %v5172_v63 = vmax.f32 %v951_v1, 0.0 }
 0x268   : > { %965 = vst [vmem:[#allocation2 + $0x80] sm:$0xff] %v5172_v63  ;;  %v1270_v0 = vpack.c.bf16 %v5172_v63, %v5172_v63  ;;  %v1486_v40 = vpack.c.bf16 %v1481_v39, %v5172_v63  ;;  %v1222_v55 = vpack.c.bf16 %v5172_v63, %v5261_v50 }
 0x269   : > { %v4183_v14 = vld [vmem:[#allocation3 + $0x68] sm:$0xf0] }
 0x26a   : > { %1274 = vst [vmem:[#allocation3 + $0x74] sm:$0xf] %v1270_v0  ;;  %1418 = vrot.lane.b32.xlu2 %v5154_v46, %s4908_s26  ;;  %1034 = vrot.lane.b32.xlu0 %v1183_v33, %s4911_s29  ;;  %v4186_v16 = vor.u32 %v4575_v13, %v4183_v14 }
 0x26b   : > { %1154 = vrot.lane.b32.xlu1 %v1223_v59, %s4910_s28  ;;  %v952_v5 = vpop.f32.mrf.mxu3 }
 0x271   : > { %v4577_v12 = vld [vmem:[#allocation3 + $0x74] sm:$0xf] }
 0x272   : > { %1074 = vrot.lane.b32.xlu2 %v1223_v59, %s4911_s29  ;;  %1532 = vrot.lane.b32.xlu0 %v1524_v8, %s4907_s25  ;;  %v4194_v15 = vor.u32 %v4577_v12, %v4191_v11 }
 0x273   : > { %1572 = vrot.lane.b32.xlu1 %v1564_v10, %s4907_s25 }
 0x274   : > { %1822 = vmatpush.bf16.msra.mxu0 %v4194_v15 }
 0x278   : > { %1823 = vmatpush.bf16.msra.mxu0 %v4186_v16 }
 0x27a   : > { %1452 = vrot.lane.b32.xlu2 %v1524_v8, %s4905_s23  ;;  %1188 = vrot.lane.b32.xlu0 %v1180_v6, %s4909_s27 }
 0x27b   : > { %1372 = vrot.lane.b32.xlu1 %v1524_v8, %s4908_s26 }
 0x282   : > { %1492 = vrot.lane.b32.xlu2 %v1564_v10, %s4905_s23  ;;  %1108 = vrot.lane.b32.xlu0 %v1180_v6, %s4910_s28 }
 0x283   : > { %1228 = vrot.lane.b32.xlu1 %v1220_v7, %s4909_s27 }
 0x28a   : > { %1292 = vrot.lane.b32.xlu2 %v1524_v8, %s4906_s24  ;;  %1148 = vrot.lane.b32.xlu0 %v5201_v4, %s4910_s28 }
 0x28b   : > { %1028 = vrot.lane.b32.xlu1 %v1020_v19, %s4911_s29 }
 0x292   : > { %1412 = vrot.lane.b32.xlu2 %v5212_v21, %s4908_s26  ;;  %1454 = vrot.lane.b32.xlu0 %v1525_v22, %s4905_s23 }
 0x293   : > { %1534 = vrot.lane.b32.xlu1 %v1525_v22, %s4907_s25 }
 0x29a   : > { %1574 = vrot.lane.b32.xlu2 %v5220_v26, %s4907_s25  ;;  %1494 = vrot.lane.b32.xlu0 %v5220_v26, %s4905_s23 }
 0x29b   : > { %1190 = vrot.lane.b32.xlu1 %v1181_v25, %s4909_s27 }
 0x2a2   : > { %1374 = vrot.lane.b32.xlu2 %v1525_v22, %s4908_s26  ;;  %1294 = vrot.lane.b32.xlu0 %v1525_v22, %s4906_s24 }
 0x2a3   : > { %1110 = vrot.lane.b32.xlu1 %v1181_v25, %s4910_s28 }
 0x2aa   : > { %1230 = vrot.lane.b32.xlu2 %v5232_v29, %s4909_s27  ;;  %1414 = vrot.lane.b32.xlu0 %v5220_v26, %s4908_s26 }
 0x2ab   : > { %1150 = vrot.lane.b32.xlu1 %v5232_v29, %s4910_s28 }
 0x2ac   : > { %v1539_v28 = vpop.permute.xlu2 %1538 }
 0x2ad   : > { %v1543_v30 = vrot.slane %v1539_v28, 4 }
 0x2af   : > { %v1547_v33 = vsel %vm548_vm6, %v1539_v28, %v1543_v30 }
 0x2b0   : > { %1555 = vst [vmem:[#allocation3 + $0xf8] sm:$0xf] %v1547_v33 }
 0x2b2   : > { %1030 = vrot.lane.b32.xlu2 %v1181_v25, %s4911_s29  ;;  %1112 = vrot.lane.b32.xlu0 %v1102_v34, %s4910_s28 }
 0x2b3   : > { %1536 = vrot.lane.b32.xlu1 %v1526_v35, %s4907_s25 }
 0x2b4   : > { %v1459_v36 = vpop.permute.xlu2 %1458 }
 0x2b5   : > { %v1463_v38 = vrot.slane %v1459_v36, 4 }
 0x2b7   : > { %v1467_v2 = vsel %vm527_vm4, %v1459_v36, %v1463_v38 }
 0x2b8   : > { %1475 = vst [vmem:[#allocation3 + $0xd8] sm:$0xf] %v1467_v2 }
 0x2ba   : > { %1192 = vrot.lane.b32.xlu2 %v1102_v34, %s4909_s27  ;;  %1496 = vrot.lane.b32.xlu0 %v1486_v40, %s4905_s23 }
 0x2bb   : > { %1456 = vrot.lane.b32.xlu1 %v1526_v35, %s4905_s23 }
 0x2bc   : > { %v1579_v37 = vpop.permute.xlu2 %1578 }
 0x2bd   : > { %v1583_v41 = vrot.slane %v1579_v37, 4 }
 0x2bf   : > { %v1587_v42 = vsel %vm548_vm6, %v1579_v37, %v1583_v41 }
 0x2c0   : > { %1595 = vst [vmem:[#allocation3 + $0xfc] sm:$0xf] %v1587_v42 }
 0x2c2   : > { %1376 = vrot.lane.b32.xlu2 %v1526_v35, %s4908_s26  ;;  %1296 = vrot.lane.b32.xlu0 %v1526_v35, %s4906_s24 }
 0x2c3   : > { %1576 = vrot.lane.b32.xlu1 %v1486_v40, %s4907_s25 }
 0x2c4   : > { %v1419_v43 = vpop.permute.xlu2 %1418  ;;  %v1195_v45 = vpop.permute.xlu0 %1194 }
 0x2c5   : > { %v1423_v47 = vrot.slane %v1419_v43, 4  ;;  %v1199_v48 = vrot.slane %v1195_v45, 4  ;;  %v1115_v49 = vpop.permute.xlu1 %1114 }
 0x2c6   : > { %v1119_v51 = vrot.slane %v1115_v49, 4 }
 0x2c7   : > { %v1427_v52 = vsel %vm506_vm7, %v1419_v43, %v1423_v47  ;;  %v1203_v53 = vsel %vm458_vm2, %v1195_v45, %v1199_v48 }
 0x2c8   : > { %1435 = vst [vmem:[#allocation3 + $0xbc] sm:$0xf] %v1427_v52  ;;  %v1123_v54 = vsel %vm437_vm8, %v1115_v49, %v1119_v51 }
 0x2c9   : > { %1211 = vst [vmem:[#allocation3 + $0x58] sm:$0xf] %v1203_v53 }
 0x2ca   : > { %1131 = vst [vmem:[#allocation3 + $0x38] sm:$0xf] %v1123_v54  ;;  %1232 = vrot.lane.b32.xlu2 %v1222_v55, %s4909_s27  ;;  %1152 = vrot.lane.b32.xlu0 %v1222_v55, %s4910_s28 }
 0x2cb   : > { %1338 = vrot.lane.b32.xlu1 %v5154_v46, %s4906_s24 }
 0x2cc   : > { %v1075_v56 = vpop.permute.xlu2 %1074  ;;  %v1379_v57 = vpop.permute.xlu0 %1378 }
 0x2cd   : > { %v1079_v58 = vrot.slane %v1075_v56, 4  ;;  %v1383_v59 = vrot.slane %v1379_v57, 4  ;;  %v1499_v60 = vpop.permute.xlu1 %1498 }
 0x2ce   : > { %v1503_v61 = vrot.slane %v1499_v60, 4 }
 0x2cf   : > { %v1083_v62 = vsel %vm416_vm3, %v1075_v56, %v1079_v58  ;;  %v1387_v1 = vsel %vm506_vm7, %v1379_v57, %v1383_v59 }
 0x2d0   : > { %1091 = vst [vmem:[#allocation3 + $0x1c] sm:$0xf] %v1083_v62  ;;  %v1507_v63 = vsel %vm527_vm4, %v1499_v60, %v1503_v61 }
 0x2d1   : > { %1395 = vst [vmem:[#allocation3 + $0xb8] sm:$0xf] %v1387_v1 }
 0x2d2   : > { %1515 = vst [vmem:[#allocation3 + $0xdc] sm:$0xf] %v1507_v63  ;;  %1032 = vrot.lane.b32.xlu2 %v1102_v34, %s4911_s29  ;;  %1336 = vrot.lane.b32.xlu0 %v1486_v40, %s4906_s24 }
 0x2d3   : > { %1416 = vrot.lane.b32.xlu1 %v1486_v40, %s4908_s26 }
 0x2d4   : > { %v1453_v46 = vpop.permute.xlu2 %1452  ;;  %v1235_v0 = vpop.permute.xlu0 %1234 }
 0x2d5   : > { %v1460_v3 = vrot.slane %v1453_v46, 4  ;;  %v1239_v5 = vrot.slane %v1235_v0, 4  ;;  %v1299_v8 = vpop.permute.xlu1 %1298 }
 0x2d6   : > { %v1303_v10 = vrot.slane %v1299_v8, 4 }
 0x2d7   : > { %v1464_v11 = vsel %vm527_vm4, %v1453_v46, %v1460_v3  ;;  %v1243_v12 = vsel %vm458_vm2, %v1235_v0, %v1239_v5 }
 0x2d8   : > { %1472 = vst [vmem:[#allocation3 + $0xc0] sm:$0xf] %v1464_v11  ;;  %v1307_v13 = vsel %vm485_vm5, %v1299_v8, %v1303_v10 }
 0x2d9   : > { %1251 = vst [vmem:[#allocation3 + $0x5c] sm:$0xf] %v1243_v12 }
 0x2da   : > { %1315 = vst [vmem:[#allocation3 + $0x98] sm:$0xf] %v1307_v13  ;;  %1068 = vrot.lane.b32.xlu2 %v5201_v4, %s4911_s29  ;;  %1070 = vrot.lane.b32.xlu0 %v5232_v29, %s4911_s29 }
 0x2db   : > { %1072 = vrot.lane.b32.xlu1 %v1222_v55, %s4911_s29 }
 0x2dc   : > { %v1493_v14 = vpop.permute.xlu2 %1492  ;;  %v1035_v15 = vpop.permute.xlu0 %1034 }
 0x2dd   : > { %v1500_v16 = vrot.slane %v1493_v14, 4  ;;  %v1155_v6 = vpop.permute.xlu1 %1154  ;;  %v1039_v7 = vrot.slane %v1035_v15, 4 }
 0x2de   : > { %v1159_v18 = vrot.slane %v1155_v6, 4 }
 0x2df   : > { %v1504_v19 = vsel %vm527_vm4, %v1493_v14, %v1500_v16  ;;  %v1043_v20 = vsel %vm416_vm3, %v1035_v15, %v1039_v7 }
 0x2e0   : > { %1512 = vst [vmem:[#allocation3 + $0xc4] sm:$0xf] %v1504_v19  ;;  %v1163_v22 = vsel %vm437_vm8, %v1155_v6, %v1159_v18 }
 0x2e1   : > { %1171 = vst [vmem:[#allocation3 + $0x3c] sm:$0xf] %v1163_v22 }
 0x2e2   : > { %1051 = vst [vmem:[#allocation3 + $0x18] sm:$0xf] %v1043_v20  ;;  %1334 = vrot.lane.b32.xlu2 %v5220_v26, %s4906_s24 }
 0x2e3   : > { %1332 = vrot.lane.b32.xlu1 %v5212_v21, %s4906_s24 }
 0x2e4   : > { %v1293_v4 = vpop.permute.xlu2 %1292  ;;  %v1533_v23 = vpop.permute.xlu0 %1532 }
 0x2e5   : > { %v1300_v24 = vrot.slane %v1293_v4, 4  ;;  %v1573_v25 = vpop.permute.xlu1 %1572  ;;  %v1540_v27 = vrot.slane %v1533_v23, 4 }
 0x2e6   : > { %v1580_v29 = vrot.slane %v1573_v25, 4 }
 0x2e7   : > { %v1304_v28 = vsel %vm485_vm5, %v1293_v4, %v1300_v24  ;;  %v1544_v30 = vsel %vm548_vm6, %v1533_v23, %v1540_v27 }
 0x2e8   : > { %1312 = vst [vmem:[#allocation3 + $0x80] sm:$0xf] %v1304_v28  ;;  %v1584_v33 = vsel %vm548_vm6, %v1573_v25, %v1580_v29 }
 0x2e9   : > { %1592 = vst [vmem:[#allocation3 + $0xe4] sm:$0xf] %v1584_v33 }
 0x2ea   : > { %1552 = vst [vmem:[#allocation3 + $0xe0] sm:$0xf] %v1544_v30 }
 0x2ec   : > { %v1413_v34 = vpop.permute.xlu2 %1412  ;;  %v1189_v26 = vpop.permute.xlu0 %1188 }
 0x2ed   : > { %v1420_v35 = vrot.slane %v1413_v34, 4  ;;  %v1373_v36 = vpop.permute.xlu1 %1372  ;;  %v1196_v21 = vrot.slane %v1189_v26, 4 }
 0x2ee   : > { %v1380_v38 = vrot.slane %v1373_v36, 4 }
 0x2ef   : > { %v1424_v39 = vsel %vm506_vm7, %v1413_v34, %v1420_v35  ;;  %v1200_v2 = vsel %vm458_vm2, %v1189_v26, %v1196_v21 }
 0x2f0   : > { %1432 = vst [vmem:[#allocation3 + $0xa4] sm:$0xf] %v1424_v39  ;;  %v1384_v40 = vsel %vm506_vm7, %v1373_v36, %v1380_v38  ;;  %v4574_v38 = vld [vmem:[#allocation3 + $0x54] sm:$0xf0] }
 0x2f1   : > { %1392 = vst [vmem:[#allocation3 + $0xa0] sm:$0xf] %v1384_v40 }
 0x2f2   : > { %1208 = vst [vmem:[#allocation3 + $0x40] sm:$0xf] %v1200_v2 }
 0x2f4   : > { %v1575_v37 = vpop.permute.xlu2 %1574  ;;  %v1109_v41 = vpop.permute.xlu0 %1108 }
 0x2f5   : > { %v1581_v42 = vrot.slane %v1575_v37, 4  ;;  %v1229_v43 = vpop.permute.xlu1 %1228  ;;  %v1116_v45 = vrot.slane %v1109_v41, 4 }
 0x2f6   : > { %v1236_v47 = vrot.slane %v1229_v43, 4 }
 0x2f7   : > { %v1585_v48 = vsel %vm548_vm6, %v1575_v37, %v1581_v42  ;;  %v1120_v49 = vsel %vm437_vm8, %v1109_v41, %v1116_v45 }
 0x2f8   : > { %1593 = vst [vmem:[#allocation3 + $0xec] sm:$0xf] %v1585_v48  ;;  %v1240_v51 = vsel %vm458_vm2, %v1229_v43, %v1236_v47 }
 0x2f9   : > { %1248 = vst [vmem:[#allocation3 + $0x44] sm:$0xf] %v1240_v51  ;;  %v4165_v37 = vld [vmem:[#allocation3 + $0x40] sm:$0xf] }
 0x2fa   : > { %1128 = vst [vmem:[#allocation3 + $0x20] sm:$0xf] %v1120_v49 }
 0x2fc   : > { %v1375_v52 = vpop.permute.xlu2 %1374  ;;  %v1149_v53 = vpop.permute.xlu0 %1148 }
 0x2fd   : > { %v1381_v54 = vrot.slane %v1375_v52, 4  ;;  %v1029_v55 = vpop.permute.xlu1 %1028  ;;  %v1156_v56 = vrot.slane %v1149_v53, 4 }
 0x2fe   : > { %v1036_v57 = vrot.slane %v1029_v55, 4 }
 0x2ff   : > { %v1385_v58 = vsel %vm506_vm7, %v1375_v52, %v1381_v54  ;;  %v1160_v59 = vsel %vm437_vm8, %v1149_v53, %v1156_v56 }
 0x300   : > { %1393 = vst [vmem:[#allocation3 + $0xa8] sm:$0xf] %v1385_v58  ;;  %v1040_v60 = vsel %vm416_vm3, %v1029_v55, %v1036_v57 }
 0x301   : > { %1048 = vst [vmem:[#allocation3] sm:$0xf] %v1040_v60 }
 0x302   : > { %1168 = vst [vmem:[#allocation3 + $0x24] sm:$0xf] %v1160_v59 }
 0x304   : > { %v1231_v61 = vpop.permute.xlu2 %1230  ;;  %v1455_v62 = vpop.permute.xlu0 %1454 }
 0x305   : > { %v1237_v1 = vrot.slane %v1231_v61, 4  ;;  %v1535_v63 = vpop.permute.xlu1 %1534  ;;  %v1461_v46 = vrot.slane %v1455_v62, 4 }
 0x306   : > { %v1541_v0 = vrot.slane %v1535_v63, 4 }
 0x307   : > { %v1241_v3 = vsel %vm458_vm2, %v1231_v61, %v1237_v1  ;;  %v1465_v5 = vsel %vm527_vm4, %v1455_v62, %v1461_v46  ;;  %v4594_v62 = vld [vmem:[#allocation3 + $0xf4] sm:$0xf0] }
 0x308   : > { %1249 = vst [vmem:[#allocation3 + $0x4c] sm:$0xf] %v1241_v3  ;;  %v1545_v8 = vsel %vm548_vm6, %v1535_v63, %v1541_v0  ;;  %v4175_v63 = vld [vmem:[#allocation3 + $0x58] sm:$0xf0]  ;;  %v4570_v0 = vld [vmem:[#allocation3 + $0x34] sm:$0xf0] }
 0x309   : > { %1553 = vst [vmem:[#allocation3 + $0xe8] sm:$0xf] %v1545_v8 }
 0x30a   : > { %1473 = vst [vmem:[#allocation3 + $0xc8] sm:$0xf] %v1465_v5 }
 0x30c   : > { %v1031_v10 = vpop.permute.xlu2 %1030  ;;  %v1495_v11 = vpop.permute.xlu0 %1494 }
 0x30d   : > { %v1037_v12 = vrot.slane %v1031_v10, 4  ;;  %v1191_v13 = vpop.permute.xlu1 %1190  ;;  %v1501_v14 = vrot.slane %v1495_v11, 4 }
 0x30e   : > { %v1197_v15 = vrot.slane %v1191_v13, 4 }
 0x30f   : > { %v1041_v16 = vsel %vm416_vm3, %v1031_v10, %v1037_v12  ;;  %v1505_v6 = vsel %vm527_vm4, %v1495_v11, %v1501_v14  ;;  %v4167_v11 = vld [vmem:[#allocation3 + $0x48] sm:$0xf0] }
 0x310   : > { %1049 = vst [vmem:[#allocation3 + $0x8] sm:$0xf] %v1041_v16  ;;  %v1201_v7 = vsel %vm458_vm2, %v1191_v13, %v1197_v15  ;;  %v4592_v13 = vld [vmem:[#allocation3 + $0xe4] sm:$0xf0]  ;;  %v4571_v15 = vld [vmem:[#allocation3 + $0x44] sm:$0xf] }
 0x311   : > { %1209 = vst [vmem:[#allocation3 + $0x48] sm:$0xf] %v1201_v7  ;;  %v4245_v7 = vld [vmem:[#allocation3 + $0xe0] sm:$0xf] }
 0x312   : > { %1513 = vst [vmem:[#allocation3 + $0xcc] sm:$0xf] %v1505_v6 }
 0x314   : > { %v1193_v18 = vpop.permute.xlu2 %1192  ;;  %v1295_v19 = vpop.permute.xlu0 %1294 }
 0x315   : > { %v1198_v20 = vrot.slane %v1193_v18, 4  ;;  %v1111_v22 = vpop.permute.xlu1 %1110  ;;  %v1301_v4 = vrot.slane %v1295_v19, 4 }
 0x316   : > { %v1117_v23 = vrot.slane %v1111_v22, 4 }
 0x317   : > { %v1202_v24 = vsel %vm458_vm2, %v1193_v18, %v1198_v20  ;;  %v1305_v25 = vsel %vm485_vm5, %v1295_v19, %v1301_v4  ;;  %v4170_v18 = vor.u32 %v4571_v15, %v4167_v11  ;;  %v4149_v4 = vld [vmem:[#allocation3 + $0x20] sm:$0xf] }
 0x318   : > { %1210 = vst [vmem:[#allocation3 + $0x50] sm:$0xf] %v1202_v24  ;;  %v1121_v27 = vsel %vm437_vm8, %v1111_v22, %v1117_v23  ;;  %v4572_v40 = vld [vmem:[#allocation3 + $0x44] sm:$0xf0]  ;;  %v4246_v23 = vor.u32 %v4592_v13, %v4245_v7 }
 0x319   : > { %1129 = vst [vmem:[#allocation3 + $0x28] sm:$0xf] %v1121_v27  ;;  %v4166_v43 = vor.u32 %v4572_v40, %v4165_v37  ;;  %v4229_v40 = vld [vmem:[#allocation3 + $0xc0] sm:$0xf] }
 0x31a   : > { %1313 = vst [vmem:[#allocation3 + $0x88] sm:$0xf] %v1305_v25  ;;  %v5329_v37 = vld [vmem:[%s6009_s2] sm:$0xff] }
 0x31c   : > { %v1377_v29 = vpop.permute.xlu2 %1376  ;;  %v1415_v28 = vpop.permute.xlu0 %1414 }
 0x31d   : > { %v1382_v30 = vrot.slane %v1377_v29, 4  ;;  %v1151_v33 = vpop.permute.xlu1 %1150  ;;  %v1421_v34 = vrot.slane %v1415_v28, 4 }
 0x31e   : > { %v1157_v26 = vrot.slane %v1151_v33, 4 }
 0x31f   : > { %v1386_v35 = vsel %vm506_vm7, %v1377_v29, %v1382_v30  ;;  %v1425_v36 = vsel %vm506_vm7, %v1415_v28, %v1421_v34  ;;  %v4173_v21 = vld [vmem:[#allocation3 + $0x50] sm:$0xf]  ;;  %v4566_v30 = vld [vmem:[#allocation3 + $0x14] sm:$0xf0] }
 0x320   : > { %1394 = vst [vmem:[#allocation3 + $0xb0] sm:$0xf] %v1386_v35  ;;  %v1161_v39 = vsel %vm437_vm8, %v1151_v33, %v1157_v26  ;;  %v4174_v2 = vor.u32 %v4574_v38, %v4173_v21  ;;  %v4568_v14 = vld [vmem:[#allocation3 + $0x24] sm:$0xf0]  ;;  %v4590_v35 = vld [vmem:[#allocation3 + $0xd4] sm:$0xf0] }
 0x321   : > { %1169 = vst [vmem:[#allocation3 + $0x2c] sm:$0xf] %v1161_v39  ;;  %v4150_v25 = vor.u32 %v4568_v14, %v4149_v4  ;;  %v4588_v21 = vld [vmem:[#allocation3 + $0xc4] sm:$0xf0] }
 0x322   : > { %1433 = vst [vmem:[#allocation3 + $0xac] sm:$0xf] %v1425_v36  ;;  %1798 = vmatpush.bf16.msrb.mxu2 %v4174_v2  ;;  %v4564_v38 = vld [vmem:[#allocation3 + $0x4] sm:$0xf0] }
 0x323   : > { %v4580_v4 = vld [vmem:[#allocation3 + $0x84] sm:$0xf0] }
 0x324   : > { %v1233_v41 = vpop.permute.xlu2 %1232  ;;  %v1113_v42 = vpop.permute.xlu0 %1112 }
 0x325   : > { %v1238_v45 = vrot.slane %v1233_v41, 4  ;;  %v1537_v47 = vpop.permute.xlu1 %1536  ;;  %v1118_v48 = vrot.slane %v1113_v42, 4 }
 0x326   : > { %v1542_v49 = vrot.slane %v1537_v47, 4  ;;  %1799 = vmatpush.bf16.msrb.mxu2 %v4166_v43 }
 0x327   : > { %v1242_v51 = vsel %vm458_vm2, %v1233_v41, %v1238_v45  ;;  %v1122_v52 = vsel %vm437_vm8, %v1113_v42, %v1118_v48  ;;  %v4133_v45 = vld [vmem:[#allocation3] sm:$0xf]  ;;  %v1630_v48 = vunpack.c.l.b16 %v5329_v37 }
 0x328   : > { %1250 = vst [vmem:[#allocation3 + $0x54] sm:$0xf] %v1242_v51  ;;  %v1546_v53 = vsel %vm548_vm6, %v1537_v47, %v1542_v49  ;;  %v4230_v47 = vor.u32 %v4588_v21, %v4229_v40  ;;  %v4134_v51 = vor.u32 %v4564_v38, %v4133_v45 }
 0x329   : > { %1554 = vst [vmem:[#allocation3 + $0xf0] sm:$0xf] %v1546_v53 }
 0x32a   : > { %1130 = vst [vmem:[#allocation3 + $0x30] sm:$0xf] %v1122_v52  ;;  %v4221_v52 = vld [vmem:[#allocation3 + $0xb0] sm:$0xf] }
 0x32c   : > { %v1033_v54 = vpop.permute.xlu2 %1032  ;;  %v1497_v55 = vpop.permute.xlu0 %1496 }
 0x32d   : > { %v1038_v56 = vrot.slane %v1033_v54, 4  ;;  %v1457_v57 = vpop.permute.xlu1 %1456  ;;  %v1502_v58 = vrot.slane %v1497_v55, 4 }
 0x32e   : > { %v1462_v59 = vrot.slane %v1457_v57, 4 }
 0x32f   : > { %v1042_v60 = vsel %vm416_vm3, %v1033_v54, %v1038_v56  ;;  %v1506_v61 = vsel %vm527_vm4, %v1497_v55, %v1502_v58  ;;  %v4573_v1 = vld [vmem:[#allocation3 + $0x54] sm:$0xf]  ;;  %v4255_v55 = vld [vmem:[#allocation3 + $0xf8] sm:$0xf0] }
 0x330   : > { %1050 = vst [vmem:[#allocation3 + $0x10] sm:$0xf] %v1042_v60  ;;  %v1466_v46 = vsel %vm527_vm4, %v1457_v57, %v1462_v59  ;;  %v4253_v3 = vld [vmem:[#allocation3 + $0xf0] sm:$0xf]  ;;  %v4178_v5 = vor.u32 %v4573_v1, %v4175_v63  ;;  %v4586_v57 = vld [vmem:[#allocation3 + $0xb4] sm:$0xf0]  ;;  %v5335_v59 = vpack.c.b16 %v1630_v48, %v1630_v48 }
 0x331   : > { %1474 = vst [vmem:[#allocation3 + $0xd0] sm:$0xf] %v1466_v46  ;;  %v4157_v8 = vld [vmem:[#allocation3 + $0x30] sm:$0xf]  ;;  %v4254_v10 = vor.u32 %v4594_v62, %v4253_v3  ;;  %v4222_v60 = vor.u32 %v4586_v57, %v4221_v52  ;;  %v4584_v62 = vld [vmem:[#allocation3 + $0xa4] sm:$0xf0] }
 0x332   : > { %1514 = vst [vmem:[#allocation3 + $0xd4] sm:$0xf] %v1506_v61  ;;  %v4158_v12 = vor.u32 %v4570_v0, %v4157_v8  ;;  %1824 = vmatpush.bf16.msra.mxu0 %v4178_v5  ;;  %v4247_v1 = vld [vmem:[#allocation3 + $0xe8] sm:$0xf0]  ;;  %v4213_v46 = vld [vmem:[#allocation3 + $0xa0] sm:$0xf] }
 0x333   : > { %1809 = vmatpush.bf16.msrb.mxu3 %v4254_v10  ;;  %v4591_v0 = vld [vmem:[#allocation3 + $0xe4] sm:$0xf]  ;;  %v4214_v8 = vor.u32 %v4584_v62, %v4213_v46 }
 0x334   : > { %1800 = vmatpush.bf16.msrb.mxu2 %v4158_v12  ;;  %v1069_v16 = vpop.permute.xlu2 %1068  ;;  %v1297_v6 = vpop.permute.xlu0 %1296  ;;  %v4250_v10 = vor.u32 %v4591_v0, %v4247_v1 }
 0x335   : > { %v1076_v19 = vrot.slane %v1069_v16, 4  ;;  %v1577_v20 = vpop.permute.xlu1 %1576  ;;  %v1302_v22 = vrot.slane %v1297_v6, 4 }
 0x336   : > { %v1582_v24 = vrot.slane %v1577_v20, 4  ;;  %1825 = vmatpush.bf16.msra.mxu0 %v4170_v18 }
 0x337   : > { %v1080_v27 = vsel %vm416_vm3, %v1069_v16, %v1076_v19  ;;  %v1306_v29 = vsel %vm485_vm5, %v1297_v6, %v1302_v22  ;;  %1810 = vmatpush.bf16.msrb.mxu3 %v4246_v23  ;;  %v4141_v28 = vld [vmem:[#allocation3 + $0x10] sm:$0xf]  ;;  %v4582_v16 = vld [vmem:[#allocation3 + $0x94] sm:$0xf0]  ;;  %v4239_v6 = vld [vmem:[#allocation3 + $0xd8] sm:$0xf0] }
 0x338   : > { %1088 = vst [vmem:[#allocation3 + $0x4] sm:$0xf] %v1080_v27  ;;  %v1586_v33 = vsel %vm548_vm6, %v1577_v20, %v1582_v24  ;;  %1801 = vmatpush.bf16.msrb.mxu2 %v4150_v25  ;;  %v4142_v34 = vor.u32 %v4566_v30, %v4141_v28  ;;  %v4237_v26 = vld [vmem:[#allocation3 + $0xd0] sm:$0xf]  ;;  %v4159_v19 = vld [vmem:[#allocation3 + $0x38] sm:$0xf0]  ;;  %v1631_v24 = vunpack.c.h.b16 %v5329_v37 }
 0x339   : > { %1594 = vst [vmem:[#allocation3 + $0xf4] sm:$0xf] %v1586_v33  ;;  %v4238_v36 = vor.u32 %v4590_v35, %v4237_v26  ;;  %v4589_v13 = vld [vmem:[#allocation3 + $0xd4] sm:$0xf]  ;;  %v4231_v23 = vld [vmem:[#allocation3 + $0xc8] sm:$0xf0] }
 0x33a   : > { %1314 = vst [vmem:[#allocation3 + $0x90] sm:$0xf] %v1306_v29  ;;  %v4242_v20 = vor.u32 %v4589_v13, %v4239_v6  ;;  %v4151_v25 = vld [vmem:[#allocation3 + $0x28] sm:$0xf0]  ;;  %v4197_v29 = vld [vmem:[#allocation3 + $0x80] sm:$0xf]  ;;  %v1633_v38 = vpack.c.b16 %v1631_v24, %v1631_v24 }
 0x33b   : > { %1811 = vmatpush.bf16.msrb.mxu3 %v4238_v36  ;;  %v4587_v28 = vld [vmem:[#allocation3 + $0xc4] sm:$0xf]  ;;  %v4223_v37 = vld [vmem:[#allocation3 + $0xb8] sm:$0xf0] }
 0x33c   : > { %1802 = vmatpush.bf16.msrb.mxu2 %v4142_v34  ;;  %v1335_v39 = vpop.permute.xlu2 %1334  ;;  %v1153_v2 = vpop.permute.xlu0 %1152  ;;  %v4198_v34 = vor.u32 %v4580_v4, %v4197_v29  ;;  %v4567_v26 = vld [vmem:[#allocation3 + $0x24] sm:$0xf]  ;;  %v4234_v35 = vor.u32 %v4587_v28, %v4231_v23  ;;  %v5379_v23 = vld [vmem:[#allocation2 + $0x90] sm:$0xff]  ;;  %v5394_v28 = vld [vmem:[#allocation2 + $0x38] sm:$0xff] }
 0x33d   : > { %v1341_v41 = vrot.slane %v1335_v39, 4  ;;  %v1339_v42 = vpop.permute.xlu1 %1338  ;;  %v1158_v43 = vrot.slane %v1153_v2, 4  ;;  %v4154_v21 = vor.u32 %v4567_v26, %v4151_v25  ;;  %v5377_v4 = vld [vmem:[#allocation2 + $0xa0] sm:$0xff]  ;;  %v5392_v29 = vld [vmem:[#allocation2 + $0x30] sm:$0xff] }
 0x33e   : > { %v1343_v49 = vrot.slane %v1339_v42, 4  ;;  %v5407_v26 = vld [vmem:[#allocation2 + $0x40] sm:$0xff] }
 0x33f   : > { %v1345_v53 = vsel %vm485_vm5, %v1335_v39, %v1341_v41  ;;  %v1162_v54 = vsel %vm437_vm8, %v1153_v2, %v1158_v43  ;;  %1812 = vmatpush.bf16.msrb.mxu3 %v4230_v47  ;;  %v4583_v43 = vld [vmem:[#allocation3 + $0xa4] sm:$0xf] }
 0x340   : > { %1353 = vst [vmem:[#allocation3 + $0x8c] sm:$0xf] %v1345_v53  ;;  %v1347_v56 = vsel %vm485_vm5, %v1339_v42, %v1343_v49  ;;  %1803 = vmatpush.bf16.msrb.mxu2 %v4134_v51  ;;  %v4593_v58 = vld [vmem:[#allocation3 + $0xf4] sm:$0xf]  ;;  %v4215_v42 = vld [vmem:[#allocation3 + $0xa8] sm:$0xf0] }
 0x341   : > { %1355 = vst [vmem:[#allocation3 + $0x9c] sm:$0xf] %v1347_v56  ;;  %v4258_v61 = vor.u32 %v4593_v58, %v4255_v55  ;;  %v4205_v12 = vld [vmem:[#allocation3 + $0x90] sm:$0xf]  ;;  %v4218_v47 = vor.u32 %v4583_v43, %v4215_v42  ;;  %v4143_v53 = vld [vmem:[#allocation3 + $0x18] sm:$0xf0] }
 0x342   : > { %1170 = vst [vmem:[#allocation3 + $0x34] sm:$0xf] %v1162_v54  ;;  %v4206_v7 = vor.u32 %v4582_v16, %v4205_v12  ;;  %v4563_v58 = vld [vmem:[#allocation3 + $0x4] sm:$0xf]  ;;  %v5350_v16 = vld [vmem:[#allocation2 + $0x10] sm:$0xff]  ;;  %v5437_v43 = vld [vmem:[#allocation2 + $0x58] sm:$0xff] }
 0x343   : > { %1813 = vmatpush.bf16.msrb.mxu3 %v4222_v60  ;;  %1835 = vmatpush.bf16.msra.mxu1 %v4258_v61  ;;  %v5435_v42 = vld [vmem:[#allocation2 + $0x50] sm:$0xff] }
 0x344   : > { %v1337_v63 = vpop.permute.xlu0 %1336  ;;  %1804 = vmatmul.bf16.vlgmr.msrb.gmra.mxu2 %v5335_v59 }
 0x345   : > { %v1417_v3 = vpop.permute.xlu1 %1416  ;;  %v1342_v5 = vrot.slane %v1337_v63, 4 }
 0x346   : > { %v1422_v11 = vrot.slane %v1417_v3, 4 }
 0x347   : > { %v1346_v14 = vsel %vm485_vm5, %v1337_v63, %v1342_v5  ;;  %1814 = vmatpush.bf16.msrb.mxu3 %v4214_v8  ;;  %1836 = vmatpush.bf16.msra.mxu1 %v4250_v10  ;;  %v4199_v62 = vld [vmem:[#allocation3 + $0x88] sm:$0xf0] }
 0x348   : > { %v1426_v15 = vsel %vm506_vm7, %v1417_v3, %v1422_v11  ;;  %1354 = vst [vmem:[#allocation3 + $0x94] sm:$0xf] %v1346_v14  ;;  %v4207_v54 = vld [vmem:[#allocation3 + $0x98] sm:$0xf0] }
 0x349   : > { %1434 = vst [vmem:[#allocation3 + $0xb4] sm:$0xf] %v1426_v15  ;;  %v4569_v18 = vld [vmem:[#allocation3 + $0x34] sm:$0xf] }
 0x34a   : > { %v4162_v22 = vor.u32 %v4569_v18, %v4159_v19  ;;  %v5368_v19 = vld [vmem:[#allocation2 + $0x68] sm:$0xff] }
 0x34b   : > { %1815 = vmatpush.bf16.msrb.mxu3 %v4206_v7  ;;  %1837 = vmatpush.bf16.msra.mxu1 %v4242_v20  ;;  %v5362_v7 = vld [vmem:[#allocation2] sm:$0xff]  ;;  %v4725_v20 = vpack.i.bf16 %v5368_v19, %v5240_v31  ;;  %v4735_v25 = vpack.i.bf16 %v5242_v32, %v5368_v19 }
 0x34c   : > { %1826 = vmatpush.bf16.msra.mxu0 %v4162_v22  ;;  %v1071_v27 = vpop.permute.xlu0 %1070  ;;  %v5375_v22 = vld [vmem:[#allocation2 + $0x98] sm:$0xff] }
 0x34d   : > { %v1073_v30 = vpop.permute.xlu1 %1072  ;;  %v1077_v33 = vrot.slane %v1071_v27, 4  ;;  %v4740_v24 = vpack.i.bf16 %v5377_v4, %v5375_v22  ;;  %v4730_v31 = vpack.i.bf16 %v5375_v22, %v5379_v23 }
 0x34e   : > { %v1078_v36 = vrot.slane %v1073_v30, 4 }
 0x34f   : > { %v1081_v39 = vsel %vm416_vm3, %v1071_v27, %v1077_v33  ;;  %1816 = vmatpush.bf16.msrb.mxu3 %v4198_v34  ;;  %1838 = vmatpush.bf16.msra.mxu1 %v4234_v35  ;;  %v4581_v49 = vld [vmem:[#allocation3 + $0x94] sm:$0xf]  ;;  %v5390_v27 = vld [vmem:[#allocation2 + $0x80] sm:$0xff]  ;;  %v4750_v33 = vpack.i.bf16 %v5394_v28, %v5392_v29  ;;  %v5409_v35 = vld [vmem:[#allocation2 + $0xa8] sm:$0xff] }
 0x350   : > { %v1082_v2 = vsel %vm416_vm3, %v1073_v30, %v1078_v36  ;;  %1089 = vst [vmem:[#allocation3 + $0xc] sm:$0xf] %v1081_v39  ;;  %1827 = vmatpush.bf16.msra.mxu0 %v4154_v21  ;;  %v4585_v40 = vld [vmem:[#allocation3 + $0xb4] sm:$0xf]  ;;  %v4210_v56 = vor.u32 %v4581_v49, %v4207_v54  ;;  %v5396_v30 = vld [vmem:[#allocation2 + $0x8] sm:$0xff]  ;;  %v4755_v32 = vpack.i.bf16 %v5390_v27, %v5261_v50  ;;  %v5422_v39 = vld [vmem:[#allocation2 + $0xb8] sm:$0xff] }
 0x351   : > { %1090 = vst [vmem:[#allocation3 + $0x14] sm:$0xf] %v1082_v2  ;;  %v4226_v41 = vor.u32 %v4585_v40, %v4223_v37  ;;  %v4745_v34 = vpack.i.bf16 %v5396_v30, %v5362_v7  ;;  %v5411_v36 = vld [vmem:[#allocation2 + $0xb0] sm:$0xff]  ;;  %v4770_v50 = vpack.i.bf16 %v5407_v26, %v5394_v28  ;;  %v4765_v21 = vpack.i.bf16 %v5350_v16, %v5396_v30  ;;  %v5424_v2 = vld [vmem:[#allocation2 + $0x88] sm:$0xff] }
 0x352   : > { %1817 = vmatmul.bf16.vlgmr.msrb.gmra.mxu3 %v1633_v38  ;;  %v4780_v37 = vpack.i.bf16 %v5422_v39, %v5411_v36  ;;  %v2183_v54 = vld [vmem:[%s6017_s10 + $0x30] sm:$0xff] }
 0x353   : > { %1839 = vmatpush.bf16.msra.mxu1 %v4226_v41  ;;  %v4775_v41 = vpack.i.bf16 %v5424_v2, %v5390_v27 }
 0x355   : > { %v1333_v45 = vpop.permute.xlu1 %1332 }
 0x356   : > { %v1340_v48 = vrot.slane %v1333_v45, 4 }
 0x357   : > { %1840 = vmatpush.bf16.msra.mxu1 %v4218_v47  ;;  %v4135_v57 = vld [vmem:[#allocation3 + $0x8] sm:$0xf0] }
 0x358   : > { %v1344_v51 = vsel %vm485_vm5, %v1333_v45, %v1340_v48  ;;  %v4565_v52 = vld [vmem:[#allocation3 + $0x14] sm:$0xf]  ;;  %v4138_v60 = vor.u32 %v4563_v58, %v4135_v57  ;;  %v5439_v45 = vld [vmem:[#allocation2 + $0x28] sm:$0xff]  ;;  %v4800_v48 = vpack.i.bf16 %v5437_v43, %v5435_v42 }
 0x359   : > { %1352 = vst [vmem:[#allocation3 + $0x84] sm:$0xf] %v1344_v51  ;;  %v4146_v55 = vor.u32 %v4565_v52, %v4143_v53  ;;  %v5441_v47 = vld [vmem:[#allocation2 + $0x48] sm:$0xff]  ;;  %v4795_v49 = vpack.i.bf16 %v5439_v45, %v5152_v44  ;;  %v2181_v52 = vld [vmem:[%s6017_s10 + $0x20] sm:$0xff]  ;;  %v2184_v53 = vld [vmem:[%s6017_s10 + $0x38] sm:$0xff] }
 0x35a   : > { %v4790_v51 = vpack.i.bf16 %v5435_v42, %v5441_v47 }
 0x35b   : > { %1828 = vmatpush.bf16.msra.mxu0 %v4146_v55  ;;  %1841 = vmatpush.bf16.msra.mxu1 %v4210_v56  ;;  %v2182_v55 = vld [vmem:[%s6017_s10 + $0x28] sm:$0xff] }
 0x35f   : > { %1829 = vmatpush.bf16.msra.mxu0 %v4138_v60 }
 0x360   : > { %v4579_v61 = vld [vmem:[#allocation3 + $0x84] sm:$0xf] }
 0x361   : > { %v4202_v1 = vor.u32 %v4579_v61, %v4199_v62 }
 0x362   : > { %1830 = vmatmul.bf16.vlgmr.msra.gmra.mxu0 %v5335_v59 }
 0x363   : > { %1842 = vmatpush.bf16.msra.mxu1 %v4202_v1 }
 0x366   : > { %1843 = vmatmul.bf16.vlgmr.msra.gmra.mxu1 %v1633_v38  ;;  %v4760_v38 = vpack.i.bf16 %v5411_v36, %v5409_v35 }
 0x3c7   : > { %v1805_v63 = vpop.f32.mrf.mxu2 }
 0x3cf   : > { %v1807_v46 = vpop.f32.mrf.mxu2 }
 0x3d5   : > { %v1818_v0 = vpop.f32.mrf.mxu3 }
 0x3d6   : > { %v1819_v8 = vadd.f32 %v1818_v0, %v1805_v63 }
 0x3d8   : > { %v2131_v6 = vpack.c.bf16 %v5350_v16, %v1819_v8  ;;  %v2065_v18 = vpack.c.bf16 %v1819_v8, %v5362_v7 }
 0x3dd   : > { %v1820_v3 = vpop.f32.mrf.mxu3 }
 0x3df   : > { %v1831_v5 = vpop.f32.mrf.mxu0 }
 0x3e3   : > { %v1844_v10 = vpop.f32.mrf.mxu1 }
 0x3e4   : > { %v1845_v11 = vadd.f32 %v1844_v10, %v1831_v5 }
 0x3e6   : > { %v2161_v12 = vpack.c.bf16 %v5208_v9, %v1845_v11  ;;  %v2035_v13 = vpack.c.bf16 %v1845_v11, %v5197_v17  ;;  %v4674_v14 = vpack.c.bf16 %v1845_v11, %v1819_v8  ;;  %v5356_v17 = vld [vmem:[#allocation2 + $0x18] sm:$0xff] }
 0x3e7   : > { %v1833_v15 = vpop.f32.mrf.mxu0  ;;  %v2075_v9 = vpack.c.bf16 %v1845_v11, %v5356_v17  ;;  %v4785_v40 = vpack.i.bf16 %v5152_v44, %v5356_v17 }
 0x3e8   : > { %2163 = vrot.lane.b32.xlu2 %v2161_v12, %s4907_s25  ;;  %2143 = vrot.lane.b32.xlu1 %v2161_v12, %s4905_s23  ;;  %4683 = vst [vmem:[#allocation3 + $0x18] sm:$0xff] %v4674_v14  }
 0x3e9   : > { %2037 = vrot.lane.b32.xlu0 %v2035_v13, %s4911_s29 }
 0x3eb   : > { %v1846_v59 = vpop.f32.mrf.mxu1 }
 0x3f0   : > { %2123 = vrot.lane.b32.xlu2 %v2161_v12, %s4908_s26  ;;  %2103 = vrot.lane.b32.xlu1 %v2161_v12, %s4906_s24 }
 0x3f1   : > { %2133 = vrot.lane.b32.xlu0 %v2131_v6, %s4905_s23 }
 0x3f8   : > { %2077 = vrot.lane.b32.xlu2 %v2075_v9, %s4909_s27  ;;  %2057 = vrot.lane.b32.xlu1 %v2075_v9, %s4910_s28 }
 0x3f9   : > { %2113 = vrot.lane.b32.xlu0 %v2131_v6, %s4908_s26 }
 0x400   : > { %2093 = vrot.lane.b32.xlu2 %v2131_v6, %s4906_s24  ;;  %2153 = vrot.lane.b32.xlu1 %v2131_v6, %s4907_s25 }
 0x401   : > { %2067 = vrot.lane.b32.xlu0 %v2065_v18, %s4909_s27 }
 0x408   : > { %4726 = vrot.lane.b32.xlu2 %v4725_v20, %s4909_s27  ;;  %2047 = vrot.lane.b32.xlu1 %v2065_v18, %s4910_s28 }
 0x409   : > { %2027 = vrot.lane.b32.xlu0 %v2065_v18, %s4911_s29 }
 0x410   : > { %4741 = vrot.lane.b32.xlu2 %v4740_v24, %s4906_s24  ;;  %4736 = vrot.lane.b32.xlu1 %v4735_v25, %s4906_s24 }
 0x411   : > { %4731 = vrot.lane.b32.xlu0 %v4730_v31, %s4909_s27 }
 0x418   : > { %4756 = vrot.lane.b32.xlu2 %v4755_v32, %s4909_s27  ;;  %4751 = vrot.lane.b32.xlu1 %v4750_v33, %s4909_s27 }
 0x419   : > { %4746 = vrot.lane.b32.xlu0 %v4745_v34, %s4909_s27 }
 0x420   : > { %4771 = vrot.lane.b32.xlu2 %v4770_v50, %s4906_s24  ;;  %4766 = vrot.lane.b32.xlu1 %v4765_v21, %s4906_s24 }
 0x421   : > { %4761 = vrot.lane.b32.xlu0 %v4760_v38, %s4909_s27 }
 0x428   : > { %4786 = vrot.lane.b32.xlu2 %v4785_v40, %s4909_s27  ;;  %4781 = vrot.lane.b32.xlu1 %v4780_v37, %s4906_s24 }
 0x429   : > { %4776 = vrot.lane.b32.xlu0 %v4775_v41, %s4906_s24 }
 0x430   : > { %4801 = vrot.lane.b32.xlu2 %v4800_v48, %s4906_s24  ;;  %4796 = vrot.lane.b32.xlu1 %v4795_v49, %s4906_s24 }
 0x431   : > { %4791 = vrot.lane.b32.xlu0 %v4790_v51, %s4909_s27  ;;  %v4278_v51 = vld [vmem:[#allocation3 + $0x18] sm:$0xf0] }
 0x438   : > { %2187 = vperm.xlu2 %4722, %v2181_v52   ;;  %2304 = vperm.xlu1 %4724, %v2184_v53  }
 0x439   : > { %2197 = vperm.xlu0 %4723, %v2183_v54  }
 0x441   : > { %2192 = vperm.xlu0 %4723, %v2182_v55  }
 0x442   : > { %v2164_v56 = vpop.permute.xlu2 %2163 }
 0x443   : > { %v2165_v57 = vrot.slane %v2164_v56, 4 }
 0x445   : > { %v2166_v58 = vsel %vm548_vm6, %v2164_v56, %v2165_v57 }
 0x446   : > { %2168 = vst [vmem:[#allocation3 + $0x3c] sm:$0xf] %v2166_v58 }
 0x44a   : > { %v2124_v60 = vpop.permute.xlu2 %2123 }
 0x44b   : > { %v2125_v61 = vrot.slane %v2124_v60, 4 }
 0x44d   : > { %v2126_v62 = vsel %vm506_vm7, %v2124_v60, %v2125_v61  ;;  %v4294_v24 = vld [vmem:[#allocation3 + $0x38] sm:$0xf0] }
 0x44e   : > { %2128 = vst [vmem:[#allocation3 + $0x2c] sm:$0xf] %v2126_v62 }
 0x452   : > { %v2078_v1 = vpop.permute.xlu2 %2077 }
 0x453   : > { %v2079_v63 = vrot.slane %v2078_v1, 4 }
 0x455   : > { %v2080_v46 = vsel %vm458_vm2, %v2078_v1, %v2079_v63  ;;  %v4286_v40 = vld [vmem:[#allocation3 + $0x28] sm:$0xf0] }
 0x456   : > { %2082 = vst [vmem:[#allocation3 + $0x14] sm:$0xf] %v2080_v46  ;;  %v4603_v1 = vld [vmem:[%s6014_s7 + $0xc] sm:$0xff] }
 0x45a   : > { %v2144_v0 = vpop.permute.xlu1 %2143  ;;  %v2094_v3 = vpop.permute.xlu2 %2093 }
 0x45b   : > { %v2145_v5 = vrot.slane %v2144_v0, 4  ;;  %v2095_v8 = vrot.slane %v2094_v3, 4  ;;  %v2038_v10 = vpop.permute.xlu0 %2037 }
 0x45c   : > { %v2039_v11 = vrot.slane %v2038_v10, 4 }
 0x45d   : > { %v2146_v12 = vsel %vm527_vm4, %v2144_v0, %v2145_v5  ;;  %v2096_v13 = vsel %vm485_vm5, %v2094_v3, %v2095_v8  ;;  %v4597_v49 = vld [vmem:[#allocation3 + $0x14] sm:$0xf] }
 0x45e   : > { %2148 = vst [vmem:[#allocation3 + $0x34] sm:$0xf] %v2146_v12  ;;  %v2040_v14 = vsel %vm416_vm3, %v2038_v10, %v2039_v11  ;;  %v4281_v53 = vor.u32 %v4597_v49, %v4278_v51 }
 0x45f   : > { %2098 = vst [vmem:[#allocation3 + $0x20] sm:$0xf] %v2096_v13 }
 0x460   : > { %2042 = vst [vmem:[#allocation3 + $0x4] sm:$0xf] %v2040_v14 }
 0x462   : > { %v2104_v15 = vpop.permute.xlu1 %2103  ;;  %v4727_v48 = vpop.permute.xlu2 %4726 }
 0x463   : > { %v2105_v59 = vrot.slane %v2104_v15, 4  ;;  %v2134_v6 = vpop.permute.xlu0 %2133 }
 0x464   : > { %v2135_v9 = vrot.slane %v2134_v6, 4 }
 0x465   : > { %v2106_v18 = vsel %vm485_vm5, %v2104_v15, %v2105_v59  ;;  %v4601_v20 = vld [vmem:[#allocation3 + $0x34] sm:$0xf]  ;;  %v4729_v59 = vunpack.i.h.bf16 %v4727_v48 }
 0x466   : > { %2108 = vst [vmem:[#allocation3 + $0x24] sm:$0xf] %v2106_v18  ;;  %v2136_v25 = vsel %vm527_vm4, %v2134_v6, %v2135_v9  ;;  %v4297_v31 = vor.u32 %v4601_v20, %v4294_v24  ;;  %v4261_v15 = vld [vmem:[%s6014_s7 + $0x14] sm:$0xf]  ;;  %v4728_v6 = vunpack.i.l.bf16 %v4727_v48  ;;  %v4284_v9 = vld [vmem:[#allocation3 + $0x20] sm:$0xf] }
 0x467   : > { %2138 = vst [vmem:[#allocation3 + $0x30] sm:$0xf] %v2136_v25  ;;  %v4595_v58 = vld [vmem:[#allocation3 + $0x4] sm:$0xf] }
 0x468   : > { %2276 = vmatpush.bf16.msra.mxu3 %v4297_v31 }
 0x46a   : > { %v2058_v32 = vpop.permute.xlu1 %2057  ;;  %v4742_v63 = vpop.permute.xlu2 %4741 }
 0x46b   : > { %v2059_v33 = vrot.slane %v2058_v32, 4  ;;  %v2114_v34 = vpop.permute.xlu0 %2113 }
 0x46c   : > { %v2115_v50 = vrot.slane %v2114_v34, 4 }
 0x46d   : > { %v2060_v21 = vsel %vm437_vm8, %v2058_v32, %v2059_v33  ;;  %v4599_v38 = vld [vmem:[#allocation3 + $0x24] sm:$0xf] }
 0x46e   : > { %2062 = vst [vmem:[#allocation3 + $0xc] sm:$0xf] %v2060_v21  ;;  %v2116_v37 = vsel %vm506_vm7, %v2114_v34, %v2115_v50  ;;  %v4289_v41 = vor.u32 %v4599_v38, %v4286_v40  ;;  %v4292_v10 = vld [vmem:[#allocation3 + $0x30] sm:$0xf]  ;;  %v2205_v34 = vunpack.c.l.b16 %v4261_v15  ;;  %v4744_v50 = vunpack.i.h.bf16 %v4742_v63 }
 0x46f   : > { %2118 = vst [vmem:[#allocation3 + $0x28] sm:$0xf] %v2116_v37  ;;  %v4743_v21 = vunpack.i.l.bf16 %v4742_v63  ;;  %v1890_v37 = vsel %vm458_vm2, %v4728_v6, %v4729_v59 }
 0x470   : > { %2277 = vmatpush.bf16.msra.mxu3 %v4289_v41  ;;  %v4598_v41 = vld [vmem:[#allocation3 + $0x14] sm:$0xf0] }
 0x472   : > { %v2154_v52 = vpop.permute.xlu1 %2153  ;;  %v4757_v24 = vpop.permute.xlu2 %4756 }
 0x473   : > { %v2155_v54 = vrot.slane %v2154_v52, 4  ;;  %v2068_v55 = vpop.permute.xlu0 %2067 }
 0x474   : > { %v2069_v56 = vrot.slane %v2068_v55, 4  ;;  %2278 = vmatpush.bf16.msra.mxu3 %v4281_v53  ;;  %v2207_v53 = vpack.c.b16 %v2205_v34, %v2205_v34 }
 0x475   : > { %v2156_v57 = vsel %vm548_vm6, %v2154_v52, %v2155_v54  ;;  %v4270_v60 = vld [vmem:[#allocation3 + $0x8] sm:$0xf0] }
 0x476   : > { %2158 = vst [vmem:[#allocation3 + $0x38] sm:$0xf] %v2156_v57  ;;  %v2070_v61 = vsel %vm458_vm2, %v2068_v55, %v2069_v56  ;;  %v4273_v62 = vor.u32 %v4595_v58, %v4270_v60  ;;  %v4600_v14 = vld [vmem:[#allocation3 + $0x24] sm:$0xf0]  ;;  %v1932_v56 = vmax.f32 %v1890_v37, %v5368_v19  ;;  %v1971_v57 = vsel %vm485_vm5, %v4743_v21, %v4744_v50 }
 0x477   : > { %2072 = vst [vmem:[#allocation3 + $0x10] sm:$0xf] %v2070_v61  ;;  %v4285_v20 = vor.u32 %v4600_v14, %v4284_v9 }
 0x478   : > { %2279 = vmatpush.bf16.msra.mxu3 %v4273_v62 }
 0x47a   : > { %v2048_v46 = vpop.permute.xlu1 %2047 }
 0x47b   : > { %v2049_v0 = vrot.slane %v2048_v46, 4  ;;  %v2028_v3 = vpop.permute.xlu0 %2027  ;;  %4300 = vmatmul.msk.bf16.vlgmr.msra.gmra.mxu3 %vm611_vm9, %v4603_v1 }
 0x47c   : > { %v2029_v5 = vrot.slane %v2028_v3, 4 }
 0x47d   : > { %v2050_v8 = vsel %vm437_vm8, %v2048_v46, %v2049_v0  ;;  %v4602_v11 = vld [vmem:[#allocation3 + $0x34] sm:$0xf0] }
 0x47e   : > { %2052 = vst [vmem:[#allocation3 + $0x8] sm:$0xf] %v2050_v8  ;;  %v2030_v12 = vsel %vm416_vm3, %v2028_v3, %v2029_v5  ;;  %v4293_v13 = vor.u32 %v4602_v11, %v4292_v10  ;;  %v4276_v33 = vld [vmem:[#allocation3 + $0x10] sm:$0xf] }
 0x47f   : > { %2032 = vst [vmem:[#allocation3] sm:$0xf] %v2030_v12  ;;  %v4277_v48 = vor.u32 %v4598_v41, %v4276_v33 }
 0x480   : > { %2258 = vmatpush.bf16.msra.mxu2 %v4293_v13 }
 0x482   : > { %v4737_v18 = vpop.permute.xlu1 %4736 }
 0x483   : > { %v4739_v25 = vunpack.i.h.bf16 %v4737_v18  ;;  %v4738_v31 = vunpack.i.l.bf16 %v4737_v18  ;;  %v4732_v32 = vpop.permute.xlu0 %4731 }
 0x484   : > { %v4734_v38 = vunpack.i.h.bf16 %v4732_v32  ;;  %v4733_v40 = vunpack.i.l.bf16 %v4732_v32  ;;  %2259 = vmatpush.bf16.msra.mxu2 %v4285_v20  ;;  %v4759_v32 = vunpack.i.h.bf16 %v4757_v24 }
 0x485   : > { %v1970_v51 = vsel %vm485_vm5, %v4738_v31, %v4739_v25  ;;  %v4596_v55 = vld [vmem:[#allocation3 + $0x4] sm:$0xf0] }
 0x486   : > { %v1891_v49 = vsel %vm458_vm2, %v4733_v40, %v4734_v38  ;;  %v4268_v54 = vld [vmem:[#allocation3] sm:$0xf]  ;;  %v2012_v60 = vmax.f32 %v1932_v56, %v1970_v51 }
 0x487   : > { %v1934_v52 = vmax.f32 %v1891_v49, %v5375_v22  ;;  %v4269_v62 = vor.u32 %v4596_v55, %v4268_v54  ;;  %v4772_v22 = vpop.permute.xlu2 %4771 }
 0x488   : > { %2260 = vmatpush.bf16.msra.mxu2 %v4277_v48  ;;  %v4774_v10 = vunpack.i.h.bf16 %v4772_v22  ;;  %v4773_v11 = vunpack.i.l.bf16 %v4772_v22 }
 0x489   : > { %v2014_v58 = vmax.f32 %v1934_v52, %v1971_v57 }
 0x48a   : > { %v4752_v61 = vpop.permute.xlu1 %4751  ;;  %v1969_v18 = vsel %vm485_vm5, %v4773_v11, %v4774_v10 }
 0x48b   : > { %v4754_v63 = vunpack.i.h.bf16 %v4752_v61  ;;  %v4753_v46 = vunpack.i.l.bf16 %v4752_v61  ;;  %v4747_v0 = vpop.permute.xlu0 %4746  ;;  %4301 = vmatmul.msk.bf16.gmra.mxu3 %vm611_vm9, %v2207_v53  ;;  %v2019_v3 = vpack.c.bf16 %v2014_v58, %v2012_v60 }
 0x48c   : > { %2261 = vmatpush.bf16.msra.mxu2 %v4269_v62  ;;  %v4749_v5 = vunpack.i.h.bf16 %v4747_v0  ;;  %v4748_v8 = vunpack.i.l.bf16 %v4747_v0 }
 0x48d   : > { %2317 = vmatpush.bf16.msrb.mxu0 %v2019_v3  ;;  %v1889_v19 = vsel %vm458_vm2, %v4753_v46, %v4754_v63 }
 0x48e   : > { %v1888_v12 = vsel %vm458_vm2, %v4748_v8, %v4749_v5  ;;  %v1930_v13 = vmax.f32 %v1889_v19, %v5394_v28 }
 0x48f   : > { %4298 = vmatmul.msk.bf16.vlgmr.msra.gmra.mxu2 %vm611_vm9, %v4603_v1  ;;  %v1928_v9 = vmax.f32 %v1888_v12, %v5396_v30  ;;  %v4758_v1 = vunpack.i.l.bf16 %v4757_v24  ;;  %v4787_v50 = vpop.permute.xlu2 %4786  ;;  %v2016_v30 = vld [vmem:[%s6012_s5] sm:$0xf] }
 0x490   : > { %v2010_v34 = vmax.f32 %v1930_v13, %v1969_v18  ;;  %v4789_v57 = vunpack.i.h.bf16 %v4787_v50  ;;  %v4788_v58 = vunpack.i.l.bf16 %v4787_v50 }
 0x491   : > { %v1922_v38 = vsel %vm458_vm2, %v4758_v1, %v4759_v32 }
 0x492   : > { %v4767_v14 = vpop.permute.xlu1 %4766  ;;  %v1933_v52 = vmax.f32 %v1922_v38, %v5390_v27 }
 0x493   : > { %v4769_v15 = vunpack.i.h.bf16 %v4767_v14  ;;  %v4768_v59 = vunpack.i.l.bf16 %v4767_v14  ;;  %v4762_v6 = vpop.permute.xlu0 %4761 }
 0x494   : > { %v4764_v25 = vunpack.i.h.bf16 %v4762_v6  ;;  %v4763_v31 = vunpack.i.l.bf16 %v4762_v6 }
 0x495   : > { %v1968_v20 = vsel %vm485_vm5, %v4768_v59, %v4769_v15 }
 0x496   : > { %v2008_v33 = vmax.f32 %v1928_v9, %v1968_v20  ;;  %v1923_v28 = vsel %vm458_vm2, %v4763_v31, %v4764_v25 }
 0x497   : > { %v1935_v24 = vmax.f32 %v1923_v28, %v5411_v36  ;;  %v4802_v61 = vpop.permute.xlu2 %4801  ;;  %v1920_v36 = vsel %vm458_vm2, %v4788_v58, %v4789_v57 }
 0x498   : > { %v2017_v21 = vpack.c.bf16 %v2010_v34, %v2008_v33  ;;  %v4804_v3 = vunpack.i.h.bf16 %v4802_v61  ;;  %v4803_v22 = vunpack.i.l.bf16 %v4802_v61  ;;  %v1929_v11 = vmax.f32 %v1920_v36, %v5152_v44 }
 0x49a   : > { %v4782_v40 = vpop.permute.xlu1 %4781  ;;  %2318 = vmatpush.bf16.msrb.mxu0 %v2017_v21  ;;  %v2001_v12 = vsel %vm485_vm5, %v4803_v22, %v4804_v3 }
 0x49b   : > { %v4784_v37 = vunpack.i.h.bf16 %v4782_v40  ;;  %v4783_v41 = vunpack.i.l.bf16 %v4782_v40  ;;  %v4777_v49 = vpop.permute.xlu0 %4776 }
 0x49c   : > { %v4779_v48 = vunpack.i.h.bf16 %v4777_v49  ;;  %v4778_v51 = vunpack.i.l.bf16 %v4777_v49 }
 0x49d   : > { %v2003_v54 = vsel %vm485_vm5, %v4783_v41, %v4784_v37  ;;  %4302 = vmatmul.msk.bf16.vlgmr.msrb.gmra.mxu0 %vm2307_vm12, %v2016_v30 }
 0x49e   : > { %v2015_v55 = vmax.f32 %v1935_v24, %v2003_v54  ;;  %v2002_v56 = vsel %vm485_vm5, %v4778_v51, %v4779_v48 }
 0x49f   : > { %v2013_v60 = vmax.f32 %v1933_v52, %v2002_v56  ;;  %4299 = vmatmul.msk.bf16.gmra.mxu2 %vm611_vm9, %v2207_v53  ;;  %v2188_v6 = vpop.permute.xlu2 %2187 }
 0x4a1   : > { %v2020_v62 = vpack.c.bf16 %v2015_v55, %v2013_v60 }
 0x4a2   : > { %v4797_v63 = vpop.permute.xlu1 %4796 }
 0x4a3   : > { %v4799_v46 = vunpack.i.h.bf16 %v4797_v63  ;;  %v4798_v0 = vunpack.i.l.bf16 %v4797_v63  ;;  %v4792_v27 = vpop.permute.xlu0 %4791  ;;  %2330 = vmatpush.bf16.msrb.mxu1 %v2020_v62 }
 0x4a4   : > { %v4794_v5 = vunpack.i.h.bf16 %v4792_v27  ;;  %v4793_v8 = vunpack.i.l.bf16 %v4792_v27 }
 0x4a5   : > { %v2000_v19 = vsel %vm485_vm5, %v4798_v0, %v4799_v46 }
 0x4a6   : > { %v1921_v10 = vsel %vm458_vm2, %v4793_v8, %v4794_v5  ;;  %v2009_v13 = vmax.f32 %v1929_v11, %v2000_v19 }
 0x4a7   : > { %v1931_v53 = vmax.f32 %v1921_v10, %v5435_v42 }
 0x4a9   : > { %v2011_v14 = vmax.f32 %v1931_v53, %v2001_v12 }
 0x4aa   : > { %v2305_v41 = vpop.permute.xlu1 %2304 }
 0x4ab   : > { %v2018_v15 = vpack.c.bf16 %v2011_v14, %v2009_v13  ;;  %v2198_v59 = vpop.permute.xlu0 %2197 }
 0x4ad   : > { %2331 = vmatpush.bf16.msrb.mxu1 %v2018_v15 }
 0x4b0   : > { %4303 = vmatmul.msk.bf16.vlgmr.msrb.gmra.mxu1 %vm2307_vm12, %v2016_v30 }
 0x4b3   : > { %v2193_v42 = vpop.permute.xlu0 %2192 }
 0x4fe   : > { %v2281_v9 = vpop.f32.mrf.mxu3 }
 0x4ff   : > { %v2282_v18 = vadd.f32 %v2281_v9, %v2188_v6 }
 0x501   : > { %v5517_v20 = vmax.f32 %v2282_v18, 0.0 }
 0x503   : > { %2299 = vst [vmem:[#allocation2 + $0x20] sm:$0xff] %v5517_v20  ;;  %v2597_v44 = vpack.c.bf16 %v5517_v20, %v5517_v20  ;;  %v2893_v9 = vpack.c.bf16 %v5439_v45, %v5517_v20 }
 0x505   : > { %2601 = vst [vmem:[#allocation3 + $0x64] sm:$0xf] %v2597_v44 }
 0x506   : > { %v2283_v25 = vpop.f32.mrf.mxu3 }
 0x507   : > { %v2284_v31 = vadd.f32 %v2283_v25, %v2193_v42 }
 0x509   : > { %v5522_v32 = vmax.f32 %v2284_v31, 0.0  ;;  %v2850_v31 = vld [vmem:[#allocation2 + $0x70] sm:$0xff] }
 0x50b   : > { %2300 = vst [vmem:[#allocation2 + $0x50] sm:$0xff] %v5522_v32  ;;  %v2598_v1 = vpack.c.bf16 %v5522_v32, %v5522_v32  ;;  %v2814_v45 = vpack.c.bf16 %v5437_v43, %v5522_v32 }
 0x50d   : > { %2602 = vst [vmem:[#allocation3 + $0x6c] sm:$0xf] %v2598_v1  ;;  %v5620_v1 = vld [vmem:[#allocation2 + $0x78] sm:$0xff] }
 0x50e   : > { %v2286_v33 = vpop.f32.mrf.mxu3 }
 0x50f   : > { %v2287_v34 = vadd.f32 %v2286_v33, %v2198_v59 }
 0x511   : > { %v5527_v50 = vmax.f32 %v2287_v34, 0.0 }
 0x512   : > { %v2263_v21 = vpop.f32.mrf.mxu2 }
 0x513   : > { %2301 = vst [vmem:[#allocation2 + $0x80] sm:$0xff] %v5527_v50  ;;  %v2264_v28 = vadd.f32 %v2263_v21, %v2188_v6  ;;  %v2599_v38 = vpack.c.bf16 %v5527_v50, %v5527_v50  ;;  %v2549_v6 = vpack.c.bf16 %v5517_v20, %v5356_v17  ;;  %v2551_v21 = vpack.c.bf16 %v5527_v50, %v5620_v1 }
 0x514   : > { %v4356_v15 = vld [vmem:[#allocation3 + $0x68] sm:$0xf0] }
 0x515   : > { %v5532_v40 = vmax.f32 %v2264_v28, 0.0  ;;  %2603 = vst [vmem:[#allocation3 + $0x74] sm:$0xf] %v2599_v38  ;;  %v5629_v38 = vld [vmem:[#allocation2 + $0x60] sm:$0xff] }
 0x516   : > { %v2288_v30 = vpop.f32.mrf.mxu3 }
 0x517   : > { %2296 = vst [vmem:[#allocation2 + $0x8] sm:$0xff] %v5532_v40  ;;  %v2585_v37 = vpack.c.bf16 %v5532_v40, %v5532_v40  ;;  %v2509_v17 = vpack.c.bf16 %v5532_v40, %v5362_v7  ;;  %v2550_v7 = vpack.c.bf16 %v5522_v32, %v5441_v47 }
 0x519   : > { %2589 = vst [vmem:[#allocation3 + $0x60] sm:$0xf] %v2585_v37 }
 0x51a   : > { %v2265_v49 = vpop.f32.mrf.mxu2  ;;  %v2320_v24 = vpop.f32.mrf.mxu0 }
 0x51b   : > { %v2266_v48 = vadd.f32 %v2265_v49, %v2193_v42  ;;  %v2321_v51 = vadd.f32 %v2320_v24, %v2305_v41 }
 0x51d   : > { %v5537_v52 = vmax.f32 %v2266_v48, 0.0  ;;  %v5539_v54 = vmax.f32 %v2321_v51, 0.0 }
 0x51f   : > { %2297 = vst [vmem:[#allocation2 + $0x38] sm:$0xff] %v5537_v52  ;;  %v2856_v55 = vpack.c.bf16 %v5377_v4, %v5539_v54  ;;  %v2588_v56 = vpack.c.bf16 %v5539_v54, %v5539_v54  ;;  %v2586_v57 = vpack.c.bf16 %v5537_v52, %v5537_v52  ;;  %v2512_v4 = vpack.c.bf16 %v5539_v54, %v5379_v23 }
 0x520   : > { %v4354_v10 = vld [vmem:[#allocation3 + $0x60] sm:$0xf]  ;;  %v2510_v43 = vpack.c.bf16 %v5537_v52, %v5392_v29  ;;  %v2815_v29 = vpack.c.bf16 %v5424_v2, %v5527_v50 }
 0x521   : > { %2867 = vrot.lane.b32.xlu2 %v2856_v55, %s4907_s25  ;;  %2787 = vrot.lane.b32.xlu1 %v2856_v55, %s4905_s23  ;;  %2592 = vst [vmem:[#allocation3 + $0x78] sm:$0xf] %v2588_v56 }
 0x522   : > { %v2268_v58 = vpop.f32.mrf.mxu2  ;;  %v2322_v60 = vpop.f32.mrf.mxu0  ;;  %2707 = vrot.lane.b32.xlu0 %v2856_v55, %s4908_s26  ;;  %2590 = vst [vmem:[#allocation3 + $0x68] sm:$0xf] %v2586_v57 }
 0x523   : > { %v2269_v61 = vadd.f32 %v2268_v58, %v2198_v59  ;;  %v4616_v59 = vld [vmem:[#allocation3 + $0x64] sm:$0xf] }
 0x524   : > { %v4359_v18 = vor.u32 %v4616_v59, %v4356_v15 }
 0x525   : > { %v5551_v62 = vmax.f32 %v2269_v61, 0.0 }
 0x527   : > { %v2587_v63 = vpack.c.bf16 %v5551_v62, %v5551_v62  ;;  %v2855_v34 = vpack.c.bf16 %v2850_v31, %v5551_v62  ;;  %v2511_v30 = vpack.c.bf16 %v5551_v62, %v5629_v38 }
 0x528   : > { %v4619_v22 = vld [vmem:[#allocation3 + $0x74] sm:$0xf0] }
 0x529   : > { %2523 = vrot.lane.b32.xlu2 %v2512_v4, %s4909_s27  ;;  %2443 = vrot.lane.b32.xlu1 %v2512_v4, %s4910_s28  ;;  %2591 = vst [vmem:[#allocation3 + $0x70] sm:$0xf] %v2587_v63  ;;  %v4617_v8 = vld [vmem:[#allocation3 + $0x64] sm:$0xf0] }
 0x52a   : > { %v2270_v36 = vpop.f32.mrf.mxu2  ;;  %v4355_v53 = vor.u32 %v4617_v8, %v4354_v10  ;;  %v5654_v8 = vld [vmem:[#allocation2 + $0x18] sm:$0xff] }
 0x52d   : > { %v2333_v46 = vpop.f32.mrf.mxu1 }
 0x52e   : > { %v2334_v0 = vadd.f32 %v2333_v46, %v2305_v41 }
 0x530   : > { %v5559_v27 = vmax.f32 %v2334_v0, 0.0  ;;  %v4362_v3 = vld [vmem:[#allocation3 + $0x70] sm:$0xf] }
 0x531   : > { %2627 = vrot.lane.b32.xlu1 %v2856_v55, %s4906_s24  ;;  %2363 = vrot.lane.b32.xlu2 %v2512_v4, %s4911_s29  ;;  %v4363_v23 = vor.u32 %v4619_v22, %v4362_v3  ;;  %v5643_v4 = vld [vmem:[#allocation2 + $0xa8] sm:$0xff] }
 0x532   : > { %2340 = vst [vmem:[#allocation2 + $0xb0] sm:$0xff] %v5559_v27  ;;  %v2896_v5 = vpack.c.bf16 %v5422_v39, %v5559_v27  ;;  %v2600_v19 = vpack.c.bf16 %v5559_v27, %v5559_v27  ;;  %v2472_v12 = vpack.c.bf16 %v5559_v27, %v5409_v35  ;;  %v4618_v39 = vld [vmem:[#allocation3 + $0x74] sm:$0xf]  ;;  %v2853_v35 = vpack.c.bf16 %v5350_v16, %v5532_v40 }
 0x533   : > { %3125 = vmatpush.bf16.msrb.mxu2 %v4363_v23  ;;  %v2854_v16 = vpack.c.bf16 %v5407_v26, %v5537_v52  ;;  %v2392_v46 = vpack.c.bf16 %v5559_v27, %v5643_v4 }
 0x534   : > { %2907 = vrot.lane.b32.xlu0 %v2896_v5, %s4907_s25  ;;  %2604 = vst [vmem:[#allocation3 + $0x7c] sm:$0xf] %v2600_v19 }
 0x535   : > { %v2335_v11 = vpop.f32.mrf.mxu1 }
 0x537   : > { %3126 = vmatpush.bf16.msrb.mxu2 %v4355_v53 }
 0x539   : > { %2483 = vrot.lane.b32.xlu1 %v2472_v12, %s4910_s28  ;;  %2827 = vrot.lane.b32.xlu2 %v2896_v5, %s4905_s23 }
 0x53b   : > { %v4364_v13 = vld [vmem:[#allocation3 + $0x78] sm:$0xf0] }
 0x53c   : > { %2563 = vrot.lane.b32.xlu0 %v2472_v12, %s4909_s27  ;;  %v4367_v14 = vor.u32 %v4618_v39, %v4364_v13  ;;  %v2389_v39 = vpack.c.bf16 %v5517_v20, %v5654_v8  ;;  %v5662_v13 = vld [vmem:[#allocation2 + $0x88] sm:$0xff] }
 0x53d   : > { %v2655_v15 = vpack.c.bf16 %v5662_v13, %v5527_v50 }
 0x53e   : > { %3151 = vmatpush.bf16.msra.mxu0 %v4367_v14 }
 0x541   : > { %2557 = vrot.lane.b32.xlu1 %v2549_v6, %s4909_s27  ;;  %2901 = vrot.lane.b32.xlu2 %v2893_v9, %s4907_s25 }
 0x542   : > { %3152 = vmatpush.bf16.msra.mxu0 %v4359_v18  ;;  %v5670_v18 = vld [vmem:[#allocation2 + $0x28] sm:$0xff] }
 0x544   : > { %2747 = vrot.lane.b32.xlu0 %v2896_v5, %s4908_s26  ;;  %v5652_v5 = vld [vmem:[#allocation2 + $0xb8] sm:$0xff] }
 0x545   : > { %v2656_v12 = vpack.c.bf16 %v5652_v5, %v5559_v27 }
 0x549   : > { %2741 = vrot.lane.b32.xlu1 %v2893_v9, %s4908_s26  ;;  %2477 = vrot.lane.b32.xlu2 %v2549_v6, %s4910_s28 }
 0x54c   : > { %2821 = vrot.lane.b32.xlu0 %v2893_v9, %s4905_s23 }
 0x551   : > { %2517 = vrot.lane.b32.xlu1 %v2509_v17, %s4909_s27  ;;  %2437 = vrot.lane.b32.xlu2 %v2509_v17, %s4910_s28 }
 0x554   : > { %2861 = vrot.lane.b32.xlu0 %v2853_v35, %s4907_s25 }
 0x559   : > { %2701 = vrot.lane.b32.xlu1 %v2853_v35, %s4908_s26  ;;  %2621 = vrot.lane.b32.xlu2 %v2853_v35, %s4906_s24 }
 0x55c   : > { %2781 = vrot.lane.b32.xlu0 %v2853_v35, %s4905_s23 }
 0x561   : > { %2823 = vrot.lane.b32.xlu1 %v2814_v45, %s4905_s23  ;;  %2559 = vrot.lane.b32.xlu2 %v2550_v7, %s4909_s27 }
 0x564   : > { %2357 = vrot.lane.b32.xlu0 %v2509_v17, %s4911_s29  ;;  %v5672_v17 = vld [vmem:[#allocation2 + $0x58] sm:$0xff] }
 0x569   : > { %2863 = vrot.lane.b32.xlu1 %v2854_v16, %s4907_s25  ;;  %2743 = vrot.lane.b32.xlu2 %v2814_v45, %s4908_s26 }
 0x56c   : > { %2903 = vrot.lane.b32.xlu0 %v2814_v45, %s4907_s25 }
 0x571   : > { %2783 = vrot.lane.b32.xlu1 %v2854_v16, %s4905_s23  ;;  %2519 = vrot.lane.b32.xlu2 %v2510_v43, %s4909_s27 }
 0x574   : > { %2479 = vrot.lane.b32.xlu0 %v2550_v7, %s4910_s28 }
 0x579   : > { %2359 = vrot.lane.b32.xlu1 %v2510_v43, %s4911_s29  ;;  %2703 = vrot.lane.b32.xlu2 %v2854_v16, %s4908_s26 }
 0x57b   : > { %v2868_v26 = vpop.permute.xlu2 %2867 }
 0x57c   : > { %v2872_v47 = vrot.slane %v2868_v26, 4  ;;  %2439 = vrot.lane.b32.xlu0 %v2510_v43, %s4910_s28  ;;  %v2653_v43 = vpack.c.bf16 %v5670_v18, %v5517_v20 }
 0x57e   : > { %v2876_v44 = vsel %vm548_vm6, %v2868_v26, %v2872_v47  ;;  %v2654_v26 = vpack.c.bf16 %v5672_v17, %v5522_v32  ;;  %v5680_v47 = vld [vmem:[#allocation2 + $0x48] sm:$0xff] }
 0x57f   : > { %2884 = vst [vmem:[#allocation3 + $0xf8] sm:$0xf] %v2876_v44 }
 0x581   : > { %2825 = vrot.lane.b32.xlu1 %v2815_v29, %s4905_s23  ;;  %2905 = vrot.lane.b32.xlu2 %v2815_v29, %s4907_s25 }
 0x583   : > { %v2524_v42 = vpop.permute.xlu2 %2523 }
 0x584   : > { %2623 = vrot.lane.b32.xlu0 %v2854_v16, %s4906_s24  ;;  %v2528_v25 = vrot.slane %v2524_v42, 4 }
 0x586   : > { %v2532_v33 = vsel %vm458_vm2, %v2524_v42, %v2528_v25 }
 0x587   : > { %2540 = vst [vmem:[#allocation3 + $0x58] sm:$0xf] %v2532_v33 }
 0x589   : > { %2865 = vrot.lane.b32.xlu1 %v2855_v34, %s4907_s25  ;;  %2561 = vrot.lane.b32.xlu2 %v2551_v21, %s4909_s27 }
 0x58b   : > { %v2364_v2 = vpop.permute.xlu2 %2363 }
 0x58c   : > { %2481 = vrot.lane.b32.xlu0 %v2551_v21, %s4910_s28  ;;  %v2368_v28 = vrot.slane %v2364_v2, 4 }
 0x58e   : > { %v2372_v40 = vsel %vm416_vm3, %v2364_v2, %v2368_v28  ;;  %v4815_v28 = vpack.i.bf16 %v5527_v50, %v5620_v1 }
 0x58f   : > { %2380 = vst [vmem:[#allocation3 + $0x18] sm:$0xf] %v2372_v40  ;;  %v4805_v40 = vpack.i.bf16 %v5551_v62, %v5629_v38 }
 0x591   : > { %2521 = vrot.lane.b32.xlu1 %v2511_v30, %s4909_s27  ;;  %2745 = vrot.lane.b32.xlu2 %v2815_v29, %s4908_s26  ;;  %v2390_v29 = vpack.c.bf16 %v5522_v32, %v5680_v47  ;;  %v3183_v32 = vld [vmem:[#allocation2 + $0x90] sm:$0xff] }
 0x593   : > { %v2788_v37 = vpop.permute.xlu1 %2787  ;;  %v2828_v41 = vpop.permute.xlu2 %2827 }
 0x594   : > { %v2792_v49 = vrot.slane %v2788_v37, 4  ;;  %2785 = vrot.lane.b32.xlu0 %v2855_v34, %s4905_s23  ;;  %v2708_v24 = vpop.permute.xlu0 %2707  ;;  %v2832_v48 = vrot.slane %v2828_v41, 4 }
 0x595   : > { %v2712_v51 = vrot.slane %v2708_v24, 4 }
 0x596   : > { %v2796_v52 = vsel %vm527_vm4, %v2788_v37, %v2792_v49  ;;  %v2836_v55 = vsel %vm527_vm4, %v2828_v41, %v2832_v48  ;;  %v4810_v37 = vpack.i.bf16 %v5539_v54, %v3183_v32 }
 0x597   : > { %2804 = vst [vmem:[#allocation3 + $0xd8] sm:$0xf] %v2796_v52  ;;  %v2716_v56 = vsel %vm506_vm7, %v2708_v24, %v2712_v51 }
 0x598   : > { %2724 = vst [vmem:[#allocation3 + $0xb8] sm:$0xf] %v2716_v56 }
 0x599   : > { %2844 = vst [vmem:[#allocation3 + $0xdc] sm:$0xf] %v2836_v55  ;;  %2401 = vrot.lane.b32.xlu1 %v2551_v21, %s4911_s29  ;;  %2705 = vrot.lane.b32.xlu2 %v2855_v34, %s4908_s26 }
 0x59b   : > { %v2444_v57 = vpop.permute.xlu1 %2443  ;;  %v2902_v58 = vpop.permute.xlu2 %2901 }
 0x59c   : > { %2441 = vrot.lane.b32.xlu0 %v2511_v30, %s4910_s28  ;;  %v2448_v60 = vrot.slane %v2444_v57, 4  ;;  %v2909_v61 = vrot.slane %v2902_v58, 4 }
 0x59e   : > { %v2452_v63 = vsel %vm437_vm8, %v2444_v57, %v2448_v60  ;;  %v2913_v36 = vsel %vm548_vm6, %v2902_v58, %v2909_v61 }
 0x59f   : > { %2460 = vst [vmem:[#allocation3 + $0x38] sm:$0xf] %v2452_v63 }
 0x5a0   : > { %2921 = vst [vmem:[#allocation3 + $0xe4] sm:$0xf] %v2913_v36 }
 0x5a1   : > { %2361 = vrot.lane.b32.xlu1 %v2511_v30, %s4911_s29  ;;  %2403 = vrot.lane.b32.xlu2 %v2392_v46, %s4911_s29 }
 0x5a3   : > { %v2628_v0 = vpop.permute.xlu1 %2627  ;;  %v2478_v3 = vpop.permute.xlu2 %2477 }
 0x5a4   : > { %2625 = vrot.lane.b32.xlu0 %v2855_v34, %s4906_s24  ;;  %v2632_v22 = vrot.slane %v2628_v0, 4  ;;  %v2485_v23 = vrot.slane %v2478_v3, 4 }
 0x5a6   : > { %v2636_v19 = vsel %vm485_vm5, %v2628_v0, %v2632_v22  ;;  %v2489_v10 = vsel %vm437_vm8, %v2478_v3, %v2485_v23  ;;  %v2908_v11 = vpop.permute.xlu0 %2907 }
 0x5a7   : > { %2644 = vst [vmem:[#allocation3 + $0x98] sm:$0xf] %v2636_v19  ;;  %v2912_v53 = vrot.slane %v2908_v11, 4 }
 0x5a8   : > { %2497 = vst [vmem:[#allocation3 + $0x24] sm:$0xf] %v2489_v10 }
 0x5a9   : > { %v2916_v14 = vsel %vm548_vm6, %v2908_v11, %v2912_v53  ;;  %2667 = vrot.lane.b32.xlu1 %v2656_v12, %s4906_s24  ;;  %2397 = vrot.lane.b32.xlu2 %v2389_v39, %s4911_s29 }
 0x5aa   : > { %2924 = vst [vmem:[#allocation3 + $0xfc] sm:$0xf] %v2916_v14 }
 0x5ab   : > { %v2484_v59 = vpop.permute.xlu1 %2483  ;;  %v2438_v6 = vpop.permute.xlu2 %2437 }
 0x5ac   : > { %2665 = vrot.lane.b32.xlu0 %v2655_v15, %s4906_s24  ;;  %v2488_v27 = vrot.slane %v2484_v59, 4  ;;  %v2445_v9 = vrot.slane %v2438_v6, 4 }
 0x5ae   : > { %v2492_v35 = vsel %vm437_vm8, %v2484_v59, %v2488_v27  ;;  %v2449_v45 = vsel %vm437_vm8, %v2438_v6, %v2445_v9  ;;  %v2564_v7 = vpop.permute.xlu0 %2563 }
 0x5af   : > { %2500 = vst [vmem:[#allocation3 + $0x3c] sm:$0xf] %v2492_v35  ;;  %v2568_v16 = vrot.slane %v2564_v7, 4 }
 0x5b0   : > { %2457 = vst [vmem:[#allocation3 + $0x20] sm:$0xf] %v2449_v45 }
 0x5b1   : > { %v2572_v44 = vsel %vm458_vm2, %v2564_v7, %v2568_v16  ;;  %2661 = vrot.lane.b32.xlu1 %v2653_v43, %s4906_s24  ;;  %2663 = vrot.lane.b32.xlu2 %v2654_v26, %s4906_s24  ;;  %v4428_v32 = vld [vmem:[#allocation3 + $0xf8] sm:$0xf0] }
 0x5b2   : > { %2580 = vst [vmem:[#allocation3 + $0x5c] sm:$0xf] %v2572_v44 }
 0x5b3   : > { %v2558_v42 = vpop.permute.xlu1 %2557  ;;  %v2622_v25 = vpop.permute.xlu2 %2621 }
 0x5b4   : > { %2399 = vrot.lane.b32.xlu0 %v2390_v29, %s4911_s29  ;;  %v2565_v20 = vrot.slane %v2558_v42, 4  ;;  %v2629_v31 = vrot.slane %v2622_v25, 4 }
 0x5b6   : > { %v2569_v33 = vsel %vm458_vm2, %v2558_v42, %v2565_v20  ;;  %v2633_v34 = vsel %vm485_vm5, %v2622_v25, %v2629_v31  ;;  %v2748_v21 = vpop.permute.xlu0 %2747 }
 0x5b7   : > { %2577 = vst [vmem:[#allocation3 + $0x44] sm:$0xf] %v2569_v33  ;;  %v2752_v2 = vrot.slane %v2748_v21, 4 }
 0x5b8   : > { %2641 = vst [vmem:[#allocation3 + $0x80] sm:$0xf] %v2633_v34 }
 0x5b9   : > { %v2756_v30 = vsel %vm506_vm7, %v2748_v21, %v2752_v2  ;;  %4816 = vrot.lane.b32.xlu1 %v4815_v28, %s4909_s27  ;;  %4806 = vrot.lane.b32.xlu2 %v4805_v40, %s4909_s27 }
 0x5ba   : > { %2764 = vst [vmem:[#allocation3 + $0xbc] sm:$0xf] %v2756_v30 }
 0x5bb   : > { %v2742_v41 = vpop.permute.xlu1 %2741  ;;  %v2560_v49 = vpop.permute.xlu2 %2559 }
 0x5bc   : > { %4811 = vrot.lane.b32.xlu0 %v4810_v37, %s4909_s27  ;;  %v2749_v24 = vrot.slane %v2742_v41, 4  ;;  %v2566_v50 = vrot.slane %v2560_v49, 4 }
 0x5be   : > { %v2753_v1 = vsel %vm506_vm7, %v2742_v41, %v2749_v24  ;;  %v2570_v38 = vsel %vm458_vm2, %v2560_v49, %v2566_v50  ;;  %v2822_v48 = vpop.permute.xlu0 %2821 }
 0x5bf   : > { %2761 = vst [vmem:[#allocation3 + $0xa4] sm:$0xf] %v2753_v1  ;;  %v2829_v51 = vrot.slane %v2822_v48, 4 }
 0x5c0   : > { %2578 = vst [vmem:[#allocation3 + $0x4c] sm:$0xf] %v2570_v38  ;;  %v4632_v38 = vld [vmem:[#allocation3 + $0xe4] sm:$0xf] }
 0x5c1   : > { %v2833_v52 = vsel %vm527_vm4, %v2822_v48, %v2829_v51 }
 0x5c2   : > { %2841 = vst [vmem:[#allocation3 + $0xc4] sm:$0xf] %v2833_v52 }
 0x5c3   : > { %v2518_v55 = vpop.permute.xlu1 %2517  ;;  %v2744_v56 = vpop.permute.xlu2 %2743 }
 0x5c4   : > { %v2525_v57 = vrot.slane %v2518_v55, 4  ;;  %v2750_v58 = vrot.slane %v2744_v56, 4 }
 0x5c6   : > { %v2529_v60 = vsel %vm458_vm2, %v2518_v55, %v2525_v57  ;;  %v2754_v61 = vsel %vm506_vm7, %v2744_v56, %v2750_v58  ;;  %v2862_v63 = vpop.permute.xlu0 %2861  ;;  %v4348_v58 = vld [vmem:[#allocation3 + $0x58] sm:$0xf0] }
 0x5c7   : > { %2537 = vst [vmem:[#allocation3 + $0x40] sm:$0xf] %v2529_v60  ;;  %v2869_v36 = vrot.slane %v2862_v63, 4 }
 0x5c8   : > { %2762 = vst [vmem:[#allocation3 + $0xac] sm:$0xf] %v2754_v61 }
 0x5c9   : > { %v2873_v46 = vsel %vm548_vm6, %v2862_v63, %v2869_v36 }
 0x5ca   : > { %2881 = vst [vmem:[#allocation3 + $0xe0] sm:$0xf] %v2873_v46  ;;  %v4340_v46 = vld [vmem:[#allocation3 + $0x48] sm:$0xf0] }
 0x5cb   : > { %v2702_v0 = vpop.permute.xlu1 %2701  ;;  %v2520_v3 = vpop.permute.xlu2 %2519 }
 0x5cc   : > { %v2709_v22 = vrot.slane %v2702_v0, 4  ;;  %v2526_v23 = vrot.slane %v2520_v3, 4 }
 0x5ce   : > { %v2713_v19 = vsel %vm506_vm7, %v2702_v0, %v2709_v22  ;;  %v2530_v10 = vsel %vm458_vm2, %v2520_v3, %v2526_v23  ;;  %v2782_v11 = vpop.permute.xlu0 %2781  ;;  %v4612_v22 = vld [vmem:[#allocation3 + $0x44] sm:$0xf] }
 0x5cf   : > { %2721 = vst [vmem:[#allocation3 + $0xa0] sm:$0xf] %v2713_v19  ;;  %v2789_v53 = vrot.slane %v2782_v11, 4 }
 0x5d0   : > { %2538 = vst [vmem:[#allocation3 + $0x48] sm:$0xf] %v2530_v10  ;;  %v4343_v10 = vor.u32 %v4612_v22, %v4340_v46 }
 0x5d1   : > { %v2793_v12 = vsel %vm527_vm4, %v2782_v11, %v2789_v53 }
 0x5d2   : > { %2801 = vst [vmem:[#allocation3 + $0xc0] sm:$0xf] %v2793_v12 }
 0x5d3   : > { %v2824_v39 = vpop.permute.xlu1 %2823  ;;  %v2704_v14 = vpop.permute.xlu2 %2703 }
 0x5d4   : > { %v2830_v15 = vrot.slane %v2824_v39, 4  ;;  %v2710_v59 = vrot.slane %v2704_v14, 4 }
 0x5d6   : > { %v2834_v6 = vsel %vm527_vm4, %v2824_v39, %v2830_v15  ;;  %v2714_v27 = vsel %vm506_vm7, %v2704_v14, %v2710_v59  ;;  %v2358_v9 = vpop.permute.xlu0 %2357 }
 0x5d7   : > { %2842 = vst [vmem:[#allocation3 + $0xcc] sm:$0xf] %v2834_v6  ;;  %v2365_v35 = vrot.slane %v2358_v9, 4 }
 0x5d8   : > { %2722 = vst [vmem:[#allocation3 + $0xa8] sm:$0xf] %v2714_v27 }
 0x5d9   : > { %v2369_v45 = vsel %vm416_vm3, %v2358_v9, %v2365_v35 }
 0x5da   : > { %2377 = vst [vmem:[#allocation3] sm:$0xf] %v2369_v45 }
 0x5db   : > { %v2864_v7 = vpop.permute.xlu1 %2863  ;;  %v2906_v16 = vpop.permute.xlu2 %2905 }
 0x5dc   : > { %v2870_v43 = vrot.slane %v2864_v7, 4  ;;  %v2911_v26 = vrot.slane %v2906_v16, 4 }
 0x5de   : > { %v2874_v44 = vsel %vm548_vm6, %v2864_v7, %v2870_v43  ;;  %v2915_v29 = vsel %vm548_vm6, %v2906_v16, %v2911_v26  ;;  %v2904_v42 = vpop.permute.xlu0 %2903  ;;  %v4412_v16 = vld [vmem:[#allocation3 + $0xd8] sm:$0xf0] }
 0x5df   : > { %2882 = vst [vmem:[#allocation3 + $0xe8] sm:$0xf] %v2874_v44  ;;  %v2910_v25 = vrot.slane %v2904_v42, 4  ;;  %v4404_v44 = vld [vmem:[#allocation3 + $0xc8] sm:$0xf0] }
 0x5e0   : > { %2923 = vst [vmem:[#allocation3 + $0xf4] sm:$0xf] %v2915_v29 }
 0x5e1   : > { %v2914_v20 = vsel %vm548_vm6, %v2904_v42, %v2910_v25  ;;  %v4628_v42 = vld [vmem:[#allocation3 + $0xc4] sm:$0xf] }
 0x5e2   : > { %2922 = vst [vmem:[#allocation3 + $0xec] sm:$0xf] %v2914_v20 }
 0x5e3   : > { %v2784_v31 = vpop.permute.xlu1 %2783  ;;  %v2562_v33 = vpop.permute.xlu2 %2561 }
 0x5e4   : > { %v2790_v34 = vrot.slane %v2784_v31, 4  ;;  %v2567_v21 = vrot.slane %v2562_v33, 4 }
 0x5e6   : > { %v2794_v2 = vsel %vm527_vm4, %v2784_v31, %v2790_v34  ;;  %v2571_v28 = vsel %vm458_vm2, %v2562_v33, %v2567_v21  ;;  %v2480_v40 = vpop.permute.xlu0 %2479  ;;  %v4407_v31 = vor.u32 %v4628_v42, %v4404_v44 }
 0x5e7   : > { %2802 = vst [vmem:[#allocation3 + $0xc8] sm:$0xf] %v2794_v2  ;;  %v2486_v30 = vrot.slane %v2480_v40, 4  ;;  %v4634_v37 = vld [vmem:[#allocation3 + $0xf4] sm:$0xf] }
 0x5e8   : > { %2579 = vst [vmem:[#allocation3 + $0x54] sm:$0xf] %v2571_v28  ;;  %v4431_v41 = vor.u32 %v4634_v37, %v4428_v32  ;;  %v4396_v37 = vld [vmem:[#allocation3 + $0xb8] sm:$0xf0] }
 0x5e9   : > { %v2490_v49 = vsel %vm437_vm8, %v2480_v40, %v2486_v30  ;;  %v4420_v24 = vld [vmem:[#allocation3 + $0xe8] sm:$0xf0]  ;;  %v4635_v30 = vld [vmem:[#allocation3 + $0xf4] sm:$0xf0] }
 0x5ea   : > { %2498 = vst [vmem:[#allocation3 + $0x2c] sm:$0xf] %v2490_v49  ;;  %3164 = vmatpush.bf16.msra.mxu1 %v4431_v41  ;;  %v4423_v52 = vor.u32 %v4632_v38, %v4420_v24 }
 0x5eb   : > { %v2360_v50 = vpop.permute.xlu1 %2359  ;;  %v2746_v1 = vpop.permute.xlu2 %2745 }
 0x5ec   : > { %v2366_v48 = vrot.slane %v2360_v50, 4  ;;  %v2751_v51 = vrot.slane %v2746_v1, 4 }
 0x5ee   : > { %v2370_v55 = vsel %vm416_vm3, %v2360_v50, %v2366_v48  ;;  %v2755_v56 = vsel %vm506_vm7, %v2746_v1, %v2751_v51  ;;  %v2440_v57 = vpop.permute.xlu0 %2439  ;;  %3165 = vmatpush.bf16.msra.mxu1 %v4423_v52  ;;  %v4633_v50 = vld [vmem:[#allocation3 + $0xe4] sm:$0xf0]  ;;  %v4388_v1 = vld [vmem:[#allocation3 + $0xa8] sm:$0xf0]  ;;  %v4332_v51 = vld [vmem:[#allocation3 + $0x38] sm:$0xf0] }
 0x5ef   : > { %2378 = vst [vmem:[#allocation3 + $0x8] sm:$0xf] %v2370_v55  ;;  %v2446_v60 = vrot.slane %v2440_v57, 4  ;;  %v4614_v61 = vld [vmem:[#allocation3 + $0x54] sm:$0xf] }
 0x5f0   : > { %2763 = vst [vmem:[#allocation3 + $0xb4] sm:$0xf] %v2755_v56  ;;  %v4351_v63 = vor.u32 %v4614_v61, %v4348_v58  ;;  %v4418_v55 = vld [vmem:[#allocation3 + $0xe0] sm:$0xf]  ;;  %v4624_v56 = vld [vmem:[#allocation3 + $0xa4] sm:$0xf] }
 0x5f1   : > { %v2450_v36 = vsel %vm437_vm8, %v2440_v57, %v2446_v60  ;;  %v4419_v60 = vor.u32 %v4633_v50, %v4418_v55  ;;  %v4391_v61 = vor.u32 %v4624_v56, %v4388_v1  ;;  %v2957_v55 = vld [vmem:[%s6010_s3] sm:$0xff] }
 0x5f2   : > { %2458 = vst [vmem:[#allocation3 + $0x28] sm:$0xf] %v2450_v36  ;;  %3153 = vmatpush.bf16.msra.mxu0 %v4351_v63  ;;  %v4324_v63 = vld [vmem:[#allocation3 + $0x28] sm:$0xf0] }
 0x5f3   : > { %v2826_v0 = vpop.permute.xlu1 %2825  ;;  %v2706_v3 = vpop.permute.xlu2 %2705 }
 0x5f4   : > { %v2831_v23 = vrot.slane %v2826_v0, 4  ;;  %v2711_v19 = vrot.slane %v2706_v3, 4 }
 0x5f6   : > { %v2835_v11 = vsel %vm527_vm4, %v2826_v0, %v2831_v23  ;;  %v2715_v53 = vsel %vm506_vm7, %v2706_v3, %v2711_v19  ;;  %v2624_v12 = vpop.permute.xlu0 %2623  ;;  %3154 = vmatpush.bf16.msra.mxu0 %v4343_v10  ;;  %v4608_v0 = vld [vmem:[#allocation3 + $0x24] sm:$0xf] }
 0x5f7   : > { %2843 = vst [vmem:[#allocation3 + $0xd4] sm:$0xf] %v2835_v11  ;;  %v2630_v39 = vrot.slane %v2624_v12, 4  ;;  %v4626_v21 = vld [vmem:[#allocation3 + $0xb4] sm:$0xf]  ;;  %v4327_v19 = vor.u32 %v4608_v0, %v4324_v63 }
 0x5f8   : > { %2723 = vst [vmem:[#allocation3 + $0xb0] sm:$0xf] %v2715_v53  ;;  %v4399_v24 = vor.u32 %v4626_v21, %v4396_v37  ;;  %v4615_v11 = vld [vmem:[#allocation3 + $0x54] sm:$0xf0]  ;;  %v4625_v37 = vld [vmem:[#allocation3 + $0xa4] sm:$0xf0] }
 0x5f9   : > { %v2634_v14 = vsel %vm485_vm5, %v2624_v12, %v2630_v39  ;;  %v4613_v39 = vld [vmem:[#allocation3 + $0x44] sm:$0xf0]  ;;  %v4611_v21 = vld [vmem:[#allocation3 + $0x34] sm:$0xf0] }
 0x5fa   : > { %2642 = vst [vmem:[#allocation3 + $0x88] sm:$0xf] %v2634_v14 }
 0x5fb   : > { %v2866_v15 = vpop.permute.xlu1 %2865  ;;  %v2404_v59 = vpop.permute.xlu2 %2403 }
 0x5fc   : > { %v2871_v6 = vrot.slane %v2866_v15, 4  ;;  %v2408_v27 = vrot.slane %v2404_v59, 4 }
 0x5fe   : > { %v2875_v9 = vsel %vm548_vm6, %v2866_v15, %v2871_v6  ;;  %v2412_v35 = vsel %vm416_vm3, %v2404_v59, %v2408_v27  ;;  %v2482_v45 = vpop.permute.xlu0 %2481  ;;  %v4630_v7 = vld [vmem:[#allocation3 + $0xd4] sm:$0xf]  ;;  %v4631_v59 = vld [vmem:[#allocation3 + $0xd4] sm:$0xf0]  ;;  %v4338_v27 = vld [vmem:[#allocation3 + $0x40] sm:$0xf] }
 0x5ff   : > { %2883 = vst [vmem:[#allocation3 + $0xf0] sm:$0xf] %v2875_v9  ;;  %v2487_v43 = vrot.slane %v2482_v45, 4  ;;  %v4415_v26 = vor.u32 %v4630_v7, %v4412_v16  ;;  %v4402_v16 = vld [vmem:[#allocation3 + $0xc0] sm:$0xf] }
 0x600   : > { %2420 = vst [vmem:[#allocation3 + $0x1c] sm:$0xf] %v2412_v35  ;;  %v4339_v35 = vor.u32 %v4613_v39, %v4338_v27 }
 0x601   : > { %v2491_v29 = vsel %vm437_vm8, %v2482_v45, %v2487_v43  ;;  %3166 = vmatpush.bf16.msra.mxu1 %v4415_v26  ;;  %v4629_v45 = vld [vmem:[#allocation3 + $0xc4] sm:$0xf0] }
 0x602   : > { %2499 = vst [vmem:[#allocation3 + $0x34] sm:$0xf] %v2491_v29  ;;  %v4403_v44 = vor.u32 %v4629_v45, %v4402_v16  ;;  %v4621_v0 = vld [vmem:[#allocation3 + $0x84] sm:$0xf0] }
 0x603   : > { %v2522_v25 = vpop.permute.xlu1 %2521  ;;  %v2398_v20 = vpop.permute.xlu2 %2397 }
 0x604   : > { %v2527_v33 = vrot.slane %v2522_v25, 4  ;;  %v2405_v34 = vrot.slane %v2398_v20, 4 }
 0x605   : > { %3167 = vmatpush.bf16.msra.mxu1 %v4407_v31  ;;  %v4394_v31 = vld [vmem:[#allocation3 + $0xb0] sm:$0xf] }
 0x606   : > { %v2531_v2 = vsel %vm458_vm2, %v2522_v25, %v2527_v33  ;;  %v2409_v28 = vsel %vm416_vm3, %v2398_v20, %v2405_v34  ;;  %v2786_v40 = vpop.permute.xlu0 %2785  ;;  %v4426_v32 = vld [vmem:[#allocation3 + $0xf0] sm:$0xf] }
 0x607   : > { %2539 = vst [vmem:[#allocation3 + $0x50] sm:$0xf] %v2531_v2  ;;  %v2791_v41 = vrot.slane %v2786_v40, 4  ;;  %v4427_v49 = vor.u32 %v4635_v30, %v4426_v32  ;;  %v4316_v42 = vld [vmem:[#allocation3 + $0x18] sm:$0xf0] }
 0x608   : > { %2417 = vst [vmem:[#allocation3 + $0x4] sm:$0xf] %v2409_v28  ;;  %v4627_v2 = vld [vmem:[#allocation3 + $0xb4] sm:$0xf0]  ;;  %v4609_v30 = vld [vmem:[#allocation3 + $0x24] sm:$0xf0] }
 0x609   : > { %v2795_v38 = vsel %vm527_vm4, %v2786_v40, %v2791_v41  ;;  %3138 = vmatpush.bf16.msrb.mxu3 %v4427_v49  ;;  %3168 = vmatpush.bf16.msra.mxu1 %v4399_v24  ;;  %v4610_v48 = vld [vmem:[#allocation3 + $0x34] sm:$0xf]  ;;  %v4395_v40 = vor.u32 %v4627_v2, %v4394_v31  ;;  %v4322_v49 = vld [vmem:[#allocation3 + $0x20] sm:$0xf] }
 0x60a   : > { %2803 = vst [vmem:[#allocation3 + $0xd0] sm:$0xf] %v2795_v38  ;;  %v4335_v52 = vor.u32 %v4610_v48, %v4332_v51  ;;  %v4386_v24 = vld [vmem:[#allocation3 + $0xa0] sm:$0xf]  ;;  %v4323_v38 = vor.u32 %v4609_v30, %v4322_v49 }
 0x60b   : > { %v2402_v57 = vpop.permute.xlu1 %2401  ;;  %v2664_v58 = vpop.permute.xlu2 %2663  ;;  %v4387_v48 = vor.u32 %v4625_v37, %v4386_v24  ;;  %v5749_v37 = vld [vmem:[#allocation2 + $0x10] sm:$0xff]  ;;  %v3392_v49 = vld [vmem:[#allocation2] sm:$0xff] }
 0x60c   : > { %v2407_v36 = vrot.slane %v2402_v57, 4  ;;  %3155 = vmatpush.bf16.msra.mxu0 %v4335_v52  ;;  %v2670_v46 = vrot.slane %v2664_v58, 4 }
 0x60d   : > { %3139 = vmatpush.bf16.msrb.mxu3 %v4419_v60  ;;  %3169 = vmatpush.bf16.msra.mxu1 %v4391_v61  ;;  %v4623_v60 = vld [vmem:[#allocation3 + $0x94] sm:$0xf0] }
 0x60e   : > { %v2411_v3 = vsel %vm416_vm3, %v2402_v57, %v2407_v36  ;;  %v2674_v22 = vsel %vm485_vm5, %v2664_v58, %v2670_v46  ;;  %v2442_v23 = vpop.permute.xlu0 %2441  ;;  %v4346_v10 = vld [vmem:[#allocation3 + $0x50] sm:$0xf]  ;;  %v4607_v57 = vld [vmem:[#allocation3 + $0x14] sm:$0xf0]  ;;  %v4605_v46 = vld [vmem:[#allocation3 + $0x4] sm:$0xf0] }
 0x60f   : > { %2419 = vst [vmem:[#allocation3 + $0x14] sm:$0xf] %v2411_v3  ;;  %v2447_v53 = vrot.slane %v2442_v23, 4  ;;  %v4347_v12 = vor.u32 %v4615_v11, %v4346_v10  ;;  %v2959_v3 = vunpack.c.l.b16 %v2957_v55  ;;  %v4370_v10 = vld [vmem:[#allocation3 + $0x80] sm:$0xf] }
 0x610   : > { %2682 = vst [vmem:[#allocation3 + $0x8c] sm:$0xf] %v2674_v22  ;;  %3156 = vmatpush.bf16.msra.mxu0 %v4327_v19  ;;  %v2960_v22 = vunpack.c.h.b16 %v2957_v55  ;;  %v4306_v19 = vld [vmem:[#allocation3] sm:$0xf]  ;;  %v4371_v39 = vor.u32 %v4621_v0, %v4370_v10 }
 0x611   : > { %v2451_v14 = vsel %vm437_vm8, %v2442_v23, %v2447_v53  ;;  %3127 = vmatpush.bf16.msrb.mxu2 %v4347_v12  ;;  %v4410_v15 = vld [vmem:[#allocation3 + $0xd0] sm:$0xf]  ;;  %v4307_v12 = vor.u32 %v4605_v46, %v4306_v19  ;;  %v3513_v19 = vld [vmem:[%s6017_s10 + $0x58] sm:$0xff] }
 0x612   : > { %2459 = vst [vmem:[#allocation3 + $0x30] sm:$0xf] %v2451_v14  ;;  %v4411_v6 = vor.u32 %v4631_v59, %v4410_v15  ;;  %v2961_v15 = vpack.c.b16 %v2959_v3, %v2959_v3  ;;  %v2962_v59 = vpack.c.b16 %v2960_v22, %v2960_v22  ;;  %v5795_v3 = vld [vmem:[#allocation2 + $0x40] sm:$0xff] }
 0x613   : > { %v2362_v9 = vpop.permute.xlu1 %2361  ;;  %v5820_v10 = vpop.permute.xlu2 %4806 }
 0x614   : > { %3140 = vmatpush.bf16.msrb.mxu3 %v4411_v6  ;;  %v2367_v7 = vrot.slane %v2362_v9, 4 }
 0x615   : > { %3128 = vmatpush.bf16.msrb.mxu2 %v4339_v35 }
 0x616   : > { %v2371_v43 = vsel %vm416_vm3, %v2362_v9, %v2367_v7  ;;  %v2626_v26 = vpop.permute.xlu0 %2625  ;;  %v4606_v29 = vld [vmem:[#allocation3 + $0x14] sm:$0xf] }
 0x617   : > { %2379 = vst [vmem:[#allocation3 + $0x10] sm:$0xf] %v2371_v43  ;;  %v2631_v25 = vrot.slane %v2626_v26, 4  ;;  %v4319_v20 = vor.u32 %v4606_v29, %v4316_v42  ;;  %v4372_v7 = vld [vmem:[#allocation3 + $0x88] sm:$0xf0] }
 0x618   : > { %3141 = vmatpush.bf16.msrb.mxu3 %v4403_v44  ;;  %v4604_v43 = vld [vmem:[#allocation3 + $0x4] sm:$0xf] }
 0x619   : > { %v2635_v33 = vsel %vm485_vm5, %v2626_v26, %v2631_v25  ;;  %3157 = vmatpush.bf16.msra.mxu0 %v4319_v20  ;;  %v4330_v34 = vld [vmem:[#allocation3 + $0x30] sm:$0xf] }
 0x61a   : > { %2643 = vst [vmem:[#allocation3 + $0x90] sm:$0xf] %v2635_v33  ;;  %v4331_v28 = vor.u32 %v4611_v21, %v4330_v34 }
 0x61b   : > { %v2668_v32 = vpop.permute.xlu1 %2667 }
 0x61c   : > { %v2672_v41 = vrot.slane %v2668_v32, 4  ;;  %3129 = vmatpush.bf16.msrb.mxu2 %v4331_v28  ;;  %3142 = vmatpush.bf16.msrb.mxu3 %v4395_v40 }
 0x61e   : > { %v2676_v50 = vsel %vm485_vm5, %v2668_v32, %v2672_v41  ;;  %v2666_v1 = vpop.permute.xlu0 %2665  ;;  %v4314_v52 = vld [vmem:[#allocation3 + $0x10] sm:$0xf] }
 0x61f   : > { %2684 = vst [vmem:[#allocation3 + $0x9c] sm:$0xf] %v2676_v50  ;;  %v2671_v51 = vrot.slane %v2666_v1, 4  ;;  %v4315_v61 = vor.u32 %v4607_v57, %v4314_v52  ;;  %v5758_v50 = vld [vmem:[#allocation2 + $0xb0] sm:$0xff] }
 0x620   : > { %3130 = vmatpush.bf16.msrb.mxu2 %v4323_v38  ;;  %3143 = vmatpush.bf16.msrb.mxu3 %v4387_v48  ;;  %v3267_v38 = vld [vmem:[#allocation2 + $0x70] sm:$0xff]  ;;  %v3268_v48 = vld [vmem:[#allocation2 + $0xa0] sm:$0xff] }
 0x621   : > { %v2675_v56 = vsel %vm485_vm5, %v2666_v1, %v2671_v51  ;;  %v4378_v58 = vld [vmem:[#allocation3 + $0x90] sm:$0xf]  ;;  %v4820_v1 = vpack.i.bf16 %v5758_v50, %v5643_v4  ;;  %v3273_v51 = vld [vmem:[#allocation2 + $0x80] sm:$0xff]  ;;  %v4825_v52 = vpack.i.bf16 %v3267_v38, %v5551_v62  ;;  %v4830_v55 = vpack.i.bf16 %v3268_v48, %v5539_v54  ;;  %v5771_v4 = vld [vmem:[#allocation2 + $0x8] sm:$0xff] }
 0x622   : > { %2683 = vst [vmem:[#allocation3 + $0x94] sm:$0xf] %v2675_v56  ;;  %v4379_v63 = vor.u32 %v4623_v60, %v4378_v58  ;;  %v4835_v56 = vpack.i.bf16 %v5662_v13, %v3273_v51  ;;  %v3179_v57 = vld [vmem:[#allocation2 + $0x30] sm:$0xff]  ;;  %v5773_v58 = vld [vmem:[#allocation2 + $0x38] sm:$0xff]  ;;  %v4840_v60 = vpack.i.bf16 %v5652_v5, %v5758_v50  ;;  %v5782_v13 = vld [vmem:[#allocation2 + $0x20] sm:$0xff]  ;;  %v4865_v0 = vpack.i.bf16 %v5749_v37, %v5771_v4 }
 0x623   : > { %v2662_v36 = vpop.permute.xlu1 %2661  ;;  %v4855_v46 = vpack.i.bf16 %v5782_v13, %v5654_v8  ;;  %v4870_v22 = vpack.i.bf16 %v5795_v3, %v5773_v58 }
 0x624   : > { %v2669_v23 = vrot.slane %v2662_v36, 4  ;;  %3131 = vmatpush.bf16.msrb.mxu2 %v4315_v61  ;;  %3144 = vmatpush.bf16.msrb.mxu3 %v4379_v63  ;;  %v4845_v61 = vpack.i.bf16 %v5771_v4, %v3392_v49  ;;  %v4850_v63 = vpack.i.bf16 %v5773_v58, %v3179_v57 }
 0x626   : > { %v2673_v11 = vsel %vm485_vm5, %v2662_v36, %v2669_v23  ;;  %v2400_v53 = vpop.permute.xlu0 %2399  ;;  %v4380_v9 = vld [vmem:[#allocation3 + $0x98] sm:$0xf0]  ;;  %v5784_v36 = vld [vmem:[#allocation2 + $0x50] sm:$0xff] }
 0x627   : > { %2681 = vst [vmem:[#allocation3 + $0x84] sm:$0xf] %v2673_v11  ;;  %v2406_v14 = vrot.slane %v2400_v53, 4  ;;  %v4860_v5 = vpack.i.bf16 %v5784_v36, %v5680_v47  ;;  %v4880_v47 = vpack.i.bf16 %v5672_v17, %v5784_v36  ;;  %v3512_v23 = vld [vmem:[%s6017_s10 + $0x50] sm:$0xff]  ;;  %v3511_v17 = vld [vmem:[%s6017_s10 + $0x48] sm:$0xff] }
 0x628   : > { %3132 = vmatpush.bf16.msrb.mxu2 %v4307_v12  ;;  %3145 = vmatpush.bf16.msrb.mxu3 %v4371_v39 }
 0x629   : > { %v2410_v6 = vsel %vm416_vm3, %v2400_v53, %v2406_v14  ;;  %v4622_v27 = vld [vmem:[#allocation3 + $0x94] sm:$0xf] }
 0x62a   : > { %2418 = vst [vmem:[#allocation3 + $0xc] sm:$0xf] %v2410_v6  ;;  %v4383_v35 = vor.u32 %v4622_v27, %v4380_v9 }
 0x62b   : > { %3133 = vmatmul.bf16.vlgmr.msrb.gmra.mxu2 %v2961_v15  ;;  %3146 = vmatmul.bf16.vlgmr.msrb.gmra.mxu3 %v2962_v59 }
 0x62c   : > { %3170 = vmatpush.bf16.msra.mxu1 %v4383_v35 }
 0x62e   : > { %v4620_v45 = vld [vmem:[#allocation3 + $0x84] sm:$0xf]  ;;  %v5828_v6 = vpop.permute.xlu0 %4811 }
 0x62f   : > { %v4375_v16 = vor.u32 %v4620_v45, %v4372_v7 }
 0x631   : > { %3171 = vmatpush.bf16.msra.mxu1 %v4375_v16  ;;  %v4308_v26 = vld [vmem:[#allocation3 + $0x8] sm:$0xf0] }
 0x632   : > { %v4311_v44 = vor.u32 %v4604_v43, %v4308_v26 }
 0x634   : > { %3158 = vmatpush.bf16.msra.mxu0 %v4311_v44  ;;  %3172 = vmatmul.bf16.vlgmr.msra.gmra.mxu1 %v2962_v59  ;;  %v5826_v59 = vpop.permute.xlu1 %4816 }
 0x637   : > { %3159 = vmatmul.bf16.vlgmr.msra.gmra.mxu0 %v2961_v15 }
 0x6ae   : > { %v3134_v29 = vpop.f32.mrf.mxu2  ;;  %v3147_v42 = vpop.f32.mrf.mxu3 }
 0x6af   : > { %v3148_v20 = vadd.f32 %v3147_v42, %v3134_v29 }
 0x6b1   : > { %v3173_v25 = vpop.f32.mrf.mxu1  ;;  %v3460_v41 = vpack.c.bf16 %v5749_v37, %v3148_v20  ;;  %v3394_v24 = vpack.c.bf16 %v3148_v20, %v3392_v49 }
 0x6b4   : > { %v3160_v31 = vpop.f32.mrf.mxu0 }
 0x6b5   : > { %v3174_v33 = vadd.f32 %v3173_v25, %v3160_v31 }
 0x6b6   : > { %v3136_v34 = vpop.f32.mrf.mxu2  ;;  %v3149_v21 = vpop.f32.mrf.mxu3 }
 0x6b7   : > { %v3490_v2 = vpack.c.bf16 %v5670_v18, %v3174_v33  ;;  %v4679_v28 = vpack.c.bf16 %v3174_v33, %v3148_v20  ;;  %v3404_v30 = vpack.c.bf16 %v3174_v33, %v5654_v8  ;;  %v4875_v8 = vpack.i.bf16 %v5670_v18, %v5782_v13  ;;  %v3510_v18 = vld [vmem:[%s6017_s10 + $0x40] sm:$0xff] }
 0x6b9   : > { %v3175_v40 = vpop.f32.mrf.mxu1  ;;  %3492 = vrot.lane.b32.xlu0 %v3490_v2, %s4907_s25  ;;  %3472 = vrot.lane.b32.xlu1 %v3490_v2, %s4905_s23  ;;  %4684 = vst [vmem:[#allocation3 + $0x18] sm:$0xff] %v4679_v28  }
 0x6ba   : > { %3432 = vrot.lane.b32.xlu2 %v3490_v2, %s4906_s24 }
 0x6bc   : > { %v3162_v32 = vpop.f32.mrf.mxu0 }
 0x6c0   : > { %v4451_v57 = vld [vmem:[#allocation3 + $0x18] sm:$0xf0] }
 0x6c1   : > { %3452 = vrot.lane.b32.xlu1 %v3490_v2, %s4908_s26  ;;  %3406 = vrot.lane.b32.xlu0 %v3404_v30, %s4909_s27 }
 0x6c2   : > { %3366 = vrot.lane.b32.xlu2 %v3404_v30, %s4911_s29 }
 0x6c9   : > { %3462 = vrot.lane.b32.xlu0 %v3460_v41, %s4905_s23  ;;  %3386 = vrot.lane.b32.xlu1 %v3404_v30, %s4910_s28 }
 0x6ca   : > { %3482 = vrot.lane.b32.xlu2 %v3460_v41, %s4907_s25  ;;  %s4053_s25 = sshll.u32 %s6020_s18, 3 }
 0x6d1   : > { %3442 = vrot.lane.b32.xlu0 %v3460_v41, %s4908_s26  ;;  %3422 = vrot.lane.b32.xlu1 %v3460_v41, %s4906_s24 }
 0x6d2   : > { %3396 = vrot.lane.b32.xlu2 %v3394_v24, %s4909_s27 }
 0x6d9   : > { %3376 = vrot.lane.b32.xlu0 %v3394_v24, %s4910_s28  ;;  %3356 = vrot.lane.b32.xlu1 %v3394_v24, %s4911_s29  ;;  %s384_s28 = scalar_lea.vmem %s6018_s11, %s4053_s25 }
 0x6da   : > { %4821 = vrot.lane.b32.xlu2 %v4820_v1, %s4909_s27 }
 0x6e1   : > { %4826 = vrot.lane.b32.xlu0 %v4825_v52, %s4906_s24  ;;  %4831 = vrot.lane.b32.xlu1 %v4830_v55, %s4906_s24 }
 0x6e2   : > { %4836 = vrot.lane.b32.xlu2 %v4835_v56, %s4906_s24 }
 0x6e9   : > { %4841 = vrot.lane.b32.xlu0 %v4840_v60, %s4906_s24  ;;  %4846 = vrot.lane.b32.xlu1 %v4845_v61, %s4909_s27 }
 0x6ea   : > { %4851 = vrot.lane.b32.xlu2 %v4850_v63, %s4909_s27 }
 0x6f1   : > { %4856 = vrot.lane.b32.xlu0 %v4855_v46, %s4909_s27  ;;  %4861 = vrot.lane.b32.xlu1 %v4860_v5, %s4909_s27 }
 0x6f2   : > { %4866 = vrot.lane.b32.xlu2 %v4865_v0, %s4906_s24 }
 0x6f9   : > { %4871 = vrot.lane.b32.xlu0 %v4870_v22, %s4906_s24  ;;  %4876 = vrot.lane.b32.xlu1 %v4875_v8, %s4906_s24 }
 0x6fa   : > { %4881 = vrot.lane.b32.xlu2 %v4880_v47, %s4906_s24 }
 0x701   : > { %3526 = vperm.xlu0 %4723, %v3512_v23   ;;  %3633 = vperm.xlu1 %4724, %v3513_v19  }
 0x702   : > { %3516 = vperm.xlu2 %4722, %v3510_v18  }
 0x709   : > { %3521 = vperm.xlu0 %4723, %v3511_v17   ;;  %3711 = vrot.lane.b32.xlu1 %v3268_v48, %s4906_s24 }
 0x70a   : > { %3707 = vrot.lane.b32.xlu2 %v3267_v38, %s4906_s24 }
 0x711   : > { %3699 = vrot.lane.b32.xlu1 %v5749_v37, %s4906_s24 }
 0x714   : > { %v3433_v11 = vpop.permute.xlu2 %3432 }
 0x715   : > { %v3434_v53 = vrot.slane %v3433_v11, 4 }
 0x717   : > { %v3435_v12 = vsel %vm485_vm5, %v3433_v11, %v3434_v53  ;;  %v5847_v53 = vld [vmem:[%s6014_s7 + $0x18] sm:$0xff] }
 0x718   : > { %3437 = vst [vmem:[#allocation3 + $0x24] sm:$0xf] %v3435_v12 }
 0x71c   : > { %v3367_v39 = vpop.permute.xlu2 %3366 }
 0x71d   : > { %v3368_v14 = vrot.slane %v3367_v39, 4 }
 0x71f   : > { %v3369_v15 = vsel %vm416_vm3, %v3367_v39, %v3368_v14  ;;  %v4640_v51 = vld [vmem:[#allocation3 + $0x24] sm:$0xf]  ;;  %v4809_v14 = vunpack.i.h.bf16 %v5820_v10 }
 0x720   : > { %3371 = vst [vmem:[#allocation3 + $0x4] sm:$0xf] %v3369_v15  ;;  %v4808_v15 = vunpack.i.l.bf16 %v5820_v10 }
 0x724   : > { %v3483_v27 = vpop.permute.xlu2 %3482 }
 0x725   : > { %v3484_v9 = vrot.slane %v3483_v27, 4 }
 0x727   : > { %v3485_v35 = vsel %vm548_vm6, %v3483_v27, %v3484_v9  ;;  %v4636_v19 = vld [vmem:[#allocation3 + $0x4] sm:$0xf] }
 0x728   : > { %3487 = vst [vmem:[#allocation3 + $0x38] sm:$0xf] %v3485_v35  ;;  %v4814_v35 = vunpack.i.h.bf16 %v5828_v6 }
 0x72b   : > { %v3493_v45 = vpop.permute.xlu0 %3492  ;;  %v3473_v7 = vpop.permute.xlu1 %3472 }
 0x72c   : > { %v3494_v16 = vrot.slane %v3493_v45, 4  ;;  %v3474_v43 = vrot.slane %v3473_v7, 4  ;;  %v3397_v26 = vpop.permute.xlu2 %3396 }
 0x72d   : > { %v3398_v44 = vrot.slane %v3397_v26, 4 }
 0x72e   : > { %v3495_v29 = vsel %vm548_vm6, %v3493_v45, %v3494_v16  ;;  %v3475_v42 = vsel %vm527_vm4, %v3473_v7, %v3474_v43  ;;  %v4813_v45 = vunpack.i.l.bf16 %v5828_v6  ;;  %v4434_v6 = vld [vmem:[%s6014_s7 + $0x20] sm:$0xf] }
 0x72f   : > { %3497 = vst [vmem:[#allocation3 + $0x3c] sm:$0xf] %v3495_v29  ;;  %v3399_v25 = vsel %vm458_vm2, %v3397_v26, %v3398_v44  ;;  %v4643_v47 = vld [vmem:[#allocation3 + $0x34] sm:$0xf0]  ;;  %v3219_v44 = vsel %vm458_vm2, %v4808_v15, %v4809_v14 }
 0x730   : > { %3477 = vst [vmem:[#allocation3 + $0x34] sm:$0xf] %v3475_v42  ;;  %v3220_v42 = vsel %vm458_vm2, %v4813_v45, %v4814_v35 }
 0x731   : > { %3401 = vst [vmem:[#allocation3 + $0x10] sm:$0xf] %v3399_v25 }
 0x733   : > { %v3453_v20 = vpop.permute.xlu1 %3452  ;;  %v3407_v31 = vpop.permute.xlu0 %3406 }
 0x734   : > { %v3454_v33 = vrot.slane %v3453_v20, 4  ;;  %v3408_v34 = vrot.slane %v3407_v31, 4  ;;  %v5836_v1 = vpop.permute.xlu2 %4821 }
 0x736   : > { %v3455_v21 = vsel %vm506_vm7, %v3453_v20, %v3454_v33  ;;  %v3409_v2 = vsel %vm458_vm2, %v3407_v31, %v3408_v34  ;;  %v4467_v28 = vld [vmem:[#allocation3 + $0x38] sm:$0xf0]  ;;  %v4639_v20 = vld [vmem:[#allocation3 + $0x14] sm:$0xf0]  ;;  %v3261_v31 = vmax.f32 %v3219_v44, %v5551_v62 }
 0x737   : > { %3457 = vst [vmem:[#allocation3 + $0x2c] sm:$0xf] %v3455_v21  ;;  %v4642_v40 = vld [vmem:[#allocation3 + $0x34] sm:$0xf] }
 0x738   : > { %3411 = vst [vmem:[#allocation3 + $0x14] sm:$0xf] %v3409_v2  ;;  %v4470_v32 = vor.u32 %v4642_v40, %v4467_v28  ;;  %v4449_v29 = vld [vmem:[#allocation3 + $0x10] sm:$0xf] }
 0x739   : > { %v4450_v21 = vor.u32 %v4639_v20, %v4449_v29 }
 0x73a   : > { %3605 = vmatpush.bf16.msra.mxu3 %v4470_v32 }
 0x73b   : > { %v3463_v30 = vpop.permute.xlu0 %3462  ;;  %v3387_v41 = vpop.permute.xlu1 %3386 }
 0x73c   : > { %v3464_v49 = vrot.slane %v3463_v30, 4  ;;  %v3388_v24 = vrot.slane %v3387_v41, 4  ;;  %v5842_v17 = vpop.permute.xlu2 %4836 }
 0x73e   : > { %v3465_v38 = vsel %vm527_vm4, %v3463_v30, %v3464_v49  ;;  %v3389_v48 = vsel %vm437_vm8, %v3387_v41, %v3388_v24  ;;  %v4459_v52 = vld [vmem:[#allocation3 + $0x28] sm:$0xf0]  ;;  %v4819_v30 = vunpack.i.h.bf16 %v5826_v59  ;;  %v4818_v41 = vunpack.i.l.bf16 %v5826_v59 }
 0x73f   : > { %3467 = vst [vmem:[#allocation3 + $0x30] sm:$0xf] %v3465_v38  ;;  %v4462_v55 = vor.u32 %v4640_v51, %v4459_v52  ;;  %v4638_v56 = vld [vmem:[#allocation3 + $0x14] sm:$0xf]  ;;  %v3263_v49 = vmax.f32 %v3220_v42, %v5539_v54  ;;  %v3534_v24 = vunpack.c.l.b16 %v4434_v6  ;;  %v4824_v38 = vunpack.i.h.bf16 %v5836_v1 }
 0x740   : > { %3391 = vst [vmem:[#allocation3 + $0xc] sm:$0xf] %v3389_v48  ;;  %v4454_v63 = vor.u32 %v4638_v56, %v4451_v57  ;;  %v4823_v48 = vunpack.i.l.bf16 %v5836_v1  ;;  %v4838_v59 = vunpack.i.l.bf16 %v5842_v17 }
 0x741   : > { %3606 = vmatpush.bf16.msra.mxu3 %v4462_v55 }
 0x742   : > { %v3252_v1 = vsel %vm458_vm2, %v4823_v48, %v4824_v38 }
 0x743   : > { %v3443_v60 = vpop.permute.xlu0 %3442  ;;  %v3423_v61 = vpop.permute.xlu1 %3422 }
 0x744   : > { %v3444_v46 = vrot.slane %v3443_v60, 4  ;;  %v3424_v5 = vrot.slane %v3423_v61, 4  ;;  %v5859_v25 = vpop.permute.xlu2 %4851 }
 0x745   : > { %3607 = vmatpush.bf16.msra.mxu3 %v4454_v63  ;;  %v3536_v63 = vpack.c.b16 %v3534_v24, %v3534_v24 }
 0x746   : > { %v3445_v0 = vsel %vm506_vm7, %v3443_v60, %v3444_v46  ;;  %v3425_v22 = vsel %vm485_vm5, %v3423_v61, %v3424_v5  ;;  %v4465_v8 = vld [vmem:[#allocation3 + $0x30] sm:$0xf]  ;;  %v4839_v60 = vunpack.i.h.bf16 %v5842_v17  ;;  %v3251_v46 = vsel %vm458_vm2, %v4818_v41, %v4819_v30 }
 0x747   : > { %3447 = vst [vmem:[#allocation3 + $0x28] sm:$0xf] %v3445_v0  ;;  %v4466_v23 = vor.u32 %v4643_v47, %v4465_v8  ;;  %v4443_v18 = vld [vmem:[#allocation3 + $0x8] sm:$0xf0] }
 0x748   : > { %3427 = vst [vmem:[#allocation3 + $0x20] sm:$0xf] %v3425_v22  ;;  %v4446_v11 = vor.u32 %v4636_v19, %v4443_v18  ;;  %v3331_v22 = vsel %vm485_vm5, %v4838_v59, %v4839_v60  ;;  %v3264_v18 = vmax.f32 %v3252_v1, %v5758_v50  ;;  %v4854_v50 = vunpack.i.h.bf16 %v5859_v25 }
 0x749   : > { %3587 = vmatpush.bf16.msra.mxu2 %v4466_v23  ;;  %v4895_v23 = vld [vmem:[#allocation2 + $0x80] sm:$0xff] }
 0x74a   : > { %3608 = vmatpush.bf16.msra.mxu3 %v4446_v11  ;;  %v3262_v19 = vmax.f32 %v3251_v46, %v4895_v23 }
 0x74b   : > { %v3377_v12 = vpop.permute.xlu0 %3376  ;;  %v3357_v39 = vpop.permute.xlu1 %3356 }
 0x74c   : > { %v3378_v27 = vrot.slane %v3377_v12, 4  ;;  %v3358_v9 = vrot.slane %v3357_v39, 4  ;;  %v4867_v17 = vpop.permute.xlu2 %4866 }
 0x74d   : > { %4473 = vmatmul.msk.bf16.vlgmr.msra.gmra.mxu3 %vm611_vm9, %v5847_v53  ;;  %v4869_v42 = vunpack.i.h.bf16 %v4867_v17  ;;  %v4868_v20 = vunpack.i.l.bf16 %v4867_v17 }
 0x74e   : > { %v3379_v7 = vsel %vm437_vm8, %v3377_v12, %v3378_v27  ;;  %v3359_v16 = vsel %vm416_vm3, %v3357_v39, %v3358_v9  ;;  %v4641_v43 = vld [vmem:[#allocation3 + $0x24] sm:$0xf0]  ;;  %v3342_v12 = vmax.f32 %v3262_v19, %v3331_v22 }
 0x74f   : > { %3381 = vst [vmem:[#allocation3 + $0x8] sm:$0xf] %v3379_v7  ;;  %v4457_v26 = vld [vmem:[#allocation3 + $0x20] sm:$0xf]  ;;  %v3297_v24 = vsel %vm485_vm5, %v4868_v20, %v4869_v42 }
 0x750   : > { %3361 = vst [vmem:[#allocation3] sm:$0xf] %v3359_v16  ;;  %v4458_v10 = vor.u32 %v4641_v43, %v4457_v26  ;;  %v4853_v16 = vunpack.i.l.bf16 %v5859_v25 }
 0x752   : > { %3588 = vmatpush.bf16.msra.mxu2 %v4458_v10  ;;  %v3218_v29 = vsel %vm458_vm2, %v4853_v16, %v4854_v50  ;;  %v3774_v16 = vld [vmem:[%s6017_s10 + $0x60] sm:$0xff] }
 0x753   : > { %v4827_v33 = vpop.permute.xlu0 %4826  ;;  %v4832_v34 = vpop.permute.xlu1 %4831  ;;  %v3259_v41 = vmax.f32 %v3218_v29, %v5773_v58  ;;  %v3345_v58 = vld [vmem:[%s6013_s6] sm:$0xf]  ;;  %v3684_v29 = vld [vmem:[#allocation2 + $0x58] sm:$0xff] }
 0x754   : > { %v4829_v2 = vunpack.i.h.bf16 %v4827_v33  ;;  %v4828_v28 = vunpack.i.l.bf16 %v4827_v33  ;;  %v4834_v40 = vunpack.i.h.bf16 %v4832_v34  ;;  %v4833_v32 = vunpack.i.l.bf16 %v4832_v34  ;;  %v4882_v26 = vpop.permute.xlu2 %4881 }
 0x755   : > { %v4884_v6 = vunpack.i.h.bf16 %v4882_v26 }
 0x756   : > { %v3299_v62 = vsel %vm485_vm5, %v4828_v28, %v4829_v2  ;;  %v3300_v51 = vsel %vm485_vm5, %v4833_v32, %v4834_v40  ;;  %3589 = vmatpush.bf16.msra.mxu2 %v4450_v21  ;;  %v4637_v52 = vld [vmem:[#allocation3 + $0x4] sm:$0xf0] }
 0x757   : > { %v3341_v55 = vmax.f32 %v3261_v31, %v3299_v62  ;;  %v3343_v56 = vmax.f32 %v3263_v49, %v3300_v51  ;;  %v4441_v57 = vld [vmem:[#allocation3] sm:$0xf]  ;;  %v4883_v31 = vunpack.i.l.bf16 %v4882_v26  ;;  %v3686_v26 = vld [vmem:[#allocation2 + $0x88] sm:$0xff] }
 0x758   : > { %v4442_v61 = vor.u32 %v4637_v52, %v4441_v57 }
 0x759   : > { %v3348_v54 = vpack.c.bf16 %v3343_v56, %v3341_v55  ;;  %v3330_v38 = vsel %vm485_vm5, %v4883_v31, %v4884_v6 }
 0x75a   : > { %3590 = vmatpush.bf16.msra.mxu2 %v4442_v61 }
 0x75b   : > { %v4842_v5 = vpop.permute.xlu0 %4841  ;;  %v4847_v0 = vpop.permute.xlu1 %4846  ;;  %3645 = vmatpush.bf16.msrb.mxu0 %v3348_v54 }
 0x75c   : > { %v4844_v8 = vunpack.i.h.bf16 %v4842_v5  ;;  %v4843_v47 = vunpack.i.l.bf16 %v4842_v5  ;;  %v4849_v9 = vunpack.i.h.bf16 %v4847_v0  ;;  %v4848_v35 = vunpack.i.l.bf16 %v4847_v0 }
 0x75d   : > { %4471 = vmatmul.msk.bf16.vlgmr.msra.gmra.mxu2 %vm611_vm9, %v5847_v53  ;;  %4474 = vmatmul.msk.bf16.gmra.mxu3 %vm611_vm9, %v3536_v63 }
 0x75e   : > { %v3332_v11 = vsel %vm485_vm5, %v4843_v47, %v4844_v8  ;;  %v3217_v44 = vsel %vm458_vm2, %v4848_v35, %v4849_v9 }
 0x75f   : > { %v3344_v39 = vmax.f32 %v3264_v18, %v3332_v11  ;;  %v3257_v34 = vmax.f32 %v3217_v44, %v5771_v4  ;;  %v5912_v11 = vld [vmem:[#allocation2 + $0x28] sm:$0xff] }
 0x761   : > { %v3349_v14 = vpack.c.bf16 %v3344_v39, %v3342_v12  ;;  %v3337_v48 = vmax.f32 %v3257_v34, %v3297_v24 }
 0x763   : > { %v4857_v15 = vpop.permute.xlu0 %4856  ;;  %v4862_v27 = vpop.permute.xlu1 %4861  ;;  %3658 = vmatpush.bf16.msrb.mxu1 %v3349_v14 }
 0x764   : > { %v4864_v45 = vunpack.i.h.bf16 %v4862_v27  ;;  %v4863_v7 = vunpack.i.l.bf16 %v4862_v27  ;;  %v4859_v43 = vunpack.i.h.bf16 %v4857_v15  ;;  %v4858_v53 = vunpack.i.l.bf16 %v4857_v15 }
 0x766   : > { %v3250_v10 = vsel %vm458_vm2, %v4863_v7, %v4864_v45  ;;  %v3249_v33 = vsel %vm458_vm2, %v4858_v53, %v4859_v43  ;;  %v3517_v7 = vpop.permute.xlu2 %3516 }
 0x767   : > { %v3260_v21 = vmax.f32 %v3250_v10, %v5784_v36  ;;  %v3258_v49 = vmax.f32 %v3249_v33, %v5782_v13  ;;  %v3688_v13 = vld [vmem:[#allocation2 + $0xb8] sm:$0xff] }
 0x768   : > { %3743 = vrot.lane.b32.xlu2 %v3688_v13, %s4906_s24 }
 0x769   : > { %v3340_v52 = vmax.f32 %v3260_v21, %v3330_v38 }
 0x76b   : > { %v4872_v25 = vpop.permute.xlu0 %4871  ;;  %v4877_v2 = vpop.permute.xlu1 %4876 }
 0x76c   : > { %v4874_v28 = vunpack.i.h.bf16 %v4872_v25  ;;  %v4873_v40 = vunpack.i.l.bf16 %v4872_v25  ;;  %v4879_v32 = vunpack.i.h.bf16 %v4877_v2  ;;  %v4878_v30 = vunpack.i.l.bf16 %v4877_v2 }
 0x76d   : > { %4472 = vmatmul.msk.bf16.gmra.mxu2 %vm611_vm9, %v3536_v63 }
 0x76e   : > { %v3298_v4 = vsel %vm485_vm5, %v4873_v40, %v4874_v28  ;;  %v3329_v36 = vsel %vm485_vm5, %v4878_v30, %v4879_v32  ;;  %v3708_v6 = vpop.permute.xlu2 %3707 }
 0x76f   : > { %v3339_v62 = vmax.f32 %v3259_v41, %v3298_v4  ;;  %v3338_v51 = vmax.f32 %v3258_v49, %v3329_v36 }
 0x771   : > { %v3346_v55 = vpack.c.bf16 %v3339_v62, %v3337_v48  ;;  %v3347_v56 = vpack.c.bf16 %v3340_v52, %v3338_v51 }
 0x773   : > { %3646 = vmatpush.bf16.msrb.mxu0 %v3346_v55  ;;  %3659 = vmatpush.bf16.msrb.mxu1 %v3347_v56  ;;  %v3527_v57 = vpop.permute.xlu0 %3526  ;;  %v3634_v17 = vpop.permute.xlu1 %3633 }
 0x776   : > { %4475 = vmatmul.msk.bf16.vlgmr.msrb.gmra.mxu0 %vm2307_vm12, %v3345_v58  ;;  %4476 = vmatmul.msk.bf16.vlgmr.msrb.gmra.mxu1 %vm2307_vm12, %v3345_v58 }
 0x77b   : > { %v3522_v59 = vpop.permute.xlu0 %3521  ;;  %v3712_v20 = vpop.permute.xlu1 %3711 }
 0x783   : > { %v3700_v31 = vpop.permute.xlu1 %3699 }
 0x7c2   : > { %v3744_v33 = vpop.permute.xlu2 %3743 }
 0x7d0   : > { %v3610_v60 = vpop.f32.mrf.mxu3 }
 0x7d1   : > { %v3611_v50 = vadd.f32 %v3610_v60, %v3517_v7 }
 0x7d3   : > { %v3620_v44 = vmax.f32 %v3611_v50, 0.0  ;;  %v4648_v50 = vld [vmem:[%s6016_s9 + $0x18] sm:$0xff] }
 0x7d8   : > { %v3612_v61 = vpop.f32.mrf.mxu3 }
 0x7d9   : > { %v3613_v54 = vadd.f32 %v3612_v61, %v3522_v59 }
 0x7db   : > { %v5903_v63 = vmax.f32 %v3613_v54, 0.0 }
 0x7dd   : > { %3629 = vst [vmem:[#allocation2 + $0x50] sm:$0xff] %v5903_v63 }
 0x7e0   : > { %v3592_v46 = vpop.f32.mrf.mxu2  ;;  %v3615_v1 = vpop.f32.mrf.mxu3 }
 0x7e1   : > { %v3616_v5 = vadd.f32 %v3615_v1, %v3527_v57  ;;  %v3593_v10 = vadd.f32 %v3592_v46, %v3517_v7  ;;  %v4657_v7 = vld [vmem:[%s6016_s9 + $0x60] sm:$0xff] }
 0x7e3   : > { %v3624_v0 = vmax.f32 %v3616_v5, 0.0  ;;  %v3619_v42 = vmax.f32 %v3593_v10, 0.0 }
 0x7e5   : > { %3630 = vst [vmem:[#allocation2 + $0x80] sm:$0xff] %v3624_v0  ;;  %3737 = vrot.lane.b32.xlu2 %v3624_v0, %s4906_s24 }
 0x7e8   : > { %v3594_v22 = vpop.f32.mrf.mxu2  ;;  %v3617_v8 = vpop.f32.mrf.mxu3 }
 0x7e9   : > { %v3595_v47 = vadd.f32 %v3594_v22, %v3522_v59 }
 0x7eb   : > { %v5907_v23 = vmax.f32 %v3595_v47, 0.0 }
 0x7ed   : > { %3626 = vst [vmem:[#allocation2 + $0x38] sm:$0xff] %v5907_v23  ;;  %3701 = vrot.lane.b32.xlu2 %v5907_v23, %s4906_s24 }
 0x7f0   : > { %v3597_v19 = vpop.f32.mrf.mxu2 }
 0x7f1   : > { %v3598_v18 = vadd.f32 %v3597_v19, %v3527_v57  ;;  %v3769_v19 = vld [vmem:[%s6015_s8] sm:$0xf] }
 0x7f3   : > { %v3623_v12 = vmax.f32 %v3598_v18, 0.0  ;;  %v3648_v39 = vpop.f32.mrf.mxu0  ;;  %v3661_v14 = vpop.f32.mrf.mxu1 }
 0x7f4   : > { %v3649_v15 = vadd.f32 %v3648_v39, %v3634_v17  ;;  %v3662_v27 = vadd.f32 %v3661_v14, %v3634_v17  ;;  %v4652_v14 = vld [vmem:[%s6016_s9 + $0x38] sm:$0xff] }
 0x7f5   : > { %3627 = vst [vmem:[#allocation2 + $0x68] sm:$0xff] %v3623_v12  ;;  %3731 = vrot.lane.b32.xlu2 %v5912_v11, %s4906_s24  ;;  %3965 = vmatpush.bf16.msrb.mxu2 %v4652_v14 }
 0x7f6   : > { %v3665_v9 = vmax.f32 %v3649_v15, 0.0  ;;  %v3666_v35 = vmax.f32 %v3662_v27, 0.0  ;;  %v4660_v15 = vld [vmem:[%s6016_s9 + $0x78] sm:$0xff]  ;;  %v4659_v27 = vld [vmem:[%s6016_s9 + $0x70] sm:$0xff] }
 0x7f7   : > { %3978 = vmatpush.bf16.msrb.mxu3 %v4660_v15 }
 0x7f8   : > { %3667 = vst [vmem:[#allocation2 + $0x98] sm:$0xff] %v3665_v9  ;;  %3741 = vrot.lane.b32.xlu1 %v3666_v35, %s4906_s24  ;;  %3709 = vrot.lane.b32.xlu0 %v3665_v9, %s4906_s24  ;;  %v3599_v45 = vpop.f32.mrf.mxu2 }
 0x7f9   : > { %3668 = vst [vmem:[#allocation2 + $0xb0] sm:$0xff] %v3666_v35  ;;  %v4649_v45 = vld [vmem:[%s6016_s9 + $0x20] sm:$0xff] }
 0x7fb   : > { %v3650_v43 = vpop.f32.mrf.mxu0  ;;  %v3663_v53 = vpop.f32.mrf.mxu1  ;;  %3979 = vmatpush.bf16.msrb.mxu3 %v4659_v27 }
 0x7fd   : > { %3777 = vperm.xlu2 %4722, %v3774_v16  }
 0x800   : > { %3729 = vrot.lane.b32.xlu1 %v3620_v44, %s4906_s24  ;;  %3739 = vrot.lane.b32.xlu0 %v3686_v26, %s4906_s24  ;;  %v4647_v26 = vld [vmem:[%s6016_s9 + $0x10] sm:$0xff] }
 0x808   : > { %3705 = vrot.lane.b32.xlu1 %v3623_v12, %s4906_s24  ;;  %3703 = vrot.lane.b32.xlu0 %v5795_v3, %s4906_s24 }
 0x810   : > { %3697 = vrot.lane.b32.xlu0 %v3619_v42, %s4906_s24  ;;  %3735 = vrot.lane.b32.xlu1 %v3684_v29, %s4906_s24 }
 0x818   : > { %3733 = vrot.lane.b32.xlu0 %v5903_v63, %s4906_s24 }
 0x83f   : > { %v3738_v2 = vpop.permute.xlu2 %3737 }
 0x847   : > { %v3702_v51 = vpop.permute.xlu2 %3701 }
 0x84f   : > { %v3732_v54 = vpop.permute.xlu2 %3731 }
 0x857   : > { %v3778_v16 = vpop.permute.xlu2 %3777 }
 0x86a   : > { %v3742_v34 = vpop.permute.xlu1 %3741  ;;  %v3710_v21 = vpop.permute.xlu0 %3709 }
 0x86b   : > { %v3748_v25 = vsel %vm485_vm5, %v3742_v34, %v3744_v33  ;;  %v3716_v24 = vsel %vm485_vm5, %v3710_v21, %v3712_v20  ;;  %v4646_v34 = vld [vmem:[%s6016_s9 + $0x8] sm:$0xff]  ;;  %v4645_v21 = vld [vmem:[%s6016_s9] sm:$0xff] }
 0x86c   : > { %v3760_v3 = vadd.f32 %v3748_v25, %v3666_v35  ;;  %v3759_v4 = vadd.f32 %v3716_v24, %v3665_v9  ;;  %v4650_v9 = vld [vmem:[%s6016_s9 + $0x28] sm:$0xff] }
 0x86d   : > { %v4658_v35 = vld [vmem:[%s6016_s9 + $0x68] sm:$0xff] }
 0x86e   : > { %v3768_v41 = vmul.f32 0.5, %v3760_v3  ;;  %v3767_v55 = vmul.f32 0.5, %v3759_v4  ;;  %3980 = vmatpush.bf16.msrb.mxu3 %v4658_v35  ;;  %v4654_v25 = vld [vmem:[%s6016_s9 + $0x48] sm:$0xff] }
 0x872   : > { %v3730_v28 = vpop.permute.xlu1 %3729  ;;  %v3740_v40 = vpop.permute.xlu0 %3739  ;;  %3981 = vmatpush.bf16.msrb.mxu3 %v4657_v7 }
 0x873   : > { %v3747_v32 = vsel %vm485_vm5, %v3738_v2, %v3740_v40  ;;  %v3745_v5 = vsel %vm485_vm5, %v3730_v28, %v3732_v54  ;;  %v4653_v2 = vld [vmem:[%s6016_s9 + $0x40] sm:$0xff] }
 0x874   : > { %v3758_v30 = vadd.f32 %v3747_v32, %v3624_v0  ;;  %v3754_v8 = vadd.f32 %v3745_v5, %v3620_v44 }
 0x876   : > { %v3766_v49 = vmul.f32 0.5, %v3758_v30  ;;  %v3762_v17 = vmul.f32 0.5, %v3754_v8 }
 0x878   : > { %v3773_v38 = vpack.c.bf16 %v3768_v41, %v3766_v49 }
 0x87a   : > { %v3706_v36 = vpop.permute.xlu1 %3705  ;;  %3802 = vmatpush.bf16.msra.mxu1 %v3773_v38  ;;  %v3704_v48 = vpop.permute.xlu0 %3703 }
 0x87b   : > { %v3715_v62 = vsel %vm485_vm5, %v3706_v36, %v3708_v6  ;;  %v3714_v58 = vsel %vm485_vm5, %v3702_v51, %v3704_v48 }
 0x87c   : > { %v3757_v52 = vadd.f32 %v3715_v62, %v3623_v12  ;;  %v3755_v57 = vadd.f32 %v3714_v58, %v5907_v23 }
 0x87e   : > { %v3765_v56 = vmul.f32 0.5, %v3757_v52  ;;  %v3763_v46 = vmul.f32 0.5, %v3755_v57 }
 0x880   : > { %v3772_v13 = vpack.c.bf16 %v3767_v55, %v3765_v56 }
 0x882   : > { %3789 = vmatpush.bf16.msra.mxu0 %v3772_v13  ;;  %v3698_v60 = vpop.permute.xlu0 %3697  ;;  %v3736_v0 = vpop.permute.xlu1 %3735 }
 0x883   : > { %v3713_v59 = vsel %vm485_vm5, %v3698_v60, %v3700_v31 }
 0x884   : > { %v3753_v61 = vadd.f32 %v3713_v59, %v3619_v42 }
 0x886   : > { %v3761_v1 = vmul.f32 0.5, %v3753_v61 }
 0x888   : > { %v3770_v22 = vpack.c.bf16 %v3763_v46, %v3761_v1 }
 0x88a   : > { %3790 = vmatpush.bf16.msra.mxu0 %v3770_v22  ;;  %v3734_v47 = vpop.permute.xlu0 %3733 }
 0x88b   : > { %v3746_v23 = vsel %vm485_vm5, %v3734_v47, %v3736_v0 }
 0x88c   : > { %v3756_v18 = vadd.f32 %v3746_v23, %v5903_v63  ;;  %v4651_v63 = vld [vmem:[%s6016_s9 + $0x30] sm:$0xff] }
 0x88d   : > { %4477 = vmatmul.msk.bf16.vlgmr.msra.gmra.mxu0 %vm2307_vm12, %v3769_v19  ;;  %3966 = vmatpush.bf16.msrb.mxu2 %v4651_v63 }
 0x88e   : > { %v3764_v12 = vmul.f32 0.5, %v3756_v18 }
 0x890   : > { %v3771_v39 = vpack.c.bf16 %v3764_v12, %v3762_v17 }
 0x891   : > { %3967 = vmatpush.bf16.msrb.mxu2 %v4650_v9 }
 0x892   : > { %3803 = vmatpush.bf16.msra.mxu1 %v3771_v39 }
 0x895   : > { %4478 = vmatmul.msk.bf16.vlgmr.msra.gmra.mxu1 %vm2307_vm12, %v3769_v19  ;;  %3968 = vmatpush.bf16.msrb.mxu2 %v4649_v45 }
 0x899   : > { %3969 = vmatpush.bf16.msrb.mxu2 %v4648_v50 }
 0x89d   : > { %3970 = vmatpush.bf16.msrb.mxu2 %v4647_v26 }
 0x8a1   : > { %3971 = vmatpush.bf16.msrb.mxu2 %v4646_v34 }
 0x8a5   : > { %3972 = vmatpush.bf16.msrb.mxu2 %v4645_v21 }
 0x90a   : > { %v3792_v43 = vpop.f32.mrf.mxu0 }
 0x90b   : > { %v3793_v53 = vadd.f32 %v3792_v43, %v3778_v16 }
 0x90d   : > { %v3809_v44 = vmax.f32 %v3793_v53, 0.0 }
 0x90f   : > { %3811 = vst [vmem:[#allocation2 + $0x8] sm:$0xff] %v3809_v44  ;;  %v4885_v10 = vpack.i.bf16 %v5749_v37, %v3809_v44  ;;  %v4656_v37 = vld [vmem:[%s6016_s9 + $0x58] sm:$0xff] }
 0x910   : > { %3982 = vmatpush.bf16.msrb.mxu3 %v4656_v37 }
 0x911   : > { %4886 = vrot.lane.b32.xlu0 %v4885_v10, %s4906_s24 }
 0x912   : > { %v3805_v29 = vpop.f32.mrf.mxu1  ;;  %v3794_v42 = vpop.f32.mrf.mxu0 }
 0x913   : > { %v3806_v20 = vadd.f32 %v3805_v29, %v3778_v16 }
 0x915   : > { %v3810_v6 = vmax.f32 %v3806_v20, 0.0 }
 0x917   : > { %3812 = vst [vmem:[#allocation2 + $0x20] sm:$0xff] %v3810_v6  ;;  %v4890_v31 = vpack.i.bf16 %v5912_v11, %v3810_v6  ;;  %v4655_v11 = vld [vmem:[%s6016_s9 + $0x50] sm:$0xff] }
 0x918   : > { %3983 = vmatpush.bf16.msrb.mxu3 %v4655_v11 }
 0x919   : > { %4891 = vrot.lane.b32.xlu1 %v4890_v31, %s4906_s24 }
 0x91a   : > { %v3807_v33 = vpop.f32.mrf.mxu1 }
 0x91c   : > { %3984 = vmatpush.bf16.msrb.mxu3 %v4654_v25 }
 0x920   : > { %3985 = vmatpush.bf16.msrb.mxu3 %v4653_v2 }
 0x983   : > { %v4887_v3 = vpop.permute.xlu0 %4886 }
 0x984   : > { %v4889_v28 = vunpack.i.h.bf16 %v4887_v3  ;;  %v4888_v40 = vunpack.i.l.bf16 %v4887_v3 }
 0x986   : > { %v3823_v32 = vsel %vm485_vm5, %v4888_v40, %v4889_v28 }
 0x987   : > { %v3833_v30 = vmax.f32 %v3809_v44, %v3823_v32 }
 0x989   : > { %v3835_v41 = vpack.c.bf16 %v3833_v30, %v3833_v30 }
 0x98b   : > { %v4892_v49 = vpop.permute.xlu1 %4891  ;;  %3973 = vmatmul.bf16.vlgmr.msrb.gmra.mxu2 %v3835_v41 }
 0x98c   : > { %v4894_v24 = vunpack.i.h.bf16 %v4892_v49  ;;  %v4893_v38 = vunpack.i.l.bf16 %v4892_v49 }
 0x98e   : > { %v3831_v4 = vsel %vm485_vm5, %v4893_v38, %v4894_v24 }
 0x98f   : > { %v3834_v36 = vmax.f32 %v3810_v6, %v3831_v4 }
 0x991   : > { %v3836_v48 = vpack.c.bf16 %v3834_v36, %v3834_v36 }
 0x993   : > { %3986 = vmatmul.bf16.vlgmr.msrb.gmra.mxu3 %v3836_v48 }
 0xa0e   : > { %v3974_v62 = vpop.f32.mrf.mxu2 }
 0xa16   : > { %v3976_v51 = vpop.f32.mrf.mxu2  ;;  %v3987_v52 = vpop.f32.mrf.mxu3 }
 0xa17   : > { %v3988_v55 = vadd.f32 %v3987_v52, %v3974_v62 }
 0xa19   : > { %3992 = vst.msk [vmem:[%s384_s28] sm:$0xff] %vm437_vm8, %v3988_v55 }
 0xa1e   : > { %v3989_v56 = vpop.f32.mrf.mxu3 }
 0xa1f PF: > { %s21_s17 = sadd.s32 1, %s4902_s17  }
 0xa20   : > { %p18_p4 = scmp.ge.s32.totalorder %s21_s17, 4  }
 0xa22   :  { %20 = sbr.rel (!%p18_p4) target bundleno = 1 (0x1), region = 97 }

</bundles_post_ra>
